<compile_context>
chip_gen: v7x
topology: tpu7x:2x2x1
jax: 0.10.0
libtpu: 0.0.40
codegen_flags: <defaults>
</compile_context>

<pallas_src>
import functools

import numpy as np
import jax
import jax.numpy as jnp
from jax import lax
from jax.experimental import pallas as pl
from jax.experimental.pallas import tpu as pltpu


def _round_up(x, m):
    return ((x + m - 1) // m) * m


# ---------------------------------------------------------------------------
# In-kernel building blocks
# ---------------------------------------------------------------------------

def _key_mask(lk, true_len):
    """Additive mask (1,1,lk): 0 for key rows < true_len, -1e30 for bucket pad."""
    ids = lax.broadcasted_iota(jnp.int32, (1, 1, lk), 2)
    return jnp.where(ids < true_len, 0.0, -1e30)


def _mh_attention(qx, kx, kmask, n_head, hd):
    """Multi-head dot-product attention; values == keys (reference Attention).

    qx: (bt, lq, H*hd) bf16, kx: (bt, lk, H*hd) bf16 -> (bt, lq, H*hd) f32.
    Batch elements ride the dot_general batch dim; heads are a short static loop.
    """
    outs = []
    for h in range(n_head):
        sl = slice(h * hd, (h + 1) * hd)
        qh = qx[:, :, sl]
        kh = kx[:, :, sl]
        s = jnp.einsum('bqd,bkd->bqk', qh, kh,
                       preferred_element_type=jnp.float32) + kmask
        s = s - jnp.max(s, axis=-1, keepdims=True)
        e = jnp.exp(s)
        p = e * pl.reciprocal(jnp.sum(e, axis=-1, keepdims=True), approx=True)
        outs.append(jnp.einsum('bqk,bkd->bqd', p.astype(jnp.bfloat16), kh,
                               preferred_element_type=jnp.float32))
    return jnp.concatenate(outs, axis=-1)


def _self_attn_ffn(x2, bt, l, w, n_head, kmask):
    """Self-attention (fused Q|K projection, out-proj folded into FFN W1) + FFN.

    x2: (bt*l, din) bf16 -> (bt*l, dout) bf16.
    """
    wkq_ref, bkq_ref, wp1_ref, bp1_ref, w2_ref, b2_ref = w
    wkq = wkq_ref[...]                                   # (din, 2*H*Hd) bf16
    hhd = wkq.shape[-1] // 2
    hd = hhd // n_head

    kq = jnp.dot(x2, wkq, preferred_element_type=jnp.float32) + bkq_ref[...]
    kq = kq.astype(jnp.bfloat16)
    kx = kq[:, :hhd].reshape(bt, l, hhd)
    qx = kq[:, hhd:].reshape(bt, l, hhd)

    o = _mh_attention(qx, kx, kmask, n_head, hd)         # (bt, l, H*Hd) f32
    o2 = o.reshape(bt * l, hhd).astype(jnp.bfloat16)

    # Folded: relu(x (Wp W1) + (bp W1 + b1)) W2 + b2
    h1 = jnp.dot(o2, wp1_ref[...], preferred_element_type=jnp.float32) + bp1_ref[...]
    h1 = jnp.maximum(h1, 0.0).astype(jnp.bfloat16)
    y = jnp.dot(h1, w2_ref[...], preferred_element_type=jnp.float32) + b2_ref[...]
    return y.astype(jnp.bfloat16)


# ---------------------------------------------------------------------------
# Fused forward kernel: one grid step == one block of Bt batch elements
# ---------------------------------------------------------------------------

def fused_tt_kernel(ctx_ref, tgt_ref, clen_ref, tlens_ref, *refs, n_head):
    out_ref = refs[-1]
    it = iter(refs[:-1])
    take = lambda n: tuple(next(it) for _ in range(n))

    w_text1 = take(6)
    w_text2 = take(6)
    w_asp1 = take(6)
    w_asp2 = take(6)
    wk1_ref, bk1_ref, wq1_ref, bq1_ref = take(4)
    wpd_ref, bpd_ref, bd_ref = take(3)

    bt, lc, d = ctx_ref.shape
    _, lt, _ = tgt_ref.shape

    true_lc = tlens_ref[0]                               # runtime batch-max lens
    true_lt = tlens_ref[1]
    ck_mask = _key_mask(lc, true_lc)
    tk_mask = _key_mask(lt, true_lt)

    c = ctx_ref[...].reshape(bt * lc, d)                 # bf16
    t = tgt_ref[...].reshape(bt * lt, d)

    # Context stream.
    hc = _self_attn_ffn(c, bt, lc, w_text1, n_head, ck_mask)
    hc = _self_attn_ffn(hc, bt, lc, w_text2, n_head, ck_mask)
    # Target stream.
    ht = _self_attn_ffn(t, bt, lt, w_asp1, n_head, tk_mask)
    ht = _self_attn_ffn(ht, bt, lt, w_asp2, n_head, tk_mask)

    # Cross attention s1 (k = hc, q = ht).
    hhd1 = wk1_ref.shape[-1]
    hd1 = hhd1 // n_head
    kx = (jnp.dot(hc, wk1_ref[...], preferred_element_type=jnp.float32)
          + bk1_ref[...]).astype(jnp.bfloat16).reshape(bt, lc, hhd1)
    qx = (jnp.dot(ht, wq1_ref[...], preferred_element_type=jnp.float32)
          + bq1_ref[...]).astype(jnp.bfloat16).reshape(bt, lt, hhd1)
    o1 = _mh_attention(qx, kx, ck_mask, n_head, hd1)     # (bt, lt, hhd1) f32

    # Epilogue: sum over the true_lt query rows (bucket-pad rows excluded),
    # divide by context_len, folded (Wp_s1 @ Wd) dense layer.
    q_ids = lax.broadcasted_iota(jnp.int32, (1, lt, 1), 1)
    qmask = (q_ids < true_lt).astype(jnp.float32)
    osum = jnp.sum(o1 * qmask, axis=1)                   # (bt, hhd1)

    inv_clen = 1.0 / clen_ref[0]                         # (bt, 1) f32
    y = jnp.dot(osum.astype(jnp.bfloat16), wpd_ref[...],
                preferred_element_type=jnp.float32)      # (bt, polp)
    y = (y + true_lt.astype(jnp.float32) * bpd_ref[...]) * inv_clen + bd_ref[...]
    out_ref[0] = y


# ---------------------------------------------------------------------------
# Weight packing / folding (runs inside jit, one-time per call)
# ---------------------------------------------------------------------------

def _pack_weights(params, polp):
    packed = []

    def self_block(attn, ffn):
        wkq = jnp.concatenate([attn["wk"], attn["wq"]], axis=1).astype(jnp.bfloat16)
        bkq = jnp.concatenate([attn["bk"], attn["bq"]], axis=1)
        wp1 = jnp.dot(attn["wp"], ffn["w1"]).astype(jnp.bfloat16)
        bp1 = jnp.dot(attn["bp"], ffn["w1"]) + ffn["b1"]
        packed.extend([wkq, bkq, wp1, bp1,
                       ffn["w2"].astype(jnp.bfloat16), ffn["b2"]])

    self_block(params["attn_text"], params["ffn_c"])
    self_block(params["attn_text2"], params["ffn_c2"])
    self_block(params["attn_aspect"], params["ffn_t"])
    self_block(params["attn_aspect2"], params["ffn_t2"])

    s1 = params["attn_s1"]
    dn = params["dense"]
    packed.extend([s1["wk"].astype(jnp.bfloat16), s1["bk"],
                   s1["wq"].astype(jnp.bfloat16), s1["bq"]])
    pol = dn["wd"].shape[-1]
    pad = ((0, 0), (0, polp - pol))
    wpd = jnp.pad(jnp.dot(s1["wp"], dn["wd"]), pad).astype(jnp.bfloat16)
    bpd = jnp.pad(jnp.dot(s1["bp"], dn["wd"]), pad)
    bd = jnp.pad(dn["bd"], pad)
    packed.extend([wpd, bpd, bd])
    return packed


def _full_spec(arr):
    zeros = (0,) * arr.ndim
    return pl.BlockSpec(arr.shape, lambda i, _z=zeros: _z)


def fused_forward(context, target, ctx_len, tlens, params, heads, bt):
    b_pad, lc, d = context.shape
    _, lt, _ = target.shape
    n_steps = b_pad // bt
    pol = params["dense"]["wd"].shape[-1]
    polp = _round_up(pol, 128)                           # lane-dense output slab

    weights = _pack_weights(params, polp)
    clen3 = jnp.maximum(ctx_len, 1).astype(jnp.float32).reshape(n_steps, bt, 1)

    in_specs = [
        pl.BlockSpec((bt, lc, d), lambda i: (i, 0, 0)),
        pl.BlockSpec((bt, lt, d), lambda i: (i, 0, 0)),
        pl.BlockSpec((1, bt, 1), lambda i: (i, 0, 0)),
        pl.BlockSpec(memory_space=pltpu.MemorySpace.SMEM),   # true_lc / true_lt
    ] + [_full_spec(w) for w in weights]                     # constant weight blocks

    kernel = functools.partial(fused_tt_kernel, n_head=heads)
    out3 = pl.pallas_call(
        kernel,
        out_shape=jax.ShapeDtypeStruct((n_steps, bt, polp), jnp.float32),
        grid=(n_steps,),
        in_specs=in_specs,
        out_specs=pl.BlockSpec((1, bt, polp), lambda i: (i, 0, 0)),
        compiler_params=pltpu.CompilerParams(
            dimension_semantics=("parallel",),
            vmem_limit_bytes=32 * 1024 * 1024),
    )(context, target, clen3, tlens, *weights)
    return out3.reshape(b_pad, polp)


# ---------------------------------------------------------------------------
# Glue: embedding lookup + SqueezeEmbedding mask (plain JAX, jitted)
# ---------------------------------------------------------------------------

def _embed_and_mask(idx, emb):
    lengths = jnp.sum(idx != 0, axis=-1)
    x = jnp.take(emb, idx, axis=0)                       # (B, L, D) f32
    mask = jnp.arange(idx.shape[1])[None, :] < lengths[:, None]
    x = (x * mask[:, :, None]).astype(jnp.bfloat16)      # bf16 activations
    return x, lengths


@functools.partial(jax.jit, static_argnames=("heads", "bt"))
def _forward_core(text_idx, target_idx, tlens, params, *, heads, bt):
    context, ctx_len = _embed_and_mask(text_idx, params["embed"])
    target, _tgt_len = _embed_and_mask(target_idx, params["embed"])
    return fused_forward(context, target, ctx_len, tlens, params, heads, bt)


def _choose_block(b):
    """Batch-block size: fold batch into M, but keep >= 2 grid steps (v7x 2 TCs)."""
    if b <= 1:
        return 1, 1
    bt = min(8, (b + 1) // 2)
    return bt, -(-b // bt)


def targeted_transformer_forward(text_idx, target_idx, params, heads):
    # SqueezeEmbedding truncation + bucketing (multiples of 8), host-side on
    # numpy indices: static shapes per bucket, no device->host sync inside jit.
    text_np = np.asarray(text_idx)
    target_np = np.asarray(target_idx)
    b = text_np.shape[0]
    true_lc = max(int((text_np != 0).sum(axis=-1).max()), 1)
    true_lt = max(int((target_np != 0).sum(axis=-1).max()), 1)
    lc = _round_up(true_lc, 8)
    lt = _round_up(true_lt, 8)
    bt, n_steps = _choose_block(b)
    b_pad = bt * n_steps

    def prep(idx, l):
        out = np.zeros((b_pad, l), dtype=np.int32)
        w = min(l, idx.shape[1])
        out[:b, :w] = idx[:, :w]
        return out

    tlens = jnp.asarray([true_lc, true_lt], dtype=jnp.int32)
    out = _forward_core(jnp.asarray(prep(text_np, lc)),
                        jnp.asarray(prep(target_np, lt)),
                        tlens, params, heads=heads, bt=bt)
    pol = params["dense"]["wd"].shape[-1]
    return out[:b, :pol]


# ---------------------------------------------------------------------------
# Deterministic parameter init (stored f32; cast/folded to bf16 at prep time)
# ---------------------------------------------------------------------------

def init_params(key, vocab, embed_dim, att_dim, hidden_dim, heads, polarities):
    keys = iter(jax.random.split(key, 64))

    def nrm(shape, scale=0.08):
        return jax.random.normal(next(keys), shape, jnp.float32) * scale

    def attn_params(in_dim, per_head, out_dim):
        hhd = heads * per_head
        return dict(wk=nrm((in_dim, hhd)), bk=nrm((1, hhd)),
                    wq=nrm((in_dim, hhd)), bq=nrm((1, hhd)),
                    wp=nrm((hhd, out_dim)), bp=nrm((1, out_dim)))

    def ffn_params(dim):
        return dict(w1=nrm((dim, dim)), b1=nrm((1, dim)),
                    w2=nrm((dim, dim)), b2=nrm((1, dim)))

    return dict(
        embed=nrm((vocab, embed_dim), scale=0.1),
        # BearAttention(embed_dim, hidden_dim=att_dim, out_dim=hidden_dim, n_head=heads)
        attn_text=attn_params(embed_dim, att_dim, hidden_dim),
        attn_aspect=attn_params(embed_dim, att_dim, hidden_dim),
        # Attention(att_dim, hidden_dim=att_dim, out_dim=hidden_dim, n_head=heads)
        attn_text2=attn_params(att_dim, att_dim, hidden_dim),
        attn_aspect2=attn_params(att_dim, att_dim, hidden_dim),
        ffn_c=ffn_params(att_dim), ffn_c2=ffn_params(hidden_dim),
        ffn_t=ffn_params(att_dim), ffn_t2=ffn_params(hidden_dim),
        # Attention(hidden_dim, n_head=heads) -> per-head = hidden_dim // heads
        attn_s1=attn_params(hidden_dim, hidden_dim // heads, hidden_dim),
        dense=dict(wd=nrm((hidden_dim, polarities)), bd=nrm((1, polarities))),
    )


# ---------------------------------------------------------------------------
# Main
# ---------------------------------------------------------------------------

if __name__ == "__main__":
    VOCAB, EMBED_DIM, ATT_DIM, HIDDEN_DIM, HEADS, POLARITIES = 50, 32, 32, 32, 4, 3
    B, LC, LT = 2, 12, 6

    key = jax.random.PRNGKey(0)
    k_param, k_ctx, k_tgt = jax.random.split(key, 3)

    params = init_params(k_param, VOCAB, EMBED_DIM, ATT_DIM, HIDDEN_DIM, HEADS,
                         POLARITIES)

    # Deterministic token indices with trailing zero padding.
    ctx_lengths = [12, 9]
    tgt_lengths = [6, 4]
    text_idx = np.array(jax.random.randint(k_ctx, (B, LC), 1, VOCAB), dtype=np.int32)
    target_idx = np.array(jax.random.randint(k_tgt, (B, LT), 1, VOCAB), dtype=np.int32)
    for i in range(B):
        text_idx[i, ctx_lengths[i]:] = 0
        target_idx[i, tgt_lengths[i]:] = 0

    out = targeted_transformer_forward(text_idx, target_idx, params, HEADS)
    out = jax.block_until_ready(out)
    assert out.shape == (B, POLARITIES)
    assert bool(jnp.all(jnp.isfinite(out)))
    print("KERNEL_OK")
</pallas_src>

<mosaic_0001>
module attributes {stable_mosaic.version = 11 : i64} {
  func.func @fused_tt_kernel(%arg0: i32, %arg1: memref<1x16x32xbf16, #tpu.memory_space<vmem>>, %arg2: memref<1x8x32xbf16, #tpu.memory_space<vmem>>, %arg3: memref<1x1x1xf32, #tpu.memory_space<vmem>>, %arg4: memref<2xi32, #tpu.memory_space<smem>>, %arg5: memref<32x256xbf16, #tpu.memory_space<vmem>>, %arg6: memref<1x256xf32, #tpu.memory_space<vmem>>, %arg7: memref<128x32xbf16, #tpu.memory_space<vmem>>, %arg8: memref<1x32xf32, #tpu.memory_space<vmem>>, %arg9: memref<32x32xbf16, #tpu.memory_space<vmem>>, %arg10: memref<1x32xf32, #tpu.memory_space<vmem>>, %arg11: memref<32x256xbf16, #tpu.memory_space<vmem>>, %arg12: memref<1x256xf32, #tpu.memory_space<vmem>>, %arg13: memref<128x32xbf16, #tpu.memory_space<vmem>>, %arg14: memref<1x32xf32, #tpu.memory_space<vmem>>, %arg15: memref<32x32xbf16, #tpu.memory_space<vmem>>, %arg16: memref<1x32xf32, #tpu.memory_space<vmem>>, %arg17: memref<32x256xbf16, #tpu.memory_space<vmem>>, %arg18: memref<1x256xf32, #tpu.memory_space<vmem>>, %arg19: memref<128x32xbf16, #tpu.memory_space<vmem>>, %arg20: memref<1x32xf32, #tpu.memory_space<vmem>>, %arg21: memref<32x32xbf16, #tpu.memory_space<vmem>>, %arg22: memref<1x32xf32, #tpu.memory_space<vmem>>, %arg23: memref<32x256xbf16, #tpu.memory_space<vmem>>, %arg24: memref<1x256xf32, #tpu.memory_space<vmem>>, %arg25: memref<128x32xbf16, #tpu.memory_space<vmem>>, %arg26: memref<1x32xf32, #tpu.memory_space<vmem>>, %arg27: memref<32x32xbf16, #tpu.memory_space<vmem>>, %arg28: memref<1x32xf32, #tpu.memory_space<vmem>>, %arg29: memref<32x32xbf16, #tpu.memory_space<vmem>>, %arg30: memref<1x32xf32, #tpu.memory_space<vmem>>, %arg31: memref<32x32xbf16, #tpu.memory_space<vmem>>, %arg32: memref<1x32xf32, #tpu.memory_space<vmem>>, %arg33: memref<32x128xbf16, #tpu.memory_space<vmem>>, %arg34: memref<1x128xf32, #tpu.memory_space<vmem>>, %arg35: memref<1x128xf32, #tpu.memory_space<vmem>>, %arg36: memref<1x1x128xf32, #tpu.memory_space<vmem>>) attributes {dimension_semantics = [#tpu.dimension_semantics<parallel>], iteration_bounds = array<i64: 2>, scalar_prefetch = 0 : i64, scratch_operands = 0 : i64, tpu.core_type = #tpu.core_type<tc>, window_params = [{transform_indices = @transform_0, window_bounds = array<i64: 1, 16, 32>}, {transform_indices = @transform_1, window_bounds = array<i64: 1, 8, 32>}, {transform_indices = @transform_2, window_bounds = array<i64: 1, 1, 1>}, {transform_indices = @transform_3, window_bounds = array<i64: 2>}, {pipeline_mode = #tpu.pipeline_mode<synchronous>, transform_indices = @transform_4, window_bounds = array<i64: 32, 256>}, {pipeline_mode = #tpu.pipeline_mode<synchronous>, transform_indices = @transform_5, window_bounds = array<i64: 1, 256>}, {pipeline_mode = #tpu.pipeline_mode<synchronous>, transform_indices = @transform_6, window_bounds = array<i64: 128, 32>}, {pipeline_mode = #tpu.pipeline_mode<synchronous>, transform_indices = @transform_7, window_bounds = array<i64: 1, 32>}, {pipeline_mode = #tpu.pipeline_mode<synchronous>, transform_indices = @transform_8, window_bounds = array<i64: 32, 32>}, {pipeline_mode = #tpu.pipeline_mode<synchronous>, transform_indices = @transform_9, window_bounds = array<i64: 1, 32>}, {pipeline_mode = #tpu.pipeline_mode<synchronous>, transform_indices = @transform_10, window_bounds = array<i64: 32, 256>}, {pipeline_mode = #tpu.pipeline_mode<synchronous>, transform_indices = @transform_11, window_bounds = array<i64: 1, 256>}, {pipeline_mode = #tpu.pipeline_mode<synchronous>, transform_indices = @transform_12, window_bounds = array<i64: 128, 32>}, {pipeline_mode = #tpu.pipeline_mode<synchronous>, transform_indices = @transform_13, window_bounds = array<i64: 1, 32>}, {pipeline_mode = #tpu.pipeline_mode<synchronous>, transform_indices = @transform_14, window_bounds = array<i64: 32, 32>}, {pipeline_mode = #tpu.pipeline_mode<synchronous>, transform_indices = @transform_15, window_bounds = array<i64: 1, 32>}, {pipeline_mode = #tpu.pipeline_mode<synchronous>, transform_indices = @transform_16, window_bounds = array<i64: 32, 256>}, {pipeline_mode = #tpu.pipeline_mode<synchronous>, transform_indices = @transform_17, window_bounds = array<i64: 1, 256>}, {pipeline_mode = #tpu.pipeline_mode<synchronous>, transform_indices = @transform_18, window_bounds = array<i64: 128, 32>}, {pipeline_mode = #tpu.pipeline_mode<synchronous>, transform_indices = @transform_19, window_bounds = array<i64: 1, 32>}, {pipeline_mode = #tpu.pipeline_mode<synchronous>, transform_indices = @transform_20, window_bounds = array<i64: 32, 32>}, {pipeline_mode = #tpu.pipeline_mode<synchronous>, transform_indices = @transform_21, window_bounds = array<i64: 1, 32>}, {pipeline_mode = #tpu.pipeline_mode<synchronous>, transform_indices = @transform_22, window_bounds = array<i64: 32, 256>}, {pipeline_mode = #tpu.pipeline_mode<synchronous>, transform_indices = @transform_23, window_bounds = array<i64: 1, 256>}, {pipeline_mode = #tpu.pipeline_mode<synchronous>, transform_indices = @transform_24, window_bounds = array<i64: 128, 32>}, {pipeline_mode = #tpu.pipeline_mode<synchronous>, transform_indices = @transform_25, window_bounds = array<i64: 1, 32>}, {pipeline_mode = #tpu.pipeline_mode<synchronous>, transform_indices = @transform_26, window_bounds = array<i64: 32, 32>}, {pipeline_mode = #tpu.pipeline_mode<synchronous>, transform_indices = @transform_27, window_bounds = array<i64: 1, 32>}, {pipeline_mode = #tpu.pipeline_mode<synchronous>, transform_indices = @transform_28, window_bounds = array<i64: 32, 32>}, {pipeline_mode = #tpu.pipeline_mode<synchronous>, transform_indices = @transform_29, window_bounds = array<i64: 1, 32>}, {pipeline_mode = #tpu.pipeline_mode<synchronous>, transform_indices = @transform_30, window_bounds = array<i64: 32, 32>}, {pipeline_mode = #tpu.pipeline_mode<synchronous>, transform_indices = @transform_31, window_bounds = array<i64: 1, 32>}, {pipeline_mode = #tpu.pipeline_mode<synchronous>, transform_indices = @transform_32, window_bounds = array<i64: 32, 128>}, {pipeline_mode = #tpu.pipeline_mode<synchronous>, transform_indices = @transform_33, window_bounds = array<i64: 1, 128>}, {pipeline_mode = #tpu.pipeline_mode<synchronous>, transform_indices = @transform_34, window_bounds = array<i64: 1, 128>}, {transform_indices = @transform_35, window_bounds = array<i64: 1, 1, 128>}]} {
    %c0 = arith.constant 0 : index
    %0 = memref.load %arg4[%c0] : memref<2xi32, #tpu.memory_space<smem>>
    %c1 = arith.constant 1 : index
    %1 = memref.load %arg4[%c1] : memref<2xi32, #tpu.memory_space<smem>>
    %2 = tpu.iota {dimensions = array<i32: 2>} : vector<1x1x16xi32>
    %3 = vector.broadcast %0 : i32 to vector<1x1x16xi32>
    %4 = arith.cmpi slt, %2, %3 : vector<1x1x16xi32>
    %cst = arith.constant 0.000000e+00 : f32
    %cst_0 = arith.constant -1.000000e+30 : f32
    %5 = vector.broadcast %cst : f32 to vector<1x1x16xf32>
    %6 = vector.broadcast %cst_0 : f32 to vector<1x1x16xf32>
    %7 = arith.select %4, %5, %6 : vector<1x1x16xi1>, vector<1x1x16xf32>
    %8 = tpu.iota {dimensions = array<i32: 2>} : vector<1x1x8xi32>
    %9 = vector.broadcast %1 : i32 to vector<1x1x8xi32>
    %10 = arith.cmpi slt, %8, %9 : vector<1x1x8xi32>
    %cst_1 = arith.constant 0.000000e+00 : f32
    %cst_2 = arith.constant -1.000000e+30 : f32
    %11 = vector.broadcast %cst_1 : f32 to vector<1x1x8xf32>
    %12 = vector.broadcast %cst_2 : f32 to vector<1x1x8xf32>
    %13 = arith.select %10, %11, %12 : vector<1x1x8xi1>, vector<1x1x8xf32>
    %c0_3 = arith.constant 0 : index
    %c0_4 = arith.constant 0 : index
    %c0_5 = arith.constant 0 : index
    %14 = vector.load %arg1[%c0_3, %c0_4, %c0_5] : memref<1x16x32xbf16, #tpu.memory_space<vmem>>, vector<1x16x32xbf16>
    %15 = vector.shape_cast %14 : vector<1x16x32xbf16> to vector<16x32xbf16>
    %c0_6 = arith.constant 0 : index
    %c0_7 = arith.constant 0 : index
    %c0_8 = arith.constant 0 : index
    %16 = vector.load %arg2[%c0_6, %c0_7, %c0_8] : memref<1x8x32xbf16, #tpu.memory_space<vmem>>, vector<1x8x32xbf16>
    %17 = vector.shape_cast %16 : vector<1x8x32xbf16> to vector<8x32xbf16>
    %c0_9 = arith.constant 0 : index
    %c0_10 = arith.constant 0 : index
    %18 = vector.load %arg5[%c0_9, %c0_10] : memref<32x256xbf16, #tpu.memory_space<vmem>>, vector<32x256xbf16>
    %cst_11 = arith.constant dense<0.000000e+00> : vector<16x256xf32>
    %19 = tpu.matmul %15, %18, %cst_11 {dimension_numbers = #tpu.dot_dimension_numbers<[1], [0], [0], [1], [0, 0, 1, 1], [], []>} : vector<16x32xbf16>, vector<32x256xbf16>, vector<16x256xf32> -> vector<16x256xf32>
    %c0_12 = arith.constant 0 : index
    %c0_13 = arith.constant 0 : index
    %20 = vector.load %arg6[%c0_12, %c0_13] : memref<1x256xf32, #tpu.memory_space<vmem>>, vector<1x256xf32>
    %21 = vector.broadcast %20 : vector<1x256xf32> to vector<16x256xf32>
    %22 = arith.addf %19, %21 : vector<16x256xf32>
    %23 = arith.truncf %22 : vector<16x256xf32> to vector<16x256xbf16>
    %24 = vector.extract_strided_slice %23 {offsets = [0, 0], sizes = [16, 128], strides = [1, 1]} : vector<16x256xbf16> to vector<16x128xbf16>
    %25 = vector.shape_cast %24 : vector<16x128xbf16> to vector<1x16x128xbf16>
    %26 = vector.extract_strided_slice %23 {offsets = [0, 128], sizes = [16, 128], strides = [1, 1]} : vector<16x256xbf16> to vector<16x128xbf16>
    %27 = vector.shape_cast %26 : vector<16x128xbf16> to vector<1x16x128xbf16>
    %28 = vector.extract_strided_slice %27 {offsets = [0, 0, 0], sizes = [1, 16, 32], strides = [1, 1, 1]} : vector<1x16x128xbf16> to vector<1x16x32xbf16>
    %29 = vector.extract_strided_slice %25 {offsets = [0, 0, 0], sizes = [1, 16, 32], strides = [1, 1, 1]} : vector<1x16x128xbf16> to vector<1x16x32xbf16>
    "tpu.trace_start"() <{level = 10 : i32, message = "bqd,bkd->bqk"}> : () -> ()
    %cst_14 = arith.constant dense<0.000000e+00> : vector<1x16x16xf32>
    %30 = tpu.matmul %28, %29, %cst_14 {dimension_numbers = #tpu.dot_dimension_numbers<[2], [2], [1], [1], [0, 0, 0, 1, 1, 1], [0], [0]>} : vector<1x16x32xbf16>, vector<1x16x32xbf16>, vector<1x16x16xf32> -> vector<1x16x16xf32>
    "tpu.trace_stop"() : () -> ()
    %31 = vector.broadcast %7 : vector<1x1x16xf32> to vector<1x16x16xf32>
    %32 = arith.addf %30, %31 : vector<1x16x16xf32>
    %cst_15 = arith.constant dense<0xFF800000> : vector<1x16xf32>
    %33 = vector.multi_reduction <maximumf>, %32, %cst_15 [2] : vector<1x16x16xf32> to vector<1x16xf32>
    %34 = vector.shape_cast %33 : vector<1x16xf32> to vector<1x16x1xf32>
    %35 = vector.broadcast %34 : vector<1x16x1xf32> to vector<1x16x16xf32>
    %36 = arith.subf %32, %35 : vector<1x16x16xf32>
    %37 = math.exp %36 : vector<1x16x16xf32>
    %cst_16 = arith.constant dense<0.000000e+00> : vector<1x16xf32>
    %38 = vector.multi_reduction <add>, %37, %cst_16 [2] : vector<1x16x16xf32> to vector<1x16xf32>
    %39 = vector.shape_cast %38 : vector<1x16xf32> to vector<1x16x1xf32>
    %40 = tpu.reciprocal %39 {approx = true} : vector<1x16x1xf32> -> vector<1x16x1xf32>
    %41 = vector.broadcast %40 : vector<1x16x1xf32> to vector<1x16x16xf32>
    %42 = arith.mulf %37, %41 : vector<1x16x16xf32>
    %43 = arith.truncf %42 : vector<1x16x16xf32> to vector<1x16x16xbf16>
    "tpu.trace_start"() <{level = 10 : i32, message = "bqk,bkd->bqd"}> : () -> ()
    %cst_17 = arith.constant dense<0.000000e+00> : vector<1x16x32xf32>
    %44 = tpu.matmul %43, %29, %cst_17 {dimension_numbers = #tpu.dot_dimension_numbers<[2], [1], [1], [2], [0, 0, 0, 1, 1, 2], [0], [0]>} : vector<1x16x16xbf16>, vector<1x16x32xbf16>, vector<1x16x32xf32> -> vector<1x16x32xf32>
    "tpu.trace_stop"() : () -> ()
    %45 = vector.extract_strided_slice %27 {offsets = [0, 0, 32], sizes = [1, 16, 32], strides = [1, 1, 1]} : vector<1x16x128xbf16> to vector<1x16x32xbf16>
    %46 = vector.extract_strided_slice %25 {offsets = [0, 0, 32], sizes = [1, 16, 32], strides = [1, 1, 1]} : vector<1x16x128xbf16> to vector<1x16x32xbf16>
    "tpu.trace_start"() <{level = 10 : i32, message = "bqd,bkd->bqk"}> : () -> ()
    %cst_18 = arith.constant dense<0.000000e+00> : vector<1x16x16xf32>
    %47 = tpu.matmul %45, %46, %cst_18 {dimension_numbers = #tpu.dot_dimension_numbers<[2], [2], [1], [1], [0, 0, 0, 1, 1, 1], [0], [0]>} : vector<1x16x32xbf16>, vector<1x16x32xbf16>, vector<1x16x16xf32> -> vector<1x16x16xf32>
    "tpu.trace_stop"() : () -> ()
    %48 = vector.broadcast %7 : vector<1x1x16xf32> to vector<1x16x16xf32>
    %49 = arith.addf %47, %48 : vector<1x16x16xf32>
    %cst_19 = arith.constant dense<0xFF800000> : vector<1x16xf32>
    %50 = vector.multi_reduction <maximumf>, %49, %cst_19 [2] : vector<1x16x16xf32> to vector<1x16xf32>
    %51 = vector.shape_cast %50 : vector<1x16xf32> to vector<1x16x1xf32>
    %52 = vector.broadcast %51 : vector<1x16x1xf32> to vector<1x16x16xf32>
    %53 = arith.subf %49, %52 : vector<1x16x16xf32>
    %54 = math.exp %53 : vector<1x16x16xf32>
    %cst_20 = arith.constant dense<0.000000e+00> : vector<1x16xf32>
    %55 = vector.multi_reduction <add>, %54, %cst_20 [2] : vector<1x16x16xf32> to vector<1x16xf32>
    %56 = vector.shape_cast %55 : vector<1x16xf32> to vector<1x16x1xf32>
    %57 = tpu.reciprocal %56 {approx = true} : vector<1x16x1xf32> -> vector<1x16x1xf32>
    %58 = vector.broadcast %57 : vector<1x16x1xf32> to vector<1x16x16xf32>
    %59 = arith.mulf %54, %58 : vector<1x16x16xf32>
    %60 = arith.truncf %59 : vector<1x16x16xf32> to vector<1x16x16xbf16>
    "tpu.trace_start"() <{level = 10 : i32, message = "bqk,bkd->bqd"}> : () -> ()
    %cst_21 = arith.constant dense<0.000000e+00> : vector<1x16x32xf32>
    %61 = tpu.matmul %60, %46, %cst_21 {dimension_numbers = #tpu.dot_dimension_numbers<[2], [1], [1], [2], [0, 0, 0, 1, 1, 2], [0], [0]>} : vector<1x16x16xbf16>, vector<1x16x32xbf16>, vector<1x16x32xf32> -> vector<1x16x32xf32>
    "tpu.trace_stop"() : () -> ()
    %62 = vector.extract_strided_slice %27 {offsets = [0, 0, 64], sizes = [1, 16, 32], strides = [1, 1, 1]} : vector<1x16x128xbf16> to vector<1x16x32xbf16>
    %63 = vector.extract_strided_slice %25 {offsets = [0, 0, 64], sizes = [1, 16, 32], strides = [1, 1, 1]} : vector<1x16x128xbf16> to vector<1x16x32xbf16>
    "tpu.trace_start"() <{level = 10 : i32, message = "bqd,bkd->bqk"}> : () -> ()
    %cst_22 = arith.constant dense<0.000000e+00> : vector<1x16x16xf32>
    %64 = tpu.matmul %62, %63, %cst_22 {dimension_numbers = #tpu.dot_dimension_numbers<[2], [2], [1], [1], [0, 0, 0, 1, 1, 1], [0], [0]>} : vector<1x16x32xbf16>, vector<1x16x32xbf16>, vector<1x16x16xf32> -> vector<1x16x16xf32>
    "tpu.trace_stop"() : () -> ()
    %65 = vector.broadcast %7 : vector<1x1x16xf32> to vector<1x16x16xf32>
    %66 = arith.addf %64, %65 : vector<1x16x16xf32>
    %cst_23 = arith.constant dense<0xFF800000> : vector<1x16xf32>
    %67 = vector.multi_reduction <maximumf>, %66, %cst_23 [2] : vector<1x16x16xf32> to vector<1x16xf32>
    %68 = vector.shape_cast %67 : vector<1x16xf32> to vector<1x16x1xf32>
    %69 = vector.broadcast %68 : vector<1x16x1xf32> to vector<1x16x16xf32>
    %70 = arith.subf %66, %69 : vector<1x16x16xf32>
    %71 = math.exp %70 : vector<1x16x16xf32>
    %cst_24 = arith.constant dense<0.000000e+00> : vector<1x16xf32>
    %72 = vector.multi_reduction <add>, %71, %cst_24 [2] : vector<1x16x16xf32> to vector<1x16xf32>
    %73 = vector.shape_cast %72 : vector<1x16xf32> to vector<1x16x1xf32>
    %74 = tpu.reciprocal %73 {approx = true} : vector<1x16x1xf32> -> vector<1x16x1xf32>
    %75 = vector.broadcast %74 : vector<1x16x1xf32> to vector<1x16x16xf32>
    %76 = arith.mulf %71, %75 : vector<1x16x16xf32>
    %77 = arith.truncf %76 : vector<1x16x16xf32> to vector<1x16x16xbf16>
    "tpu.trace_start"() <{level = 10 : i32, message = "bqk,bkd->bqd"}> : () -> ()
    %cst_25 = arith.constant dense<0.000000e+00> : vector<1x16x32xf32>
    %78 = tpu.matmul %77, %63, %cst_25 {dimension_numbers = #tpu.dot_dimension_numbers<[2], [1], [1], [2], [0, 0, 0, 1, 1, 2], [0], [0]>} : vector<1x16x16xbf16>, vector<1x16x32xbf16>, vector<1x16x32xf32> -> vector<1x16x32xf32>
    "tpu.trace_stop"() : () -> ()
    %79 = vector.extract_strided_slice %27 {offsets = [0, 0, 96], sizes = [1, 16, 32], strides = [1, 1, 1]} : vector<1x16x128xbf16> to vector<1x16x32xbf16>
    %80 = vector.extract_strided_slice %25 {offsets = [0, 0, 96], sizes = [1, 16, 32], strides = [1, 1, 1]} : vector<1x16x128xbf16> to vector<1x16x32xbf16>
    "tpu.trace_start"() <{level = 10 : i32, message = "bqd,bkd->bqk"}> : () -> ()
    %cst_26 = arith.constant dense<0.000000e+00> : vector<1x16x16xf32>
    %81 = tpu.matmul %79, %80, %cst_26 {dimension_numbers = #tpu.dot_dimension_numbers<[2], [2], [1], [1], [0, 0, 0, 1, 1, 1], [0], [0]>} : vector<1x16x32xbf16>, vector<1x16x32xbf16>, vector<1x16x16xf32> -> vector<1x16x16xf32>
    "tpu.trace_stop"() : () -> ()
    %82 = vector.broadcast %7 : vector<1x1x16xf32> to vector<1x16x16xf32>
    %83 = arith.addf %81, %82 : vector<1x16x16xf32>
    %cst_27 = arith.constant dense<0xFF800000> : vector<1x16xf32>
    %84 = vector.multi_reduction <maximumf>, %83, %cst_27 [2] : vector<1x16x16xf32> to vector<1x16xf32>
    %85 = vector.shape_cast %84 : vector<1x16xf32> to vector<1x16x1xf32>
    %86 = vector.broadcast %85 : vector<1x16x1xf32> to vector<1x16x16xf32>
    %87 = arith.subf %83, %86 : vector<1x16x16xf32>
    %88 = math.exp %87 : vector<1x16x16xf32>
    %cst_28 = arith.constant dense<0.000000e+00> : vector<1x16xf32>
    %89 = vector.multi_reduction <add>, %88, %cst_28 [2] : vector<1x16x16xf32> to vector<1x16xf32>
    %90 = vector.shape_cast %89 : vector<1x16xf32> to vector<1x16x1xf32>
    %91 = tpu.reciprocal %90 {approx = true} : vector<1x16x1xf32> -> vector<1x16x1xf32>
    %92 = vector.broadcast %91 : vector<1x16x1xf32> to vector<1x16x16xf32>
    %93 = arith.mulf %88, %92 : vector<1x16x16xf32>
    %94 = arith.truncf %93 : vector<1x16x16xf32> to vector<1x16x16xbf16>
    "tpu.trace_start"() <{level = 10 : i32, message = "bqk,bkd->bqd"}> : () -> ()
    %cst_29 = arith.constant dense<0.000000e+00> : vector<1x16x32xf32>
    %95 = tpu.matmul %94, %80, %cst_29 {dimension_numbers = #tpu.dot_dimension_numbers<[2], [1], [1], [2], [0, 0, 0, 1, 1, 2], [0], [0]>} : vector<1x16x16xbf16>, vector<1x16x32xbf16>, vector<1x16x32xf32> -> vector<1x16x32xf32>
    "tpu.trace_stop"() : () -> ()
    %96 = tpu.concatenate %44, %61, %78, %95 in 2 : vector<1x16x32xf32>, vector<1x16x32xf32>, vector<1x16x32xf32>, vector<1x16x32xf32> -> vector<1x16x128xf32>
    %97 = vector.shape_cast %96 : vector<1x16x128xf32> to vector<16x128xf32>
    %98 = arith.truncf %97 : vector<16x128xf32> to vector<16x128xbf16>
    %c0_30 = arith.constant 0 : index
    %c0_31 = arith.constant 0 : index
    %99 = vector.load %arg7[%c0_30, %c0_31] : memref<128x32xbf16, #tpu.memory_space<vmem>>, vector<128x32xbf16>
    %cst_32 = arith.constant dense<0.000000e+00> : vector<16x32xf32>
    %100 = tpu.matmul %98, %99, %cst_32 {dimension_numbers = #tpu.dot_dimension_numbers<[1], [0], [0], [1], [0, 0, 1, 1], [], []>} : vector<16x128xbf16>, vector<128x32xbf16>, vector<16x32xf32> -> vector<16x32xf32>
    %c0_33 = arith.constant 0 : index
    %c0_34 = arith.constant 0 : index
    %101 = vector.load %arg8[%c0_33, %c0_34] : memref<1x32xf32, #tpu.memory_space<vmem>>, vector<1x32xf32>
    %102 = vector.broadcast %101 : vector<1x32xf32> to vector<16x32xf32>
    %103 = arith.addf %100, %102 : vector<16x32xf32>
    %cst_35 = arith.constant 0.000000e+00 : f32
    %104 = vector.broadcast %cst_35 : f32 to vector<16x32xf32>
    %105 = arith.maximumf %103, %104 : vector<16x32xf32>
    %106 = arith.truncf %105 : vector<16x32xf32> to vector<16x32xbf16>
    %c0_36 = arith.constant 0 : index
    %c0_37 = arith.constant 0 : index
    %107 = vector.load %arg9[%c0_36, %c0_37] : memref<32x32xbf16, #tpu.memory_space<vmem>>, vector<32x32xbf16>
    %cst_38 = arith.constant dense<0.000000e+00> : vector<16x32xf32>
    %108 = tpu.matmul %106, %107, %cst_38 {dimension_numbers = #tpu.dot_dimension_numbers<[1], [0], [0], [1], [0, 0, 1, 1], [], []>} : vector<16x32xbf16>, vector<32x32xbf16>, vector<16x32xf32> -> vector<16x32xf32>
    %c0_39 = arith.constant 0 : index
    %c0_40 = arith.constant 0 : index
    %109 = vector.load %arg10[%c0_39, %c0_40] : memref<1x32xf32, #tpu.memory_space<vmem>>, vector<1x32xf32>
    %110 = vector.broadcast %109 : vector<1x32xf32> to vector<16x32xf32>
    %111 = arith.addf %108, %110 : vector<16x32xf32>
    %112 = arith.truncf %111 : vector<16x32xf32> to vector<16x32xbf16>
    %c0_41 = arith.constant 0 : index
    %c0_42 = arith.constant 0 : index
    %113 = vector.load %arg11[%c0_41, %c0_42] : memref<32x256xbf16, #tpu.memory_space<vmem>>, vector<32x256xbf16>
    %cst_43 = arith.constant dense<0.000000e+00> : vector<16x256xf32>
    %114 = tpu.matmul %112, %113, %cst_43 {dimension_numbers = #tpu.dot_dimension_numbers<[1], [0], [0], [1], [0, 0, 1, 1], [], []>} : vector<16x32xbf16>, vector<32x256xbf16>, vector<16x256xf32> -> vector<16x256xf32>
    %c0_44 = arith.constant 0 : index
    %c0_45 = arith.constant 0 : index
    %115 = vector.load %arg12[%c0_44, %c0_45] : memref<1x256xf32, #tpu.memory_space<vmem>>, vector<1x256xf32>
    %116 = vector.broadcast %115 : vector<1x256xf32> to vector<16x256xf32>
    %117 = arith.addf %114, %116 : vector<16x256xf32>
    %118 = arith.truncf %117 : vector<16x256xf32> to vector<16x256xbf16>
    %119 = vector.extract_strided_slice %118 {offsets = [0, 0], sizes = [16, 128], strides = [1, 1]} : vector<16x256xbf16> to vector<16x128xbf16>
    %120 = vector.shape_cast %119 : vector<16x128xbf16> to vector<1x16x128xbf16>
    %121 = vector.extract_strided_slice %118 {offsets = [0, 128], sizes = [16, 128], strides = [1, 1]} : vector<16x256xbf16> to vector<16x128xbf16>
    %122 = vector.shape_cast %121 : vector<16x128xbf16> to vector<1x16x128xbf16>
    %123 = vector.extract_strided_slice %122 {offsets = [0, 0, 0], sizes = [1, 16, 32], strides = [1, 1, 1]} : vector<1x16x128xbf16> to vector<1x16x32xbf16>
    %124 = vector.extract_strided_slice %120 {offsets = [0, 0, 0], sizes = [1, 16, 32], strides = [1, 1, 1]} : vector<1x16x128xbf16> to vector<1x16x32xbf16>
    "tpu.trace_start"() <{level = 10 : i32, message = "bqd,bkd->bqk"}> : () -> ()
    %cst_46 = arith.constant dense<0.000000e+00> : vector<1x16x16xf32>
    %125 = tpu.matmul %123, %124, %cst_46 {dimension_numbers = #tpu.dot_dimension_numbers<[2], [2], [1], [1], [0, 0, 0, 1, 1, 1], [0], [0]>} : vector<1x16x32xbf16>, vector<1x16x32xbf16>, vector<1x16x16xf32> -> vector<1x16x16xf32>
    "tpu.trace_stop"() : () -> ()
    %126 = vector.broadcast %7 : vector<1x1x16xf32> to vector<1x16x16xf32>
    %127 = arith.addf %125, %126 : vector<1x16x16xf32>
    %cst_47 = arith.constant dense<0xFF800000> : vector<1x16xf32>
    %128 = vector.multi_reduction <maximumf>, %127, %cst_47 [2] : vector<1x16x16xf32> to vector<1x16xf32>
    %129 = vector.shape_cast %128 : vector<1x16xf32> to vector<1x16x1xf32>
    %130 = vector.broadcast %129 : vector<1x16x1xf32> to vector<1x16x16xf32>
    %131 = arith.subf %127, %130 : vector<1x16x16xf32>
    %132 = math.exp %131 : vector<1x16x16xf32>
    %cst_48 = arith.constant dense<0.000000e+00> : vector<1x16xf32>
    %133 = vector.multi_reduction <add>, %132, %cst_48 [2] : vector<1x16x16xf32> to vector<1x16xf32>
    %134 = vector.shape_cast %133 : vector<1x16xf32> to vector<1x16x1xf32>
    %135 = tpu.reciprocal %134 {approx = true} : vector<1x16x1xf32> -> vector<1x16x1xf32>
    %136 = vector.broadcast %135 : vector<1x16x1xf32> to vector<1x16x16xf32>
    %137 = arith.mulf %132, %136 : vector<1x16x16xf32>
    %138 = arith.truncf %137 : vector<1x16x16xf32> to vector<1x16x16xbf16>
    "tpu.trace_start"() <{level = 10 : i32, message = "bqk,bkd->bqd"}> : () -> ()
    %cst_49 = arith.constant dense<0.000000e+00> : vector<1x16x32xf32>
    %139 = tpu.matmul %138, %124, %cst_49 {dimension_numbers = #tpu.dot_dimension_numbers<[2], [1], [1], [2], [0, 0, 0, 1, 1, 2], [0], [0]>} : vector<1x16x16xbf16>, vector<1x16x32xbf16>, vector<1x16x32xf32> -> vector<1x16x32xf32>
    "tpu.trace_stop"() : () -> ()
    %140 = vector.extract_strided_slice %122 {offsets = [0, 0, 32], sizes = [1, 16, 32], strides = [1, 1, 1]} : vector<1x16x128xbf16> to vector<1x16x32xbf16>
    %141 = vector.extract_strided_slice %120 {offsets = [0, 0, 32], sizes = [1, 16, 32], strides = [1, 1, 1]} : vector<1x16x128xbf16> to vector<1x16x32xbf16>
    "tpu.trace_start"() <{level = 10 : i32, message = "bqd,bkd->bqk"}> : () -> ()
    %cst_50 = arith.constant dense<0.000000e+00> : vector<1x16x16xf32>
    %142 = tpu.matmul %140, %141, %cst_50 {dimension_numbers = #tpu.dot_dimension_numbers<[2], [2], [1], [1], [0, 0, 0, 1, 1, 1], [0], [0]>} : vector<1x16x32xbf16>, vector<1x16x32xbf16>, vector<1x16x16xf32> -> vector<1x16x16xf32>
    "tpu.trace_stop"() : () -> ()
    %143 = vector.broadcast %7 : vector<1x1x16xf32> to vector<1x16x16xf32>
    %144 = arith.addf %142, %143 : vector<1x16x16xf32>
    %cst_51 = arith.constant dense<0xFF800000> : vector<1x16xf32>
    %145 = vector.multi_reduction <maximumf>, %144, %cst_51 [2] : vector<1x16x16xf32> to vector<1x16xf32>
    %146 = vector.shape_cast %145 : vector<1x16xf32> to vector<1x16x1xf32>
    %147 = vector.broadcast %146 : vector<1x16x1xf32> to vector<1x16x16xf32>
    %148 = arith.subf %144, %147 : vector<1x16x16xf32>
    %149 = math.exp %148 : vector<1x16x16xf32>
    %cst_52 = arith.constant dense<0.000000e+00> : vector<1x16xf32>
    %150 = vector.multi_reduction <add>, %149, %cst_52 [2] : vector<1x16x16xf32> to vector<1x16xf32>
    %151 = vector.shape_cast %150 : vector<1x16xf32> to vector<1x16x1xf32>
    %152 = tpu.reciprocal %151 {approx = true} : vector<1x16x1xf32> -> vector<1x16x1xf32>
    %153 = vector.broadcast %152 : vector<1x16x1xf32> to vector<1x16x16xf32>
    %154 = arith.mulf %149, %153 : vector<1x16x16xf32>
    %155 = arith.truncf %154 : vector<1x16x16xf32> to vector<1x16x16xbf16>
    "tpu.trace_start"() <{level = 10 : i32, message = "bqk,bkd->bqd"}> : () -> ()
    %cst_53 = arith.constant dense<0.000000e+00> : vector<1x16x32xf32>
    %156 = tpu.matmul %155, %141, %cst_53 {dimension_numbers = #tpu.dot_dimension_numbers<[2], [1], [1], [2], [0, 0, 0, 1, 1, 2], [0], [0]>} : vector<1x16x16xbf16>, vector<1x16x32xbf16>, vector<1x16x32xf32> -> vector<1x16x32xf32>
    "tpu.trace_stop"() : () -> ()
    %157 = vector.extract_strided_slice %122 {offsets = [0, 0, 64], sizes = [1, 16, 32], strides = [1, 1, 1]} : vector<1x16x128xbf16> to vector<1x16x32xbf16>
    %158 = vector.extract_strided_slice %120 {offsets = [0, 0, 64], sizes = [1, 16, 32], strides = [1, 1, 1]} : vector<1x16x128xbf16> to vector<1x16x32xbf16>
    "tpu.trace_start"() <{level = 10 : i32, message = "bqd,bkd->bqk"}> : () -> ()
    %cst_54 = arith.constant dense<0.000000e+00> : vector<1x16x16xf32>
    %159 = tpu.matmul %157, %158, %cst_54 {dimension_numbers = #tpu.dot_dimension_numbers<[2], [2], [1], [1], [0, 0, 0, 1, 1, 1], [0], [0]>} : vector<1x16x32xbf16>, vector<1x16x32xbf16>, vector<1x16x16xf32> -> vector<1x16x16xf32>
    "tpu.trace_stop"() : () -> ()
    %160 = vector.broadcast %7 : vector<1x1x16xf32> to vector<1x16x16xf32>
    %161 = arith.addf %159, %160 : vector<1x16x16xf32>
    %cst_55 = arith.constant dense<0xFF800000> : vector<1x16xf32>
    %162 = vector.multi_reduction <maximumf>, %161, %cst_55 [2] : vector<1x16x16xf32> to vector<1x16xf32>
    %163 = vector.shape_cast %162 : vector<1x16xf32> to vector<1x16x1xf32>
    %164 = vector.broadcast %163 : vector<1x16x1xf32> to vector<1x16x16xf32>
    %165 = arith.subf %161, %164 : vector<1x16x16xf32>
    %166 = math.exp %165 : vector<1x16x16xf32>
    %cst_56 = arith.constant dense<0.000000e+00> : vector<1x16xf32>
    %167 = vector.multi_reduction <add>, %166, %cst_56 [2] : vector<1x16x16xf32> to vector<1x16xf32>
    %168 = vector.shape_cast %167 : vector<1x16xf32> to vector<1x16x1xf32>
    %169 = tpu.reciprocal %168 {approx = true} : vector<1x16x1xf32> -> vector<1x16x1xf32>
    %170 = vector.broadcast %169 : vector<1x16x1xf32> to vector<1x16x16xf32>
    %171 = arith.mulf %166, %170 : vector<1x16x16xf32>
    %172 = arith.truncf %171 : vector<1x16x16xf32> to vector<1x16x16xbf16>
    "tpu.trace_start"() <{level = 10 : i32, message = "bqk,bkd->bqd"}> : () -> ()
    %cst_57 = arith.constant dense<0.000000e+00> : vector<1x16x32xf32>
    %173 = tpu.matmul %172, %158, %cst_57 {dimension_numbers = #tpu.dot_dimension_numbers<[2], [1], [1], [2], [0, 0, 0, 1, 1, 2], [0], [0]>} : vector<1x16x16xbf16>, vector<1x16x32xbf16>, vector<1x16x32xf32> -> vector<1x16x32xf32>
    "tpu.trace_stop"() : () -> ()
    %174 = vector.extract_strided_slice %122 {offsets = [0, 0, 96], sizes = [1, 16, 32], strides = [1, 1, 1]} : vector<1x16x128xbf16> to vector<1x16x32xbf16>
    %175 = vector.extract_strided_slice %120 {offsets = [0, 0, 96], sizes = [1, 16, 32], strides = [1, 1, 1]} : vector<1x16x128xbf16> to vector<1x16x32xbf16>
    "tpu.trace_start"() <{level = 10 : i32, message = "bqd,bkd->bqk"}> : () -> ()
    %cst_58 = arith.constant dense<0.000000e+00> : vector<1x16x16xf32>
    %176 = tpu.matmul %174, %175, %cst_58 {dimension_numbers = #tpu.dot_dimension_numbers<[2], [2], [1], [1], [0, 0, 0, 1, 1, 1], [0], [0]>} : vector<1x16x32xbf16>, vector<1x16x32xbf16>, vector<1x16x16xf32> -> vector<1x16x16xf32>
    "tpu.trace_stop"() : () -> ()
    %177 = vector.broadcast %7 : vector<1x1x16xf32> to vector<1x16x16xf32>
    %178 = arith.addf %176, %177 : vector<1x16x16xf32>
    %cst_59 = arith.constant dense<0xFF800000> : vector<1x16xf32>
    %179 = vector.multi_reduction <maximumf>, %178, %cst_59 [2] : vector<1x16x16xf32> to vector<1x16xf32>
    %180 = vector.shape_cast %179 : vector<1x16xf32> to vector<1x16x1xf32>
    %181 = vector.broadcast %180 : vector<1x16x1xf32> to vector<1x16x16xf32>
    %182 = arith.subf %178, %181 : vector<1x16x16xf32>
    %183 = math.exp %182 : vector<1x16x16xf32>
    %cst_60 = arith.constant dense<0.000000e+00> : vector<1x16xf32>
    %184 = vector.multi_reduction <add>, %183, %cst_60 [2] : vector<1x16x16xf32> to vector<1x16xf32>
    %185 = vector.shape_cast %184 : vector<1x16xf32> to vector<1x16x1xf32>
    %186 = tpu.reciprocal %185 {approx = true} : vector<1x16x1xf32> -> vector<1x16x1xf32>
    %187 = vector.broadcast %186 : vector<1x16x1xf32> to vector<1x16x16xf32>
    %188 = arith.mulf %183, %187 : vector<1x16x16xf32>
    %189 = arith.truncf %188 : vector<1x16x16xf32> to vector<1x16x16xbf16>
    "tpu.trace_start"() <{level = 10 : i32, message = "bqk,bkd->bqd"}> : () -> ()
    %cst_61 = arith.constant dense<0.000000e+00> : vector<1x16x32xf32>
    %190 = tpu.matmul %189, %175, %cst_61 {dimension_numbers = #tpu.dot_dimension_numbers<[2], [1], [1], [2], [0, 0, 0, 1, 1, 2], [0], [0]>} : vector<1x16x16xbf16>, vector<1x16x32xbf16>, vector<1x16x32xf32> -> vector<1x16x32xf32>
    "tpu.trace_stop"() : () -> ()
    %191 = tpu.concatenate %139, %156, %173, %190 in 2 : vector<1x16x32xf32>, vector<1x16x32xf32>, vector<1x16x32xf32>, vector<1x16x32xf32> -> vector<1x16x128xf32>
    %192 = vector.shape_cast %191 : vector<1x16x128xf32> to vector<16x128xf32>
    %193 = arith.truncf %192 : vector<16x128xf32> to vector<16x128xbf16>
    %c0_62 = arith.constant 0 : index
    %c0_63 = arith.constant 0 : index
    %194 = vector.load %arg13[%c0_62, %c0_63] : memref<128x32xbf16, #tpu.memory_space<vmem>>, vector<128x32xbf16>
    %cst_64 = arith.constant dense<0.000000e+00> : vector<16x32xf32>
    %195 = tpu.matmul %193, %194, %cst_64 {dimension_numbers = #tpu.dot_dimension_numbers<[1], [0], [0], [1], [0, 0, 1, 1], [], []>} : vector<16x128xbf16>, vector<128x32xbf16>, vector<16x32xf32> -> vector<16x32xf32>
    %c0_65 = arith.constant 0 : index
    %c0_66 = arith.constant 0 : index
    %196 = vector.load %arg14[%c0_65, %c0_66] : memref<1x32xf32, #tpu.memory_space<vmem>>, vector<1x32xf32>
    %197 = vector.broadcast %196 : vector<1x32xf32> to vector<16x32xf32>
    %198 = arith.addf %195, %197 : vector<16x32xf32>
    %cst_67 = arith.constant 0.000000e+00 : f32
    %199 = vector.broadcast %cst_67 : f32 to vector<16x32xf32>
    %200 = arith.maximumf %198, %199 : vector<16x32xf32>
    %201 = arith.truncf %200 : vector<16x32xf32> to vector<16x32xbf16>
    %c0_68 = arith.constant 0 : index
    %c0_69 = arith.constant 0 : index
    %202 = vector.load %arg15[%c0_68, %c0_69] : memref<32x32xbf16, #tpu.memory_space<vmem>>, vector<32x32xbf16>
    %cst_70 = arith.constant dense<0.000000e+00> : vector<16x32xf32>
    %203 = tpu.matmul %201, %202, %cst_70 {dimension_numbers = #tpu.dot_dimension_numbers<[1], [0], [0], [1], [0, 0, 1, 1], [], []>} : vector<16x32xbf16>, vector<32x32xbf16>, vector<16x32xf32> -> vector<16x32xf32>
    %c0_71 = arith.constant 0 : index
    %c0_72 = arith.constant 0 : index
    %204 = vector.load %arg16[%c0_71, %c0_72] : memref<1x32xf32, #tpu.memory_space<vmem>>, vector<1x32xf32>
    %205 = vector.broadcast %204 : vector<1x32xf32> to vector<16x32xf32>
    %206 = arith.addf %203, %205 : vector<16x32xf32>
    %207 = arith.truncf %206 : vector<16x32xf32> to vector<16x32xbf16>
    %c0_73 = arith.constant 0 : index
    %c0_74 = arith.constant 0 : index
    %208 = vector.load %arg17[%c0_73, %c0_74] : memref<32x256xbf16, #tpu.memory_space<vmem>>, vector<32x256xbf16>
    %cst_75 = arith.constant dense<0.000000e+00> : vector<8x256xf32>
    %209 = tpu.matmul %17, %208, %cst_75 {dimension_numbers = #tpu.dot_dimension_numbers<[1], [0], [0], [1], [0, 0, 1, 1], [], []>} : vector<8x32xbf16>, vector<32x256xbf16>, vector<8x256xf32> -> vector<8x256xf32>
    %c0_76 = arith.constant 0 : index
    %c0_77 = arith.constant 0 : index
    %210 = vector.load %arg18[%c0_76, %c0_77] : memref<1x256xf32, #tpu.memory_space<vmem>>, vector<1x256xf32>
    %211 = vector.broadcast %210 : vector<1x256xf32> to vector<8x256xf32>
    %212 = arith.addf %209, %211 : vector<8x256xf32>
    %213 = arith.truncf %212 : vector<8x256xf32> to vector<8x256xbf16>
    %214 = vector.extract_strided_slice %213 {offsets = [0, 0], sizes = [8, 128], strides = [1, 1]} : vector<8x256xbf16> to vector<8x128xbf16>
    %215 = vector.shape_cast %214 : vector<8x128xbf16> to vector<1x8x128xbf16>
    %216 = vector.extract_strided_slice %213 {offsets = [0, 128], sizes = [8, 128], strides = [1, 1]} : vector<8x256xbf16> to vector<8x128xbf16>
    %217 = vector.shape_cast %216 : vector<8x128xbf16> to vector<1x8x128xbf16>
    %218 = vector.extract_strided_slice %217 {offsets = [0, 0, 0], sizes = [1, 8, 32], strides = [1, 1, 1]} : vector<1x8x128xbf16> to vector<1x8x32xbf16>
    %219 = vector.extract_strided_slice %215 {offsets = [0, 0, 0], sizes = [1, 8, 32], strides = [1, 1, 1]} : vector<1x8x128xbf16> to vector<1x8x32xbf16>
    "tpu.trace_start"() <{level = 10 : i32, message = "bqd,bkd->bqk"}> : () -> ()
    %cst_78 = arith.constant dense<0.000000e+00> : vector<1x8x8xf32>
    %220 = tpu.matmul %218, %219, %cst_78 {dimension_numbers = #tpu.dot_dimension_numbers<[2], [2], [1], [1], [0, 0, 0, 1, 1, 1], [0], [0]>} : vector<1x8x32xbf16>, vector<1x8x32xbf16>, vector<1x8x8xf32> -> vector<1x8x8xf32>
    "tpu.trace_stop"() : () -> ()
    %221 = vector.broadcast %13 : vector<1x1x8xf32> to vector<1x8x8xf32>
    %222 = arith.addf %220, %221 : vector<1x8x8xf32>
    %cst_79 = arith.constant dense<0xFF800000> : vector<1x8xf32>
    %223 = vector.multi_reduction <maximumf>, %222, %cst_79 [2] : vector<1x8x8xf32> to vector<1x8xf32>
    %224 = vector.shape_cast %223 : vector<1x8xf32> to vector<1x8x1xf32>
    %225 = vector.broadcast %224 : vector<1x8x1xf32> to vector<1x8x8xf32>
    %226 = arith.subf %222, %225 : vector<1x8x8xf32>
    %227 = math.exp %226 : vector<1x8x8xf32>
    %cst_80 = arith.constant dense<0.000000e+00> : vector<1x8xf32>
    %228 = vector.multi_reduction <add>, %227, %cst_80 [2] : vector<1x8x8xf32> to vector<1x8xf32>
    %229 = vector.shape_cast %228 : vector<1x8xf32> to vector<1x8x1xf32>
    %230 = tpu.reciprocal %229 {approx = true} : vector<1x8x1xf32> -> vector<1x8x1xf32>
    %231 = vector.broadcast %230 : vector<1x8x1xf32> to vector<1x8x8xf32>
    %232 = arith.mulf %227, %231 : vector<1x8x8xf32>
    %233 = arith.truncf %232 : vector<1x8x8xf32> to vector<1x8x8xbf16>
    "tpu.trace_start"() <{level = 10 : i32, message = "bqk,bkd->bqd"}> : () -> ()
    %cst_81 = arith.constant dense<0.000000e+00> : vector<1x8x32xf32>
    %234 = tpu.matmul %233, %219, %cst_81 {dimension_numbers = #tpu.dot_dimension_numbers<[2], [1], [1], [2], [0, 0, 0, 1, 1, 2], [0], [0]>} : vector<1x8x8xbf16>, vector<1x8x32xbf16>, vector<1x8x32xf32> -> vector<1x8x32xf32>
    "tpu.trace_stop"() : () -> ()
    %235 = vector.extract_strided_slice %217 {offsets = [0, 0, 32], sizes = [1, 8, 32], strides = [1, 1, 1]} : vector<1x8x128xbf16> to vector<1x8x32xbf16>
    %236 = vector.extract_strided_slice %215 {offsets = [0, 0, 32], sizes = [1, 8, 32], strides = [1, 1, 1]} : vector<1x8x128xbf16> to vector<1x8x32xbf16>
    "tpu.trace_start"() <{level = 10 : i32, message = "bqd,bkd->bqk"}> : () -> ()
    %cst_82 = arith.constant dense<0.000000e+00> : vector<1x8x8xf32>
    %237 = tpu.matmul %235, %236, %cst_82 {dimension_numbers = #tpu.dot_dimension_numbers<[2], [2], [1], [1], [0, 0, 0, 1, 1, 1], [0], [0]>} : vector<1x8x32xbf16>, vector<1x8x32xbf16>, vector<1x8x8xf32> -> vector<1x8x8xf32>
    "tpu.trace_stop"() : () -> ()
    %238 = vector.broadcast %13 : vector<1x1x8xf32> to vector<1x8x8xf32>
    %239 = arith.addf %237, %238 : vector<1x8x8xf32>
    %cst_83 = arith.constant dense<0xFF800000> : vector<1x8xf32>
    %240 = vector.multi_reduction <maximumf>, %239, %cst_83 [2] : vector<1x8x8xf32> to vector<1x8xf32>
    %241 = vector.shape_cast %240 : vector<1x8xf32> to vector<1x8x1xf32>
    %242 = vector.broadcast %241 : vector<1x8x1xf32> to vector<1x8x8xf32>
    %243 = arith.subf %239, %242 : vector<1x8x8xf32>
    %244 = math.exp %243 : vector<1x8x8xf32>
    %cst_84 = arith.constant dense<0.000000e+00> : vector<1x8xf32>
    %245 = vector.multi_reduction <add>, %244, %cst_84 [2] : vector<1x8x8xf32> to vector<1x8xf32>
    %246 = vector.shape_cast %245 : vector<1x8xf32> to vector<1x8x1xf32>
    %247 = tpu.reciprocal %246 {approx = true} : vector<1x8x1xf32> -> vector<1x8x1xf32>
    %248 = vector.broadcast %247 : vector<1x8x1xf32> to vector<1x8x8xf32>
    %249 = arith.mulf %244, %248 : vector<1x8x8xf32>
    %250 = arith.truncf %249 : vector<1x8x8xf32> to vector<1x8x8xbf16>
    "tpu.trace_start"() <{level = 10 : i32, message = "bqk,bkd->bqd"}> : () -> ()
    %cst_85 = arith.constant dense<0.000000e+00> : vector<1x8x32xf32>
    %251 = tpu.matmul %250, %236, %cst_85 {dimension_numbers = #tpu.dot_dimension_numbers<[2], [1], [1], [2], [0, 0, 0, 1, 1, 2], [0], [0]>} : vector<1x8x8xbf16>, vector<1x8x32xbf16>, vector<1x8x32xf32> -> vector<1x8x32xf32>
    "tpu.trace_stop"() : () -> ()
    %252 = vector.extract_strided_slice %217 {offsets = [0, 0, 64], sizes = [1, 8, 32], strides = [1, 1, 1]} : vector<1x8x128xbf16> to vector<1x8x32xbf16>
    %253 = vector.extract_strided_slice %215 {offsets = [0, 0, 64], sizes = [1, 8, 32], strides = [1, 1, 1]} : vector<1x8x128xbf16> to vector<1x8x32xbf16>
    "tpu.trace_start"() <{level = 10 : i32, message = "bqd,bkd->bqk"}> : () -> ()
    %cst_86 = arith.constant dense<0.000000e+00> : vector<1x8x8xf32>
    %254 = tpu.matmul %252, %253, %cst_86 {dimension_numbers = #tpu.dot_dimension_numbers<[2], [2], [1], [1], [0, 0, 0, 1, 1, 1], [0], [0]>} : vector<1x8x32xbf16>, vector<1x8x32xbf16>, vector<1x8x8xf32> -> vector<1x8x8xf32>
    "tpu.trace_stop"() : () -> ()
    %255 = vector.broadcast %13 : vector<1x1x8xf32> to vector<1x8x8xf32>
    %256 = arith.addf %254, %255 : vector<1x8x8xf32>
    %cst_87 = arith.constant dense<0xFF800000> : vector<1x8xf32>
    %257 = vector.multi_reduction <maximumf>, %256, %cst_87 [2] : vector<1x8x8xf32> to vector<1x8xf32>
    %258 = vector.shape_cast %257 : vector<1x8xf32> to vector<1x8x1xf32>
    %259 = vector.broadcast %258 : vector<1x8x1xf32> to vector<1x8x8xf32>
    %260 = arith.subf %256, %259 : vector<1x8x8xf32>
    %261 = math.exp %260 : vector<1x8x8xf32>
    %cst_88 = arith.constant dense<0.000000e+00> : vector<1x8xf32>
    %262 = vector.multi_reduction <add>, %261, %cst_88 [2] : vector<1x8x8xf32> to vector<1x8xf32>
    %263 = vector.shape_cast %262 : vector<1x8xf32> to vector<1x8x1xf32>
    %264 = tpu.reciprocal %263 {approx = true} : vector<1x8x1xf32> -> vector<1x8x1xf32>
    %265 = vector.broadcast %264 : vector<1x8x1xf32> to vector<1x8x8xf32>
    %266 = arith.mulf %261, %265 : vector<1x8x8xf32>
    %267 = arith.truncf %266 : vector<1x8x8xf32> to vector<1x8x8xbf16>
    "tpu.trace_start"() <{level = 10 : i32, message = "bqk,bkd->bqd"}> : () -> ()
    %cst_89 = arith.constant dense<0.000000e+00> : vector<1x8x32xf32>
    %268 = tpu.matmul %267, %253, %cst_89 {dimension_numbers = #tpu.dot_dimension_numbers<[2], [1], [1], [2], [0, 0, 0, 1, 1, 2], [0], [0]>} : vector<1x8x8xbf16>, vector<1x8x32xbf16>, vector<1x8x32xf32> -> vector<1x8x32xf32>
    "tpu.trace_stop"() : () -> ()
    %269 = vector.extract_strided_slice %217 {offsets = [0, 0, 96], sizes = [1, 8, 32], strides = [1, 1, 1]} : vector<1x8x128xbf16> to vector<1x8x32xbf16>
    %270 = vector.extract_strided_slice %215 {offsets = [0, 0, 96], sizes = [1, 8, 32], strides = [1, 1, 1]} : vector<1x8x128xbf16> to vector<1x8x32xbf16>
    "tpu.trace_start"() <{level = 10 : i32, message = "bqd,bkd->bqk"}> : () -> ()
    %cst_90 = arith.constant dense<0.000000e+00> : vector<1x8x8xf32>
    %271 = tpu.matmul %269, %270, %cst_90 {dimension_numbers = #tpu.dot_dimension_numbers<[2], [2], [1], [1], [0, 0, 0, 1, 1, 1], [0], [0]>} : vector<1x8x32xbf16>, vector<1x8x32xbf16>, vector<1x8x8xf32> -> vector<1x8x8xf32>
    "tpu.trace_stop"() : () -> ()
    %272 = vector.broadcast %13 : vector<1x1x8xf32> to vector<1x8x8xf32>
    %273 = arith.addf %271, %272 : vector<1x8x8xf32>
    %cst_91 = arith.constant dense<0xFF800000> : vector<1x8xf32>
    %274 = vector.multi_reduction <maximumf>, %273, %cst_91 [2] : vector<1x8x8xf32> to vector<1x8xf32>
    %275 = vector.shape_cast %274 : vector<1x8xf32> to vector<1x8x1xf32>
    %276 = vector.broadcast %275 : vector<1x8x1xf32> to vector<1x8x8xf32>
    %277 = arith.subf %273, %276 : vector<1x8x8xf32>
    %278 = math.exp %277 : vector<1x8x8xf32>
    %cst_92 = arith.constant dense<0.000000e+00> : vector<1x8xf32>
    %279 = vector.multi_reduction <add>, %278, %cst_92 [2] : vector<1x8x8xf32> to vector<1x8xf32>
    %280 = vector.shape_cast %279 : vector<1x8xf32> to vector<1x8x1xf32>
    %281 = tpu.reciprocal %280 {approx = true} : vector<1x8x1xf32> -> vector<1x8x1xf32>
    %282 = vector.broadcast %281 : vector<1x8x1xf32> to vector<1x8x8xf32>
    %283 = arith.mulf %278, %282 : vector<1x8x8xf32>
    %284 = arith.truncf %283 : vector<1x8x8xf32> to vector<1x8x8xbf16>
    "tpu.trace_start"() <{level = 10 : i32, message = "bqk,bkd->bqd"}> : () -> ()
    %cst_93 = arith.constant dense<0.000000e+00> : vector<1x8x32xf32>
    %285 = tpu.matmul %284, %270, %cst_93 {dimension_numbers = #tpu.dot_dimension_numbers<[2], [1], [1], [2], [0, 0, 0, 1, 1, 2], [0], [0]>} : vector<1x8x8xbf16>, vector<1x8x32xbf16>, vector<1x8x32xf32> -> vector<1x8x32xf32>
    "tpu.trace_stop"() : () -> ()
    %286 = tpu.concatenate %234, %251, %268, %285 in 2 : vector<1x8x32xf32>, vector<1x8x32xf32>, vector<1x8x32xf32>, vector<1x8x32xf32> -> vector<1x8x128xf32>
    %287 = vector.shape_cast %286 : vector<1x8x128xf32> to vector<8x128xf32>
    %288 = arith.truncf %287 : vector<8x128xf32> to vector<8x128xbf16>
    %c0_94 = arith.constant 0 : index
    %c0_95 = arith.constant 0 : index
    %289 = vector.load %arg19[%c0_94, %c0_95] : memref<128x32xbf16, #tpu.memory_space<vmem>>, vector<128x32xbf16>
    %cst_96 = arith.constant dense<0.000000e+00> : vector<8x32xf32>
    %290 = tpu.matmul %288, %289, %cst_96 {dimension_numbers = #tpu.dot_dimension_numbers<[1], [0], [0], [1], [0, 0, 1, 1], [], []>} : vector<8x128xbf16>, vector<128x32xbf16>, vector<8x32xf32> -> vector<8x32xf32>
    %c0_97 = arith.constant 0 : index
    %c0_98 = arith.constant 0 : index
    %291 = vector.load %arg20[%c0_97, %c0_98] : memref<1x32xf32, #tpu.memory_space<vmem>>, vector<1x32xf32>
    %292 = vector.broadcast %291 : vector<1x32xf32> to vector<8x32xf32>
    %293 = arith.addf %290, %292 : vector<8x32xf32>
    %cst_99 = arith.constant 0.000000e+00 : f32
    %294 = vector.broadcast %cst_99 : f32 to vector<8x32xf32>
    %295 = arith.maximumf %293, %294 : vector<8x32xf32>
    %296 = arith.truncf %295 : vector<8x32xf32> to vector<8x32xbf16>
    %c0_100 = arith.constant 0 : index
    %c0_101 = arith.constant 0 : index
    %297 = vector.load %arg21[%c0_100, %c0_101] : memref<32x32xbf16, #tpu.memory_space<vmem>>, vector<32x32xbf16>
    %cst_102 = arith.constant dense<0.000000e+00> : vector<8x32xf32>
    %298 = tpu.matmul %296, %297, %cst_102 {dimension_numbers = #tpu.dot_dimension_numbers<[1], [0], [0], [1], [0, 0, 1, 1], [], []>} : vector<8x32xbf16>, vector<32x32xbf16>, vector<8x32xf32> -> vector<8x32xf32>
    %c0_103 = arith.constant 0 : index
    %c0_104 = arith.constant 0 : index
    %299 = vector.load %arg22[%c0_103, %c0_104] : memref<1x32xf32, #tpu.memory_space<vmem>>, vector<1x32xf32>
    %300 = vector.broadcast %299 : vector<1x32xf32> to vector<8x32xf32>
    %301 = arith.addf %298, %300 : vector<8x32xf32>
    %302 = arith.truncf %301 : vector<8x32xf32> to vector<8x32xbf16>
    %c0_105 = arith.constant 0 : index
    %c0_106 = arith.constant 0 : index
    %303 = vector.load %arg23[%c0_105, %c0_106] : memref<32x256xbf16, #tpu.memory_space<vmem>>, vector<32x256xbf16>
    %cst_107 = arith.constant dense<0.000000e+00> : vector<8x256xf32>
    %304 = tpu.matmul %302, %303, %cst_107 {dimension_numbers = #tpu.dot_dimension_numbers<[1], [0], [0], [1], [0, 0, 1, 1], [], []>} : vector<8x32xbf16>, vector<32x256xbf16>, vector<8x256xf32> -> vector<8x256xf32>
    %c0_108 = arith.constant 0 : index
    %c0_109 = arith.constant 0 : index
    %305 = vector.load %arg24[%c0_108, %c0_109] : memref<1x256xf32, #tpu.memory_space<vmem>>, vector<1x256xf32>
    %306 = vector.broadcast %305 : vector<1x256xf32> to vector<8x256xf32>
    %307 = arith.addf %304, %306 : vector<8x256xf32>
    %308 = arith.truncf %307 : vector<8x256xf32> to vector<8x256xbf16>
    %309 = vector.extract_strided_slice %308 {offsets = [0, 0], sizes = [8, 128], strides = [1, 1]} : vector<8x256xbf16> to vector<8x128xbf16>
    %310 = vector.shape_cast %309 : vector<8x128xbf16> to vector<1x8x128xbf16>
    %311 = vector.extract_strided_slice %308 {offsets = [0, 128], sizes = [8, 128], strides = [1, 1]} : vector<8x256xbf16> to vector<8x128xbf16>
    %312 = vector.shape_cast %311 : vector<8x128xbf16> to vector<1x8x128xbf16>
    %313 = vector.extract_strided_slice %312 {offsets = [0, 0, 0], sizes = [1, 8, 32], strides = [1, 1, 1]} : vector<1x8x128xbf16> to vector<1x8x32xbf16>
    %314 = vector.extract_strided_slice %310 {offsets = [0, 0, 0], sizes = [1, 8, 32], strides = [1, 1, 1]} : vector<1x8x128xbf16> to vector<1x8x32xbf16>
    "tpu.trace_start"() <{level = 10 : i32, message = "bqd,bkd->bqk"}> : () -> ()
    %cst_110 = arith.constant dense<0.000000e+00> : vector<1x8x8xf32>
    %315 = tpu.matmul %313, %314, %cst_110 {dimension_numbers = #tpu.dot_dimension_numbers<[2], [2], [1], [1], [0, 0, 0, 1, 1, 1], [0], [0]>} : vector<1x8x32xbf16>, vector<1x8x32xbf16>, vector<1x8x8xf32> -> vector<1x8x8xf32>
    "tpu.trace_stop"() : () -> ()
    %316 = vector.broadcast %13 : vector<1x1x8xf32> to vector<1x8x8xf32>
    %317 = arith.addf %315, %316 : vector<1x8x8xf32>
    %cst_111 = arith.constant dense<0xFF800000> : vector<1x8xf32>
    %318 = vector.multi_reduction <maximumf>, %317, %cst_111 [2] : vector<1x8x8xf32> to vector<1x8xf32>
    %319 = vector.shape_cast %318 : vector<1x8xf32> to vector<1x8x1xf32>
    %320 = vector.broadcast %319 : vector<1x8x1xf32> to vector<1x8x8xf32>
    %321 = arith.subf %317, %320 : vector<1x8x8xf32>
    %322 = math.exp %321 : vector<1x8x8xf32>
    %cst_112 = arith.constant dense<0.000000e+00> : vector<1x8xf32>
    %323 = vector.multi_reduction <add>, %322, %cst_112 [2] : vector<1x8x8xf32> to vector<1x8xf32>
    %324 = vector.shape_cast %323 : vector<1x8xf32> to vector<1x8x1xf32>
    %325 = tpu.reciprocal %324 {approx = true} : vector<1x8x1xf32> -> vector<1x8x1xf32>
    %326 = vector.broadcast %325 : vector<1x8x1xf32> to vector<1x8x8xf32>
    %327 = arith.mulf %322, %326 : vector<1x8x8xf32>
    %328 = arith.truncf %327 : vector<1x8x8xf32> to vector<1x8x8xbf16>
    "tpu.trace_start"() <{level = 10 : i32, message = "bqk,bkd->bqd"}> : () -> ()
    %cst_113 = arith.constant dense<0.000000e+00> : vector<1x8x32xf32>
    %329 = tpu.matmul %328, %314, %cst_113 {dimension_numbers = #tpu.dot_dimension_numbers<[2], [1], [1], [2], [0, 0, 0, 1, 1, 2], [0], [0]>} : vector<1x8x8xbf16>, vector<1x8x32xbf16>, vector<1x8x32xf32> -> vector<1x8x32xf32>
    "tpu.trace_stop"() : () -> ()
    %330 = vector.extract_strided_slice %312 {offsets = [0, 0, 32], sizes = [1, 8, 32], strides = [1, 1, 1]} : vector<1x8x128xbf16> to vector<1x8x32xbf16>
    %331 = vector.extract_strided_slice %310 {offsets = [0, 0, 32], sizes = [1, 8, 32], strides = [1, 1, 1]} : vector<1x8x128xbf16> to vector<1x8x32xbf16>
    "tpu.trace_start"() <{level = 10 : i32, message = "bqd,bkd->bqk"}> : () -> ()
    %cst_114 = arith.constant dense<0.000000e+00> : vector<1x8x8xf32>
    %332 = tpu.matmul %330, %331, %cst_114 {dimension_numbers = #tpu.dot_dimension_numbers<[2], [2], [1], [1], [0, 0, 0, 1, 1, 1], [0], [0]>} : vector<1x8x32xbf16>, vector<1x8x32xbf16>, vector<1x8x8xf32> -> vector<1x8x8xf32>
    "tpu.trace_stop"() : () -> ()
    %333 = vector.broadcast %13 : vector<1x1x8xf32> to vector<1x8x8xf32>
    %334 = arith.addf %332, %333 : vector<1x8x8xf32>
    %cst_115 = arith.constant dense<0xFF800000> : vector<1x8xf32>
    %335 = vector.multi_reduction <maximumf>, %334, %cst_115 [2] : vector<1x8x8xf32> to vector<1x8xf32>
    %336 = vector.shape_cast %335 : vector<1x8xf32> to vector<1x8x1xf32>
    %337 = vector.broadcast %336 : vector<1x8x1xf32> to vector<1x8x8xf32>
    %338 = arith.subf %334, %337 : vector<1x8x8xf32>
    %339 = math.exp %338 : vector<1x8x8xf32>
    %cst_116 = arith.constant dense<0.000000e+00> : vector<1x8xf32>
    %340 = vector.multi_reduction <add>, %339, %cst_116 [2] : vector<1x8x8xf32> to vector<1x8xf32>
    %341 = vector.shape_cast %340 : vector<1x8xf32> to vector<1x8x1xf32>
    %342 = tpu.reciprocal %341 {approx = true} : vector<1x8x1xf32> -> vector<1x8x1xf32>
    %343 = vector.broadcast %342 : vector<1x8x1xf32> to vector<1x8x8xf32>
    %344 = arith.mulf %339, %343 : vector<1x8x8xf32>
    %345 = arith.truncf %344 : vector<1x8x8xf32> to vector<1x8x8xbf16>
    "tpu.trace_start"() <{level = 10 : i32, message = "bqk,bkd->bqd"}> : () -> ()
    %cst_117 = arith.constant dense<0.000000e+00> : vector<1x8x32xf32>
    %346 = tpu.matmul %345, %331, %cst_117 {dimension_numbers = #tpu.dot_dimension_numbers<[2], [1], [1], [2], [0, 0, 0, 1, 1, 2], [0], [0]>} : vector<1x8x8xbf16>, vector<1x8x32xbf16>, vector<1x8x32xf32> -> vector<1x8x32xf32>
    "tpu.trace_stop"() : () -> ()
    %347 = vector.extract_strided_slice %312 {offsets = [0, 0, 64], sizes = [1, 8, 32], strides = [1, 1, 1]} : vector<1x8x128xbf16> to vector<1x8x32xbf16>
    %348 = vector.extract_strided_slice %310 {offsets = [0, 0, 64], sizes = [1, 8, 32], strides = [1, 1, 1]} : vector<1x8x128xbf16> to vector<1x8x32xbf16>
    "tpu.trace_start"() <{level = 10 : i32, message = "bqd,bkd->bqk"}> : () -> ()
    %cst_118 = arith.constant dense<0.000000e+00> : vector<1x8x8xf32>
    %349 = tpu.matmul %347, %348, %cst_118 {dimension_numbers = #tpu.dot_dimension_numbers<[2], [2], [1], [1], [0, 0, 0, 1, 1, 1], [0], [0]>} : vector<1x8x32xbf16>, vector<1x8x32xbf16>, vector<1x8x8xf32> -> vector<1x8x8xf32>
    "tpu.trace_stop"() : () -> ()
    %350 = vector.broadcast %13 : vector<1x1x8xf32> to vector<1x8x8xf32>
    %351 = arith.addf %349, %350 : vector<1x8x8xf32>
    %cst_119 = arith.constant dense<0xFF800000> : vector<1x8xf32>
    %352 = vector.multi_reduction <maximumf>, %351, %cst_119 [2] : vector<1x8x8xf32> to vector<1x8xf32>
    %353 = vector.shape_cast %352 : vector<1x8xf32> to vector<1x8x1xf32>
    %354 = vector.broadcast %353 : vector<1x8x1xf32> to vector<1x8x8xf32>
    %355 = arith.subf %351, %354 : vector<1x8x8xf32>
    %356 = math.exp %355 : vector<1x8x8xf32>
    %cst_120 = arith.constant dense<0.000000e+00> : vector<1x8xf32>
    %357 = vector.multi_reduction <add>, %356, %cst_120 [2] : vector<1x8x8xf32> to vector<1x8xf32>
    %358 = vector.shape_cast %357 : vector<1x8xf32> to vector<1x8x1xf32>
    %359 = tpu.reciprocal %358 {approx = true} : vector<1x8x1xf32> -> vector<1x8x1xf32>
    %360 = vector.broadcast %359 : vector<1x8x1xf32> to vector<1x8x8xf32>
    %361 = arith.mulf %356, %360 : vector<1x8x8xf32>
    %362 = arith.truncf %361 : vector<1x8x8xf32> to vector<1x8x8xbf16>
    "tpu.trace_start"() <{level = 10 : i32, message = "bqk,bkd->bqd"}> : () -> ()
    %cst_121 = arith.constant dense<0.000000e+00> : vector<1x8x32xf32>
    %363 = tpu.matmul %362, %348, %cst_121 {dimension_numbers = #tpu.dot_dimension_numbers<[2], [1], [1], [2], [0, 0, 0, 1, 1, 2], [0], [0]>} : vector<1x8x8xbf16>, vector<1x8x32xbf16>, vector<1x8x32xf32> -> vector<1x8x32xf32>
    "tpu.trace_stop"() : () -> ()
    %364 = vector.extract_strided_slice %312 {offsets = [0, 0, 96], sizes = [1, 8, 32], strides = [1, 1, 1]} : vector<1x8x128xbf16> to vector<1x8x32xbf16>
    %365 = vector.extract_strided_slice %310 {offsets = [0, 0, 96], sizes = [1, 8, 32], strides = [1, 1, 1]} : vector<1x8x128xbf16> to vector<1x8x32xbf16>
    "tpu.trace_start"() <{level = 10 : i32, message = "bqd,bkd->bqk"}> : () -> ()
    %cst_122 = arith.constant dense<0.000000e+00> : vector<1x8x8xf32>
    %366 = tpu.matmul %364, %365, %cst_122 {dimension_numbers = #tpu.dot_dimension_numbers<[2], [2], [1], [1], [0, 0, 0, 1, 1, 1], [0], [0]>} : vector<1x8x32xbf16>, vector<1x8x32xbf16>, vector<1x8x8xf32> -> vector<1x8x8xf32>
    "tpu.trace_stop"() : () -> ()
    %367 = vector.broadcast %13 : vector<1x1x8xf32> to vector<1x8x8xf32>
    %368 = arith.addf %366, %367 : vector<1x8x8xf32>
    %cst_123 = arith.constant dense<0xFF800000> : vector<1x8xf32>
    %369 = vector.multi_reduction <maximumf>, %368, %cst_123 [2] : vector<1x8x8xf32> to vector<1x8xf32>
    %370 = vector.shape_cast %369 : vector<1x8xf32> to vector<1x8x1xf32>
    %371 = vector.broadcast %370 : vector<1x8x1xf32> to vector<1x8x8xf32>
    %372 = arith.subf %368, %371 : vector<1x8x8xf32>
    %373 = math.exp %372 : vector<1x8x8xf32>
    %cst_124 = arith.constant dense<0.000000e+00> : vector<1x8xf32>
    %374 = vector.multi_reduction <add>, %373, %cst_124 [2] : vector<1x8x8xf32> to vector<1x8xf32>
    %375 = vector.shape_cast %374 : vector<1x8xf32> to vector<1x8x1xf32>
    %376 = tpu.reciprocal %375 {approx = true} : vector<1x8x1xf32> -> vector<1x8x1xf32>
    %377 = vector.broadcast %376 : vector<1x8x1xf32> to vector<1x8x8xf32>
    %378 = arith.mulf %373, %377 : vector<1x8x8xf32>
    %379 = arith.truncf %378 : vector<1x8x8xf32> to vector<1x8x8xbf16>
    "tpu.trace_start"() <{level = 10 : i32, message = "bqk,bkd->bqd"}> : () -> ()
    %cst_125 = arith.constant dense<0.000000e+00> : vector<1x8x32xf32>
    %380 = tpu.matmul %379, %365, %cst_125 {dimension_numbers = #tpu.dot_dimension_numbers<[2], [1], [1], [2], [0, 0, 0, 1, 1, 2], [0], [0]>} : vector<1x8x8xbf16>, vector<1x8x32xbf16>, vector<1x8x32xf32> -> vector<1x8x32xf32>
    "tpu.trace_stop"() : () -> ()
    %381 = tpu.concatenate %329, %346, %363, %380 in 2 : vector<1x8x32xf32>, vector<1x8x32xf32>, vector<1x8x32xf32>, vector<1x8x32xf32> -> vector<1x8x128xf32>
    %382 = vector.shape_cast %381 : vector<1x8x128xf32> to vector<8x128xf32>
    %383 = arith.truncf %382 : vector<8x128xf32> to vector<8x128xbf16>
    %c0_126 = arith.constant 0 : index
    %c0_127 = arith.constant 0 : index
    %384 = vector.load %arg25[%c0_126, %c0_127] : memref<128x32xbf16, #tpu.memory_space<vmem>>, vector<128x32xbf16>
    %cst_128 = arith.constant dense<0.000000e+00> : vector<8x32xf32>
    %385 = tpu.matmul %383, %384, %cst_128 {dimension_numbers = #tpu.dot_dimension_numbers<[1], [0], [0], [1], [0, 0, 1, 1], [], []>} : vector<8x128xbf16>, vector<128x32xbf16>, vector<8x32xf32> -> vector<8x32xf32>
    %c0_129 = arith.constant 0 : index
    %c0_130 = arith.constant 0 : index
    %386 = vector.load %arg26[%c0_129, %c0_130] : memref<1x32xf32, #tpu.memory_space<vmem>>, vector<1x32xf32>
    %387 = vector.broadcast %386 : vector<1x32xf32> to vector<8x32xf32>
    %388 = arith.addf %385, %387 : vector<8x32xf32>
    %cst_131 = arith.constant 0.000000e+00 : f32
    %389 = vector.broadcast %cst_131 : f32 to vector<8x32xf32>
    %390 = arith.maximumf %388, %389 : vector<8x32xf32>
    %391 = arith.truncf %390 : vector<8x32xf32> to vector<8x32xbf16>
    %c0_132 = arith.constant 0 : index
    %c0_133 = arith.constant 0 : index
    %392 = vector.load %arg27[%c0_132, %c0_133] : memref<32x32xbf16, #tpu.memory_space<vmem>>, vector<32x32xbf16>
    %cst_134 = arith.constant dense<0.000000e+00> : vector<8x32xf32>
    %393 = tpu.matmul %391, %392, %cst_134 {dimension_numbers = #tpu.dot_dimension_numbers<[1], [0], [0], [1], [0, 0, 1, 1], [], []>} : vector<8x32xbf16>, vector<32x32xbf16>, vector<8x32xf32> -> vector<8x32xf32>
    %c0_135 = arith.constant 0 : index
    %c0_136 = arith.constant 0 : index
    %394 = vector.load %arg28[%c0_135, %c0_136] : memref<1x32xf32, #tpu.memory_space<vmem>>, vector<1x32xf32>
    %395 = vector.broadcast %394 : vector<1x32xf32> to vector<8x32xf32>
    %396 = arith.addf %393, %395 : vector<8x32xf32>
    %397 = arith.truncf %396 : vector<8x32xf32> to vector<8x32xbf16>
    %c0_137 = arith.constant 0 : index
    %c0_138 = arith.constant 0 : index
    %398 = vector.load %arg29[%c0_137, %c0_138] : memref<32x32xbf16, #tpu.memory_space<vmem>>, vector<32x32xbf16>
    %cst_139 = arith.constant dense<0.000000e+00> : vector<16x32xf32>
    %399 = tpu.matmul %207, %398, %cst_139 {dimension_numbers = #tpu.dot_dimension_numbers<[1], [0], [0], [1], [0, 0, 1, 1], [], []>} : vector<16x32xbf16>, vector<32x32xbf16>, vector<16x32xf32> -> vector<16x32xf32>
    %c0_140 = arith.constant 0 : index
    %c0_141 = arith.constant 0 : index
    %400 = vector.load %arg30[%c0_140, %c0_141] : memref<1x32xf32, #tpu.memory_space<vmem>>, vector<1x32xf32>
    %401 = vector.broadcast %400 : vector<1x32xf32> to vector<16x32xf32>
    %402 = arith.addf %399, %401 : vector<16x32xf32>
    %403 = arith.truncf %402 : vector<16x32xf32> to vector<16x32xbf16>
    %404 = vector.shape_cast %403 : vector<16x32xbf16> to vector<1x16x32xbf16>
    %c0_142 = arith.constant 0 : index
    %c0_143 = arith.constant 0 : index
    %405 = vector.load %arg31[%c0_142, %c0_143] : memref<32x32xbf16, #tpu.memory_space<vmem>>, vector<32x32xbf16>
    %cst_144 = arith.constant dense<0.000000e+00> : vector<8x32xf32>
    %406 = tpu.matmul %397, %405, %cst_144 {dimension_numbers = #tpu.dot_dimension_numbers<[1], [0], [0], [1], [0, 0, 1, 1], [], []>} : vector<8x32xbf16>, vector<32x32xbf16>, vector<8x32xf32> -> vector<8x32xf32>
    %c0_145 = arith.constant 0 : index
    %c0_146 = arith.constant 0 : index
    %407 = vector.load %arg32[%c0_145, %c0_146] : memref<1x32xf32, #tpu.memory_space<vmem>>, vector<1x32xf32>
    %408 = vector.broadcast %407 : vector<1x32xf32> to vector<8x32xf32>
    %409 = arith.addf %406, %408 : vector<8x32xf32>
    %410 = arith.truncf %409 : vector<8x32xf32> to vector<8x32xbf16>
    %411 = vector.shape_cast %410 : vector<8x32xbf16> to vector<1x8x32xbf16>
    %412 = vector.extract_strided_slice %411 {offsets = [0, 0, 0], sizes = [1, 8, 8], strides = [1, 1, 1]} : vector<1x8x32xbf16> to vector<1x8x8xbf16>
    %413 = vector.extract_strided_slice %404 {offsets = [0, 0, 0], sizes = [1, 16, 8], strides = [1, 1, 1]} : vector<1x16x32xbf16> to vector<1x16x8xbf16>
    "tpu.trace_start"() <{level = 10 : i32, message = "bqd,bkd->bqk"}> : () -> ()
    %cst_147 = arith.constant dense<0.000000e+00> : vector<1x8x16xf32>
    %414 = tpu.matmul %412, %413, %cst_147 {dimension_numbers = #tpu.dot_dimension_numbers<[2], [2], [1], [1], [0, 0, 0, 1, 1, 1], [0], [0]>} : vector<1x8x8xbf16>, vector<1x16x8xbf16>, vector<1x8x16xf32> -> vector<1x8x16xf32>
    "tpu.trace_stop"() : () -> ()
    %415 = vector.broadcast %7 : vector<1x1x16xf32> to vector<1x8x16xf32>
    %416 = arith.addf %414, %415 : vector<1x8x16xf32>
    %cst_148 = arith.constant dense<0xFF800000> : vector<1x8xf32>
    %417 = vector.multi_reduction <maximumf>, %416, %cst_148 [2] : vector<1x8x16xf32> to vector<1x8xf32>
    %418 = vector.shape_cast %417 : vector<1x8xf32> to vector<1x8x1xf32>
    %419 = vector.broadcast %418 : vector<1x8x1xf32> to vector<1x8x16xf32>
    %420 = arith.subf %416, %419 : vector<1x8x16xf32>
    %421 = math.exp %420 : vector<1x8x16xf32>
    %cst_149 = arith.constant dense<0.000000e+00> : vector<1x8xf32>
    %422 = vector.multi_reduction <add>, %421, %cst_149 [2] : vector<1x8x16xf32> to vector<1x8xf32>
    %423 = vector.shape_cast %422 : vector<1x8xf32> to vector<1x8x1xf32>
    %424 = tpu.reciprocal %423 {approx = true} : vector<1x8x1xf32> -> vector<1x8x1xf32>
    %425 = vector.broadcast %424 : vector<1x8x1xf32> to vector<1x8x16xf32>
    %426 = arith.mulf %421, %425 : vector<1x8x16xf32>
    %427 = arith.truncf %426 : vector<1x8x16xf32> to vector<1x8x16xbf16>
    "tpu.trace_start"() <{level = 10 : i32, message = "bqk,bkd->bqd"}> : () -> ()
    %cst_150 = arith.constant dense<0.000000e+00> : vector<1x8x8xf32>
    %428 = tpu.matmul %427, %413, %cst_150 {dimension_numbers = #tpu.dot_dimension_numbers<[2], [1], [1], [2], [0, 0, 0, 1, 1, 2], [0], [0]>} : vector<1x8x16xbf16>, vector<1x16x8xbf16>, vector<1x8x8xf32> -> vector<1x8x8xf32>
    "tpu.trace_stop"() : () -> ()
    %429 = vector.extract_strided_slice %411 {offsets = [0, 0, 8], sizes = [1, 8, 8], strides = [1, 1, 1]} : vector<1x8x32xbf16> to vector<1x8x8xbf16>
    %430 = vector.extract_strided_slice %404 {offsets = [0, 0, 8], sizes = [1, 16, 8], strides = [1, 1, 1]} : vector<1x16x32xbf16> to vector<1x16x8xbf16>
    "tpu.trace_start"() <{level = 10 : i32, message = "bqd,bkd->bqk"}> : () -> ()
    %cst_151 = arith.constant dense<0.000000e+00> : vector<1x8x16xf32>
    %431 = tpu.matmul %429, %430, %cst_151 {dimension_numbers = #tpu.dot_dimension_numbers<[2], [2], [1], [1], [0, 0, 0, 1, 1, 1], [0], [0]>} : vector<1x8x8xbf16>, vector<1x16x8xbf16>, vector<1x8x16xf32> -> vector<1x8x16xf32>
    "tpu.trace_stop"() : () -> ()
    %432 = vector.broadcast %7 : vector<1x1x16xf32> to vector<1x8x16xf32>
    %433 = arith.addf %431, %432 : vector<1x8x16xf32>
    %cst_152 = arith.constant dense<0xFF800000> : vector<1x8xf32>
    %434 = vector.multi_reduction <maximumf>, %433, %cst_152 [2] : vector<1x8x16xf32> to vector<1x8xf32>
    %435 = vector.shape_cast %434 : vector<1x8xf32> to vector<1x8x1xf32>
    %436 = vector.broadcast %435 : vector<1x8x1xf32> to vector<1x8x16xf32>
    %437 = arith.subf %433, %436 : vector<1x8x16xf32>
    %438 = math.exp %437 : vector<1x8x16xf32>
    %cst_153 = arith.constant dense<0.000000e+00> : vector<1x8xf32>
    %439 = vector.multi_reduction <add>, %438, %cst_153 [2] : vector<1x8x16xf32> to vector<1x8xf32>
    %440 = vector.shape_cast %439 : vector<1x8xf32> to vector<1x8x1xf32>
    %441 = tpu.reciprocal %440 {approx = true} : vector<1x8x1xf32> -> vector<1x8x1xf32>
    %442 = vector.broadcast %441 : vector<1x8x1xf32> to vector<1x8x16xf32>
    %443 = arith.mulf %438, %442 : vector<1x8x16xf32>
    %444 = arith.truncf %443 : vector<1x8x16xf32> to vector<1x8x16xbf16>
    "tpu.trace_start"() <{level = 10 : i32, message = "bqk,bkd->bqd"}> : () -> ()
    %cst_154 = arith.constant dense<0.000000e+00> : vector<1x8x8xf32>
    %445 = tpu.matmul %444, %430, %cst_154 {dimension_numbers = #tpu.dot_dimension_numbers<[2], [1], [1], [2], [0, 0, 0, 1, 1, 2], [0], [0]>} : vector<1x8x16xbf16>, vector<1x16x8xbf16>, vector<1x8x8xf32> -> vector<1x8x8xf32>
    "tpu.trace_stop"() : () -> ()
    %446 = vector.extract_strided_slice %411 {offsets = [0, 0, 16], sizes = [1, 8, 8], strides = [1, 1, 1]} : vector<1x8x32xbf16> to vector<1x8x8xbf16>
    %447 = vector.extract_strided_slice %404 {offsets = [0, 0, 16], sizes = [1, 16, 8], strides = [1, 1, 1]} : vector<1x16x32xbf16> to vector<1x16x8xbf16>
    "tpu.trace_start"() <{level = 10 : i32, message = "bqd,bkd->bqk"}> : () -> ()
    %cst_155 = arith.constant dense<0.000000e+00> : vector<1x8x16xf32>
    %448 = tpu.matmul %446, %447, %cst_155 {dimension_numbers = #tpu.dot_dimension_numbers<[2], [2], [1], [1], [0, 0, 0, 1, 1, 1], [0], [0]>} : vector<1x8x8xbf16>, vector<1x16x8xbf16>, vector<1x8x16xf32> -> vector<1x8x16xf32>
    "tpu.trace_stop"() : () -> ()
    %449 = vector.broadcast %7 : vector<1x1x16xf32> to vector<1x8x16xf32>
    %450 = arith.addf %448, %449 : vector<1x8x16xf32>
    %cst_156 = arith.constant dense<0xFF800000> : vector<1x8xf32>
    %451 = vector.multi_reduction <maximumf>, %450, %cst_156 [2] : vector<1x8x16xf32> to vector<1x8xf32>
    %452 = vector.shape_cast %451 : vector<1x8xf32> to vector<1x8x1xf32>
    %453 = vector.broadcast %452 : vector<1x8x1xf32> to vector<1x8x16xf32>
    %454 = arith.subf %450, %453 : vector<1x8x16xf32>
    %455 = math.exp %454 : vector<1x8x16xf32>
    %cst_157 = arith.constant dense<0.000000e+00> : vector<1x8xf32>
    %456 = vector.multi_reduction <add>, %455, %cst_157 [2] : vector<1x8x16xf32> to vector<1x8xf32>
    %457 = vector.shape_cast %456 : vector<1x8xf32> to vector<1x8x1xf32>
    %458 = tpu.reciprocal %457 {approx = true} : vector<1x8x1xf32> -> vector<1x8x1xf32>
    %459 = vector.broadcast %458 : vector<1x8x1xf32> to vector<1x8x16xf32>
    %460 = arith.mulf %455, %459 : vector<1x8x16xf32>
    %461 = arith.truncf %460 : vector<1x8x16xf32> to vector<1x8x16xbf16>
    "tpu.trace_start"() <{level = 10 : i32, message = "bqk,bkd->bqd"}> : () -> ()
    %cst_158 = arith.constant dense<0.000000e+00> : vector<1x8x8xf32>
    %462 = tpu.matmul %461, %447, %cst_158 {dimension_numbers = #tpu.dot_dimension_numbers<[2], [1], [1], [2], [0, 0, 0, 1, 1, 2], [0], [0]>} : vector<1x8x16xbf16>, vector<1x16x8xbf16>, vector<1x8x8xf32> -> vector<1x8x8xf32>
    "tpu.trace_stop"() : () -> ()
    %463 = vector.extract_strided_slice %411 {offsets = [0, 0, 24], sizes = [1, 8, 8], strides = [1, 1, 1]} : vector<1x8x32xbf16> to vector<1x8x8xbf16>
    %464 = vector.extract_strided_slice %404 {offsets = [0, 0, 24], sizes = [1, 16, 8], strides = [1, 1, 1]} : vector<1x16x32xbf16> to vector<1x16x8xbf16>
    "tpu.trace_start"() <{level = 10 : i32, message = "bqd,bkd->bqk"}> : () -> ()
    %cst_159 = arith.constant dense<0.000000e+00> : vector<1x8x16xf32>
    %465 = tpu.matmul %463, %464, %cst_159 {dimension_numbers = #tpu.dot_dimension_numbers<[2], [2], [1], [1], [0, 0, 0, 1, 1, 1], [0], [0]>} : vector<1x8x8xbf16>, vector<1x16x8xbf16>, vector<1x8x16xf32> -> vector<1x8x16xf32>
    "tpu.trace_stop"() : () -> ()
    %466 = vector.broadcast %7 : vector<1x1x16xf32> to vector<1x8x16xf32>
    %467 = arith.addf %465, %466 : vector<1x8x16xf32>
    %cst_160 = arith.constant dense<0xFF800000> : vector<1x8xf32>
    %468 = vector.multi_reduction <maximumf>, %467, %cst_160 [2] : vector<1x8x16xf32> to vector<1x8xf32>
    %469 = vector.shape_cast %468 : vector<1x8xf32> to vector<1x8x1xf32>
    %470 = vector.broadcast %469 : vector<1x8x1xf32> to vector<1x8x16xf32>
    %471 = arith.subf %467, %470 : vector<1x8x16xf32>
    %472 = math.exp %471 : vector<1x8x16xf32>
    %cst_161 = arith.constant dense<0.000000e+00> : vector<1x8xf32>
    %473 = vector.multi_reduction <add>, %472, %cst_161 [2] : vector<1x8x16xf32> to vector<1x8xf32>
    %474 = vector.shape_cast %473 : vector<1x8xf32> to vector<1x8x1xf32>
    %475 = tpu.reciprocal %474 {approx = true} : vector<1x8x1xf32> -> vector<1x8x1xf32>
    %476 = vector.broadcast %475 : vector<1x8x1xf32> to vector<1x8x16xf32>
    %477 = arith.mulf %472, %476 : vector<1x8x16xf32>
    %478 = arith.truncf %477 : vector<1x8x16xf32> to vector<1x8x16xbf16>
    "tpu.trace_start"() <{level = 10 : i32, message = "bqk,bkd->bqd"}> : () -> ()
    %cst_162 = arith.constant dense<0.000000e+00> : vector<1x8x8xf32>
    %479 = tpu.matmul %478, %464, %cst_162 {dimension_numbers = #tpu.dot_dimension_numbers<[2], [1], [1], [2], [0, 0, 0, 1, 1, 2], [0], [0]>} : vector<1x8x16xbf16>, vector<1x16x8xbf16>, vector<1x8x8xf32> -> vector<1x8x8xf32>
    "tpu.trace_stop"() : () -> ()
    %480 = tpu.concatenate %428, %445, %462, %479 in 2 : vector<1x8x8xf32>, vector<1x8x8xf32>, vector<1x8x8xf32>, vector<1x8x8xf32> -> vector<1x8x32xf32>
    %481 = tpu.iota {dimensions = array<i32: 1>} : vector<1x8x1xi32>
    %482 = vector.broadcast %1 : i32 to vector<1x8x1xi32>
    %483 = arith.cmpi slt, %481, %482 : vector<1x8x1xi32>
    %484 = arith.extui %483 : vector<1x8x1xi1> to vector<1x8x1xi32>
    %485 = arith.sitofp %484 : vector<1x8x1xi32> to vector<1x8x1xf32>
    %486 = vector.broadcast %485 : vector<1x8x1xf32> to vector<1x8x32xf32>
    %487 = arith.mulf %480, %486 : vector<1x8x32xf32>
    %cst_163 = arith.constant dense<0.000000e+00> : vector<1x32xf32>
    %488 = vector.multi_reduction <add>, %487, %cst_163 [1] : vector<1x8x32xf32> to vector<1x32xf32>
    %c0_164 = arith.constant 0 : index
    %c0_165 = arith.constant 0 : index
    %c0_166 = arith.constant 0 : index
    %489 = vector.load %arg3[%c0_164, %c0_165, %c0_166] : memref<1x1x1xf32, #tpu.memory_space<vmem>>, vector<1x1x1xf32>
    %490 = vector.shape_cast %489 : vector<1x1x1xf32> to vector<1x1xf32>
    %cst_167 = arith.constant 1.000000e+00 : f32
    %491 = vector.broadcast %cst_167 : f32 to vector<1x1xf32>
    %492 = arith.divf %491, %490 : vector<1x1xf32>
    %493 = arith.truncf %488 : vector<1x32xf32> to vector<1x32xbf16>
    %c0_168 = arith.constant 0 : index
    %c0_169 = arith.constant 0 : index
    %494 = vector.load %arg33[%c0_168, %c0_169] : memref<32x128xbf16, #tpu.memory_space<vmem>>, vector<32x128xbf16>
    %cst_170 = arith.constant dense<0.000000e+00> : vector<1x128xf32>
    %495 = tpu.matmul %493, %494, %cst_170 {dimension_numbers = #tpu.dot_dimension_numbers<[1], [0], [0], [1], [0, 0, 1, 1], [], []>} : vector<1x32xbf16>, vector<32x128xbf16>, vector<1x128xf32> -> vector<1x128xf32>
    %496 = arith.sitofp %1 : i32 to f32
    %c0_171 = arith.constant 0 : index
    %c0_172 = arith.constant 0 : index
    %497 = vector.load %arg34[%c0_171, %c0_172] : memref<1x128xf32, #tpu.memory_space<vmem>>, vector<1x128xf32>
    %498 = vector.broadcast %496 : f32 to vector<1x128xf32>
    %499 = arith.mulf %498, %497 : vector<1x128xf32>
    %500 = arith.addf %495, %499 : vector<1x128xf32>
    %501 = vector.broadcast %492 : vector<1x1xf32> to vector<1x128xf32>
    %502 = arith.mulf %500, %501 : vector<1x128xf32>
    %c0_173 = arith.constant 0 : index
    %c0_174 = arith.constant 0 : index
    %503 = vector.load %arg35[%c0_173, %c0_174] : memref<1x128xf32, #tpu.memory_space<vmem>>, vector<1x128xf32>
    %504 = arith.addf %502, %503 : vector<1x128xf32>
    %c0_175 = arith.constant 0 : index
    %c0_176 = arith.constant 0 : index
    %c0_177 = arith.constant 0 : index
    %505 = vector.load %arg36[%c0_175, %c0_176, %c0_177] : memref<1x1x128xf32, #tpu.memory_space<vmem>>, vector<1x1x128xf32>
    %506 = vector.shape_cast %505 : vector<1x1x128xf32> to vector<1x128xf32>
    %507 = vector.shape_cast %504 : vector<1x128xf32> to vector<1x1x128xf32>
    tpu.vector_store %arg36[%c0_175, %c0_176, %c0_177], %507 {strides = array<i32>} : memref<1x1x128xf32, #tpu.memory_space<vmem>>, vector<1x1x128xf32>,
    return
  }
  func.func @transform_0(%arg0: i32) -> (i32, i32, i32) {
    %c0_i32 = arith.constant 0 : i32
    %c0_i32_0 = arith.constant 0 : i32
    %c0_i32_1 = arith.constant 0 : i32
    return %arg0, %c0_i32, %c0_i32_0 : i32, i32, i32
  }
  func.func @transform_1(%arg0: i32) -> (i32, i32, i32) {
    %c0_i32 = arith.constant 0 : i32
    %c0_i32_0 = arith.constant 0 : i32
    %c0_i32_1 = arith.constant 0 : i32
    return %arg0, %c0_i32, %c0_i32_0 : i32, i32, i32
  }
  func.func @transform_2(%arg0: i32) -> (i32, i32, i32) {
    %c0_i32 = arith.constant 0 : i32
    %c0_i32_0 = arith.constant 0 : i32
    %c0_i32_1 = arith.constant 0 : i32
    return %arg0, %c0_i32, %c0_i32_0 : i32, i32, i32
  }
  func.func @transform_3(%arg0: i32) -> i32 {
    %c0_i32 = arith.constant 0 : i32
    %c0_i32_0 = arith.constant 0 : i32
    return %c0_i32 : i32
  }
  func.func @transform_4(%arg0: i32) -> (i32, i32) {
    %c0_i32 = arith.constant 0 : i32
    %c0_i32_0 = arith.constant 0 : i32
    %c0_i32_1 = arith.constant 0 : i32
    return %c0_i32, %c0_i32_0 : i32, i32
  }
  func.func @transform_5(%arg0: i32) -> (i32, i32) {
    %c0_i32 = arith.constant 0 : i32
    %c0_i32_0 = arith.constant 0 : i32
    %c0_i32_1 = arith.constant 0 : i32
    return %c0_i32, %c0_i32_0 : i32, i32
  }
  func.func @transform_6(%arg0: i32) -> (i32, i32) {
    %c0_i32 = arith.constant 0 : i32
    %c0_i32_0 = arith.constant 0 : i32
    %c0_i32_1 = arith.constant 0 : i32
    return %c0_i32, %c0_i32_0 : i32, i32
  }
  func.func @transform_7(%arg0: i32) -> (i32, i32) {
    %c0_i32 = arith.constant 0 : i32
    %c0_i32_0 = arith.constant 0 : i32
    %c0_i32_1 = arith.constant 0 : i32
    return %c0_i32, %c0_i32_0 : i32, i32
  }
  func.func @transform_8(%arg0: i32) -> (i32, i32) {
    %c0_i32 = arith.constant 0 : i32
    %c0_i32_0 = arith.constant 0 : i32
    %c0_i32_1 = arith.constant 0 : i32
    return %c0_i32, %c0_i32_0 : i32, i32
  }
  func.func @transform_9(%arg0: i32) -> (i32, i32) {
    %c0_i32 = arith.constant 0 : i32
    %c0_i32_0 = arith.constant 0 : i32
    %c0_i32_1 = arith.constant 0 : i32
    return %c0_i32, %c0_i32_0 : i32, i32
  }
  func.func @transform_10(%arg0: i32) -> (i32, i32) {
    %c0_i32 = arith.constant 0 : i32
    %c0_i32_0 = arith.constant 0 : i32
    %c0_i32_1 = arith.constant 0 : i32
    return %c0_i32, %c0_i32_0 : i32, i32
  }
  func.func @transform_11(%arg0: i32) -> (i32, i32) {
    %c0_i32 = arith.constant 0 : i32
    %c0_i32_0 = arith.constant 0 : i32
    %c0_i32_1 = arith.constant 0 : i32
    return %c0_i32, %c0_i32_0 : i32, i32
  }
  func.func @transform_12(%arg0: i32) -> (i32, i32) {
    %c0_i32 = arith.constant 0 : i32
    %c0_i32_0 = arith.constant 0 : i32
    %c0_i32_1 = arith.constant 0 : i32
    return %c0_i32, %c0_i32_0 : i32, i32
  }
  func.func @transform_13(%arg0: i32) -> (i32, i32) {
    %c0_i32 = arith.constant 0 : i32
    %c0_i32_0 = arith.constant 0 : i32
    %c0_i32_1 = arith.constant 0 : i32
    return %c0_i32, %c0_i32_0 : i32, i32
  }
  func.func @transform_14(%arg0: i32) -> (i32, i32) {
    %c0_i32 = arith.constant 0 : i32
    %c0_i32_0 = arith.constant 0 : i32
    %c0_i32_1 = arith.constant 0 : i32
    return %c0_i32, %c0_i32_0 : i32, i32
  }
  func.func @transform_15(%arg0: i32) -> (i32, i32) {
    %c0_i32 = arith.constant 0 : i32
    %c0_i32_0 = arith.constant 0 : i32
    %c0_i32_1 = arith.constant 0 : i32
    return %c0_i32, %c0_i32_0 : i32, i32
  }
  func.func @transform_16(%arg0: i32) -> (i32, i32) {
    %c0_i32 = arith.constant 0 : i32
    %c0_i32_0 = arith.constant 0 : i32
    %c0_i32_1 = arith.constant 0 : i32
    return %c0_i32, %c0_i32_0 : i32, i32
  }
  func.func @transform_17(%arg0: i32) -> (i32, i32) {
    %c0_i32 = arith.constant 0 : i32
    %c0_i32_0 = arith.constant 0 : i32
    %c0_i32_1 = arith.constant 0 : i32
    return %c0_i32, %c0_i32_0 : i32, i32
  }
  func.func @transform_18(%arg0: i32) -> (i32, i32) {
    %c0_i32 = arith.constant 0 : i32
    %c0_i32_0 = arith.constant 0 : i32
    %c0_i32_1 = arith.constant 0 : i32
    return %c0_i32, %c0_i32_0 : i32, i32
  }
  func.func @transform_19(%arg0: i32) -> (i32, i32) {
    %c0_i32 = arith.constant 0 : i32
    %c0_i32_0 = arith.constant 0 : i32
    %c0_i32_1 = arith.constant 0 : i32
    return %c0_i32, %c0_i32_0 : i32, i32
  }
  func.func @transform_20(%arg0: i32) -> (i32, i32) {
    %c0_i32 = arith.constant 0 : i32
    %c0_i32_0 = arith.constant 0 : i32
    %c0_i32_1 = arith.constant 0 : i32
    return %c0_i32, %c0_i32_0 : i32, i32
  }
  func.func @transform_21(%arg0: i32) -> (i32, i32) {
    %c0_i32 = arith.constant 0 : i32
    %c0_i32_0 = arith.constant 0 : i32
    %c0_i32_1 = arith.constant 0 : i32
    return %c0_i32, %c0_i32_0 : i32, i32
  }
  func.func @transform_22(%arg0: i32) -> (i32, i32) {
    %c0_i32 = arith.constant 0 : i32
    %c0_i32_0 = arith.constant 0 : i32
    %c0_i32_1 = arith.constant 0 : i32
    return %c0_i32, %c0_i32_0 : i32, i32
  }
  func.func @transform_23(%arg0: i32) -> (i32, i32) {
    %c0_i32 = arith.constant 0 : i32
    %c0_i32_0 = arith.constant 0 : i32
    %c0_i32_1 = arith.constant 0 : i32
    return %c0_i32, %c0_i32_0 : i32, i32
  }
  func.func @transform_24(%arg0: i32) -> (i32, i32) {
    %c0_i32 = arith.constant 0 : i32
    %c0_i32_0 = arith.constant 0 : i32
    %c0_i32_1 = arith.constant 0 : i32
    return %c0_i32, %c0_i32_0 : i32, i32
  }
  func.func @transform_25(%arg0: i32) -> (i32, i32) {
    %c0_i32 = arith.constant 0 : i32
    %c0_i32_0 = arith.constant 0 : i32
    %c0_i32_1 = arith.constant 0 : i32
    return %c0_i32, %c0_i32_0 : i32, i32
  }
  func.func @transform_26(%arg0: i32) -> (i32, i32) {
    %c0_i32 = arith.constant 0 : i32
    %c0_i32_0 = arith.constant 0 : i32
    %c0_i32_1 = arith.constant 0 : i32
    return %c0_i32, %c0_i32_0 : i32, i32
  }
  func.func @transform_27(%arg0: i32) -> (i32, i32) {
    %c0_i32 = arith.constant 0 : i32
    %c0_i32_0 = arith.constant 0 : i32
    %c0_i32_1 = arith.constant 0 : i32
    return %c0_i32, %c0_i32_0 : i32, i32
  }
  func.func @transform_28(%arg0: i32) -> (i32, i32) {
    %c0_i32 = arith.constant 0 : i32
    %c0_i32_0 = arith.constant 0 : i32
    %c0_i32_1 = arith.constant 0 : i32
    return %c0_i32, %c0_i32_0 : i32, i32
  }
  func.func @transform_29(%arg0: i32) -> (i32, i32) {
    %c0_i32 = arith.constant 0 : i32
    %c0_i32_0 = arith.constant 0 : i32
    %c0_i32_1 = arith.constant 0 : i32
    return %c0_i32, %c0_i32_0 : i32, i32
  }
  func.func @transform_30(%arg0: i32) -> (i32, i32) {
    %c0_i32 = arith.constant 0 : i32
    %c0_i32_0 = arith.constant 0 : i32
    %c0_i32_1 = arith.constant 0 : i32
    return %c0_i32, %c0_i32_0 : i32, i32
  }
  func.func @transform_31(%arg0: i32) -> (i32, i32) {
    %c0_i32 = arith.constant 0 : i32
    %c0_i32_0 = arith.constant 0 : i32
    %c0_i32_1 = arith.constant 0 : i32
    return %c0_i32, %c0_i32_0 : i32, i32
  }
  func.func @transform_32(%arg0: i32) -> (i32, i32) {
    %c0_i32 = arith.constant 0 : i32
    %c0_i32_0 = arith.constant 0 : i32
    %c0_i32_1 = arith.constant 0 : i32
    return %c0_i32, %c0_i32_0 : i32, i32
  }
  func.func @transform_33(%arg0: i32) -> (i32, i32) {
    %c0_i32 = arith.constant 0 : i32
    %c0_i32_0 = arith.constant 0 : i32
    %c0_i32_1 = arith.constant 0 : i32
    return %c0_i32, %c0_i32_0 : i32, i32
  }
  func.func @transform_34(%arg0: i32) -> (i32, i32) {
    %c0_i32 = arith.constant 0 : i32
    %c0_i32_0 = arith.constant 0 : i32
    %c0_i32_1 = arith.constant 0 : i32
    return %c0_i32, %c0_i32_0 : i32, i32
  }
  func.func @transform_35(%arg0: i32) -> (i32, i32, i32) {
    %c0_i32 = arith.constant 0 : i32
    %c0_i32_0 = arith.constant 0 : i32
    %c0_i32_1 = arith.constant 0 : i32
    return %arg0, %c0_i32, %c0_i32_0 : i32, i32, i32
  }
}

</mosaic_0001>

<bundles_post_ra>
// kernel: _forward_core.1
= control target key start
LH: loop header
LB: loop body
LE: loop exit
PB: predicated region body
PF: predicated region fallthrough
CT: control target
= control target key end

     0   :  { %s5939_s6 = smov 1   ;;  %s5940_s10 = smov 2   ;;  %s6887_s0 = inlined_call_operand.smem [shape: u32[36], index: -1, kind: input, shape index: {}] }
   0x1   :  { %s5997_s5 = sld [smem:[%s6887_s0]]   ;;  %s5941_s14 = smov 3  }
   0x2   :  { %s6002_s9 = sld [smem:[%s6887_s0 + %s5939_s6]]   ;;  %s5942_s18 = smov 4  }
   0x3   :  { %s6007_s13 = sld [smem:[%s6887_s0 + %s5940_s10]]   ;;  %s5943_s22 = smov 5  }
   0x4   :  { %s6012_s17 = sld [smem:[%s6887_s0 + %s5941_s14]]   ;;  %s5944_s26 = smov 6  }
   0x5   :  { %s6017_s21 = sld [smem:[%s6887_s0 + %s5942_s18]]   ;;  %s5945_s30 = smov 7  }
   0x6   :  { %s6022_s25 = sld [smem:[%s6887_s0 + %s5943_s22]]   ;;  %s5946_s4 = smov 8  }
   0x7   :  { %6910 = sst [smem:[#allocation8_spill]] %s5997_s5  ;;  %s5947_s10 = smov 9  }
   0x8   :  { %6911 = sst [smem:[#allocation9_spill]] %s6002_s9  ;;  %s5948_s15 = smov 10  }
   0x9   :  { %6912 = sst [smem:[#allocation10_spill]] %s6007_s13  ;;  %s5949_s20 = smov 11  }
   0xa   :  { %s6027_s29 = sld [smem:[%s6887_s0 + %s5944_s26]]   ;;  %s5950_s26 = smov 12  }
   0xb   :  { %s6032_s3 = sld [smem:[%s6887_s0 + %s5945_s30]]   ;;  %s5951_s1 = smov 13  }
   0xc   :  { %s6037_s8 = sld [smem:[%s6887_s0 + %s5946_s4]]   ;;  %s5952_s7 = smov 14  }
   0xd   :  { %s6042_s14 = sld [smem:[%s6887_s0 + %s5947_s10]]   ;;  %s5954_s22 = smov 16  }
   0xe   :  { %s6047_s19 = sld [smem:[%s6887_s0 + %s5948_s15]]   ;;  %s5953_s15 = smov 15  }
   0xf   :  { %s6052_s24 = sld [smem:[%s6887_s0 + %s5949_s20]]   ;;  %s5955_s28 = smov 17  }
  0x10   :  { %s6057_s30 = sld [smem:[%s6887_s0 + %s5950_s26]]  }
  0x11   :  { %6913 = sst [smem:[#allocation11_spill]] %s6032_s3 }
  0x12   :  { %6914 = sst [smem:[#allocation12_spill]] %s6037_s8 }
  0x13   :  { %s6062_s6 = sld [smem:[%s6887_s0 + %s5951_s1]]  }
  0x14   :  { %s6067_s12 = sld [smem:[%s6887_s0 + %s5952_s7]]   ;;  %s5956_s7 = smov 18  }
  0x15   :  { %s6072_s20 = sld [smem:[%s6887_s0 + %s5953_s15]]   ;;  %s5957_s15 = smov 19  }
  0x16   :  { %s6077_s27 = sld [smem:[%s6887_s0 + %s5954_s22]]   ;;  %s5958_s22 = smov 20  }
  0x17   :  { %s6082_s4 = sld [smem:[%s6887_s0 + %s5955_s28]]   ;;  %s5959_s28 = smov 21  }
  0x18   :  { %s6087_s13 = sld [smem:[%s6887_s0 + %s5956_s7]]   ;;  %s5960_s7 = smov 22  }
  0x19   :  { %6915 = sst [smem:[#allocation13_spill]] %s6062_s6 }
  0x1a   :  { %6916 = sst [smem:[#allocation14_spill]] %s6067_s12 }
  0x1b   :  { %6917 = sst [smem:[#allocation15_spill]] %s6072_s20 }
  0x1c   :  { %s6092_s20 = sld [smem:[%s6887_s0 + %s5957_s15]]   ;;  %s5961_s15 = smov 23  }
  0x1d   :  { %6918 = sst [smem:[#allocation16_spill]] %s6082_s4 }
  0x1e   :  { %6919 = sst [smem:[#allocation17_spill]] %s6087_s13 }
  0x1f   :  { %s6097_s9 = sld [smem:[%s6887_s0 + %s5958_s22]]   ;;  %s5962_s22 = smov 24  }
  0x20   :  { %s6102_s4 = sld [smem:[%s6887_s0 + %s5959_s28]]   ;;  %s5963_s28 = smov 25  }
  0x21   :  { %s6107_s13 = sld [smem:[%s6887_s0 + %s5960_s7]]   ;;  %s5964_s7 = smov 26  }
  0x22   :  { %6920 = sst [smem:[#allocation18_spill]] %s6092_s20 }
  0x23   :  { %s6112_s20 = sld [smem:[%s6887_s0 + %s5961_s15]]   ;;  %s5965_s15 = smov 27  }
  0x25   :  { %6921 = sst [smem:[#allocation19_spill]] %s6097_s9 }
  0x26   :  { %6922 = sst [smem:[#allocation20_spill]] %s6102_s4 }
  0x27   :  { %6923 = sst [smem:[#allocation21_spill]] %s6107_s13 }
  0x28   :  { %s6117_s9 = sld [smem:[%s6887_s0 + %s5962_s22]]   ;;  %s5966_s22 = smov 28  }
  0x29   :  { %6924 = sst [smem:[#allocation22_spill]] %s6112_s20 }
  0x2a   :  { %s6122_s4 = sld [smem:[%s6887_s0 + %s5963_s28]]   ;;  %s5967_s28 = smov 29  }
  0x2b   :  { %s6127_s13 = sld [smem:[%s6887_s0 + %s5964_s7]]   ;;  %s5968_s7 = smov 30  }
  0x2c   :  { %s6132_s20 = sld [smem:[%s6887_s0 + %s5965_s15]]   ;;  %s5969_s15 = smov 31  }
  0x2e   :  { %6925 = sst [smem:[#allocation23_spill]] %s6117_s9 }
  0x2f   :  { %s6137_s9 = sld [smem:[%s6887_s0 + %s5966_s22]]   ;;  %s5970_s22 = smov 32  }
  0x30   :  { %6926 = sst [smem:[#allocation24_spill]] %s6122_s4 }
  0x31   :  { %6927 = sst [smem:[#allocation25_spill]] %s6127_s13 }
  0x32   :  { %6928 = sst [smem:[#allocation26_spill]] %s6132_s20 }
  0x33   :  { %s6142_s4 = sld [smem:[%s6887_s0 + %s5967_s28]]   ;;  %s5971_s28 = smov 33  }
  0x34   :  { %s6147_s13 = sld [smem:[%s6887_s0 + %s5968_s7]]   ;;  %s5972_s7 = smov 34  }
  0x35   :  { %6929 = sst [smem:[#allocation27_spill]] %s6137_s9 }
  0x36   :  { %s6152_s20 = sld [smem:[%s6887_s0 + %s5969_s15]]   ;;  %s5973_s15 = smov 35  }
  0x37   :  { %s6157_s9 = sld [smem:[%s6887_s0 + %s5970_s22]]  }
  0x39   :  { %6930 = sst [smem:[#allocation28_spill]] %s6142_s4 }
  0x3a   :  { %6931 = sst [smem:[#allocation29_spill]] %s6147_s13 }
  0x3b   :  { %s6162_s4 = sld [smem:[%s6887_s0 + %s5971_s28]]  }
  0x3c   :  { %6932 = sst [smem:[#allocation30_spill]] %s6152_s20 }
  0x3d   :  { %6933 = sst [smem:[#allocation31_spill]] %s6157_s9 }
  0x3e   :  { %s6167_s13 = sld [smem:[%s6887_s0 + %s5972_s7]]  }
  0x3f   :  { %s6172_s20 = sld [smem:[%s6887_s0 + %s5973_s15]]  }
  0x41   :  { %6934 = sst [smem:[#allocation32_spill]] %s6162_s4 }
  0x42   :  { %76 = vsyncpa [#allocation4], 0 }
  0x43   :  { %77 = vsyncpa [#allocation3], 0 }
  0x44   :  { %79 = vsyncpa [#allocation3 + $0x1], 0  ;;  %s6174_s22 = smov 0   ;;  %s6176_s23 = smov 0  }
  0x45   :  { %s6178_s26 = smov 0   ;;  %s6180_s28 = smov 0  }
  0x46 LB: > { %s6935_s9 = sld [smem:[#allocation31_spill]]  ;;  %s6936_s12 = sld [smem:[#allocation14_spill]]  ;;  %s5933_s26 = sphi %s6178_s26, %s6970_s26   ;;  %s5929_s23 = sphi %s6176_s23, %s6969_s23   ;;  %s5925_s22 = sphi %s6174_s22, %s6968_s22   ;;  %s5937_s28 = sphi %s6180_s28, %s6971_s28  }
  0x47   : > { %s6937_s8 = sld [smem:[#allocation12_spill]]  ;;  %s6195_s0 = sadd.s32 4294967295, %s5937_s28  }
  0x48   : > { %s4889_s1 = sadd.s32 4294967294, %s5937_s28   ;;  %s6199_s2 = sadd.s32 1, %s5937_s28  }
  0x49   : > { %s842_s7 = sadd.s32 1, %s5933_s26  ;;  %s839_s10 = ssub.s32 %s5937_s28, %s6199_s2 }
  0x4a   : > { %p852_p0 = scmp.ne.s32.totalorder %s5933_s26, %s5929_s23  ;;  %p840_p1 = scmp.eq.s32.totalorder %s839_s10, 0 }
  0x4b   : > { %p853_p2 = scmp.eq.s32.totalorder %s6195_s0, 1  ;;  %p858_p3 = scmp.ne.s32.totalorder %s5929_s23, %s5925_s22 }
  0x4c   : > { %p859_p4 = scmp.eq.s32.totalorder %s4889_s1, 1  ;;  %p4890_p7 = scmp.ge.s32.totalorder %s5937_s28, 1 }
  0x4d   : > { %s6210_s11 = scalar_select %p840_p1, %s5933_s26, %s842_s7  }
  0x4e   : > { %p6212_p5 = por %p853_p2, %p852_p0  ;;  %p6216_p6 = por %p859_p4, %p858_p3 }
  0x4f   : > { %p866_p8 = scmp.lt.s32.totalorder %s5937_s28, 3  ;;  %p5555_p9 = scmp.eq.s32.totalorder %s6195_s0, 0 }
  0x50   : > { %s6938_s15 = scalar_select %p6212_p5, 1, 0 }
  0x51   : > { %s6939_s16 = scalar_select %p6216_p6, 1, 0 }
  0x52   : > { %p6223_p10 = pnand %p4890_p7, %p866_p8  ;;  %s879_s10 = sshll.u32 %s6012_s17, 4  ;;  %s880_s10 = int_to_ptr.vmem [resolvable:$true] %s879_s10 }
  0x53   : > { %s5856_s1 = scalar_lea.vmem %s880_s10, 16  ;;  %p5864_p3 = scmp.lt.s32.totalorder %s880_s10, %s880_s10 }
  0x54   : > { %p5547_p11 = pneg %p6223_p10  ;;  %p5857_p13 = scmp.ne.s32.totalorder %s880_s10, %s5856_s1 }
  0x55   : > { %p5865_p4 = scmp.lt.s32.totalorder %s5856_s1, %s5856_s1 }
  0x56   : > { %p5548_p12 = pnand %p5555_p9, %p5547_p11 }
  0x57   : > { %p5866_p6 = por %p5865_p4, %p5864_p3 }
  0x58   : > { %p5858_p0 = pneg %p5548_p12 }
  0x5a   : > { %p5859_p1 = pnand %p5858_p0, %p5857_p13 }
  0x5c   : > { %p5860_p2 = pneg %p5859_p1 }
  0x5e   : > { %p5867_p5 = pnand %p5866_p6, %p5860_p2 }
  0x60   : > { %5870 = shalt.err (!%p5867_p5)
}
  0x61   : > { %s5974_s7 = smov [#allocation2]   ;;  %1006 = sbr.rel (%p6223_p10) target bundleno = 7987 (0x1f33), region = 160 }
  0x62   : > { %5550 = dma.vmem_to_smem (!%p5548_p12), %s880_s10, 16, %s5974_s7, [#allocation4]  }
  0x68   : > { %5916 = dma.done.wait (%p5555_p9), [#allocation4], 16  }
  0x69   : > { %5918 = vsyncadd (%p5555_p9), [#allocation4], 4294967280 }
  0x6a   : > { %1012 = sfence }
  0x6b   : > { %s6941_s5 = sld [smem:[#allocation8_spill]]  ;;  %v5671_v0 = vld [vmem:[%s6017_s21 + $0x4] ss:$8 sps:$4 sm:$0xff]   ;;  %p1101_p5 = scmp.lt.s32.totalorder %s6195_s0, 1  ;;  %v5673_v1 = vld [vmem:[%s6017_s21] ss:$8 sps:$4 sm:$0xff]   ;;  %v1116_v7 = vlaneseq }
  0x6c   : > { %v5975_v2 = vmov 0   ;;  %1172 = vmatprep.subr.bf16.mxu0 %v5671_v0  ;;  %v5674_v3 = vld [vmem:[%s6017_s21 + $0x14] ss:$8 sps:$4 sm:$0xff]   ;;  %v5676_v4 = vld [vmem:[%s6017_s21 + $0x10] ss:$8 sps:$4 sm:$0xff]   ;;  %vm1168_vm0 = vcmask 261120  }
  0x6d   : > { %1204 = vmatprep.mubr.bf16.mxu0 %v5975_v2  ;;  %5669 = vset.pattern.permute.xlu1 %v5975_v2  ;;  %s6245_s18 = scalar_select %p1101_p5, %s6195_s0, 1  ;;  %v5976_v6 = vmov 0.0   ;;  %vm5977_vm1 = vmmov 0   ;;  %v6258_v8 = vshrl.u32 %v1116_v7, 7  ;;  %v1131_v10 = vld [vmem:[%s6022_s25] sm:$0x3] }
  0x6e   : > { %5670 = vset.pattern.permute.xlu0 %v5975_v2  ;;  %1173 = vmatpush1.bf16.msra.mxu0 %v5673_v1  ;;  %s6900_s7 = smov 64   ;;  %v6305_v34 = vand.u32 127, %v1116_v7  ;;  %v5981_v36 = vmov -1e+30   ;;  %vm1264_vm3 = vcmask 130048   ;;  %vm1717_vm4 = vcmask 523264  }
  0x6f   : > { %1174 = vmatprep.subr.bf16.mxu0 %v5674_v3  ;;  %s5027_s10 = sshll.u32 %s6245_s18, 3  ;;  %5165 = vmatprep.subr.bf16.mxu1 %v5976_v6  ;;  %v6261_v9 = vsub.s32 0, %v6258_v8  ;;  %v6265_v11 = vsub.s32 1, %v6258_v8  ;;  %vm1720_vm5 = vcmask 785408   ;;  %s6943_s3 = sld [smem:[#allocation11_spill]]  ;;  %vm2822_vm6 = vcmask 1043456  }
  0x70   : > { %5167 = vmatprep.mubr.msk.bf16.mxu1 %vm5977_vm1, %v5976_v6  ;;  %s6944_s6 = sld [smem:[#allocation13_spill]]  ;;  %vm2806_vm8 = vcmask 64512   ;;  %vm4658_vm10 = vcmask 195584   ;;  %s6965_s4 = sld [smem:[#allocation32_spill]] }
  0x71   : > { %s1105_s1 = scalar_lea.vmem %s6941_s5, %s5027_s10  ;;  %v1136_v12 = vrot.slane %v1131_v10, %v6261_v9  ;;  %v1140_v14 = vrot.slane %v1131_v10, %v6265_v11  ;;  %s6896_s10 = smov 96  }
  0x72   : > { %v5677_v5 = vld [vmem:[%s1105_s1] sm:$0xff]   ;;  %1175 = vmatpush1.bf16.msra.mxu0 %v5676_v4  ;;  %s6898_s1 = smov 32   ;;  %s6947_s5 = sld [smem:[#allocation16_spill]] }
  0x73   : > { %5171 = vmatprep.subr.bf16.mxu0 %v5976_v6  ;;  %p6966_p7 = scmp.ne.s32.totalorder %s6938_s15, 0 }
  0x75   : > { %4904 = vmatmul.mubr.msk.bf16.vlgmr.msra.gmra.mrb[0].mxu0 %vm1168_vm0, %v5677_v5 }
  0x76   : > { %5173 = vmatprep.mubr.msk.bf16.mxu0 %vm5977_vm1, %v5976_v6 }
 0x148   : > { %v1206_v13 = vpop.f32.mrb[0].mxu0 }
 0x149   : > { %v1208_v15 = vpop.f32.mrb[1].mxu0  ;;  %v1207_v17 = vadd.f32 %v1206_v13, %v1136_v12 }
 0x14a   : > { %v1210_v16 = vpop.f32.mrb[2].mxu0  ;;  %v1209_v20 = vadd.f32 %v1208_v15, %v1140_v14 }
 0x14b   : > { %v1211_v18 = vadd.f32 %v1210_v16, %v1136_v12  ;;  %v1212_v19 = vpop.f32.mrb[3].mxu0 }
 0x14c   : > { %v1213_v21 = vadd.f32 %v1212_v19, %v1140_v14 }
 0x14d   : > { %v1215_v22 = vpack.c.bf16 %v1211_v18, %v1207_v17 }
 0x14e   : > { %v1216_v23 = vpack.c.bf16 %v1213_v21, %v1209_v20 }
 0x14f   : > { %1455 = vrot.lane.b32.xlu1 %v1215_v22, %s6900_s7  ;;  %1336 = vrot.lane.b32.xlu0 %v1215_v22, %s6896_s10  ;;  %v1221_v24 = vsel %vm1168_vm0, %v1215_v22, 0 }
 0x150   : > { %5172 = vmatpush3.bf16.msra.mxu0 %v1215_v22  ;;  %5166 = vmatpush3.bf16.xpose.msra.mxu1 %v1221_v24 }
 0x151   : > { %5177 = vmatprep.subr.bf16.mxu1 %v5976_v6  ;;  %5183 = vmatprep.subr.bf16.mxu0 %v5976_v6 }
 0x153   : > { %1453 = vrot.lane.b32.xlu1 %v1216_v23, %s6900_s7  ;;  %1333 = vrot.lane.b32.xlu0 %v1216_v23, %s6896_s10  ;;  %s1114_s10 = sld [smem:[#allocation2]] }
 0x157   : > { %1572 = vrot.lane.b32.xlu1 %v1216_v23, %s6898_s1  ;;  %1574 = vrot.lane.b32.xlu0 %v1215_v22, %s6898_s1 }
 0x158   : > { %5168 = vmatmul.mubr.msk.bf16.vlgmr.msra.gmra.mrb[0].mxu1 %vm1168_vm0, %v1216_v23 }
 0x159   : > { %5179 = vmatprep.mubr.msk.bf16.mxu1 %vm5977_vm1, %v5976_v6  ;;  %v1118_v35 = vstv %s1114_s10  ;;  %s6942_s10 = smov 96  }
 0x15a   : > { %vm1119_vm2 = vcmp.lt.s32.totalorder %v6305_v34, %v1118_v35 }
 0x15b   : > { %v6309_v37 = vsel %vm1119_vm2, 0.0, %v5981_v36 }
 0x1c1   : > { %v6281_v25 = vpop.permute.xlu0 %1336  ;;  %v6286_v27 = vpop.permute.xlu1 %1455 }
 0x1c2   : > { %v1342_v26 = vsel %vm1168_vm0, %v6281_v25, 0  ;;  %v1461_v29 = vsel %vm1168_vm0, %v6286_v27, 0 }
 0x1c3   : > { %5178 = vmatpush3.bf16.xpose.msra.mxu1 %v1342_v26 }
 0x1c4   : > { %5189 = vmatprep.subr.bf16.mxu1 %v5976_v6 }
 0x1c5   : > { %v1334_v28 = vpop.permute.xlu0 %1333  ;;  %v1454_v31 = vpop.permute.xlu1 %1453 }
 0x1c9   : > { %v6294_v30 = vpop.permute.xlu0 %1574  ;;  %v1573_v33 = vpop.permute.xlu1 %1572 }
 0x1ca   : > { %5180 = vmatmul.mubr.msk.bf16.vlgmr.msra.gmra.mrb[4].mxu1 %vm1168_vm0, %v1334_v28  ;;  %v1580_v32 = vsel %vm1168_vm0, %v6294_v30, 0 }
 0x1cb   : > { %5190 = vmatpush3.bf16.xpose.msra.mxu1 %v1461_v29  ;;  %5191 = vmatprep.mubr.msk.bf16.mxu1 %vm5977_vm1, %v5976_v6 }
 0x1cc   : > { %5201 = vmatprep.subr.bf16.mxu1 %v5976_v6 }
 0x1d2   : > { %5192 = vmatmul.mubr.msk.bf16.vlgmr.msra.gmra.mrb[8].mxu1 %vm1168_vm0, %v1454_v31 }
 0x1d3   : > { %5202 = vmatpush3.bf16.xpose.msra.mxu1 %v1580_v32  ;;  %5203 = vmatprep.mubr.msk.bf16.mxu1 %vm5977_vm1, %v5976_v6 }
 0x1d4   : > { %5213 = vmatprep.subr.bf16.mxu1 %v5976_v6 }
 0x1da   : > { %5204 = vmatmul.mubr.msk.bf16.vlgmr.msra.gmra.mrb[12].mxu1 %vm1168_vm0, %v1573_v33 }
 0x1db   : > { %5229 = vmatprep.mubr.msk.bf16.mxu1 %vm5977_vm1, %v5976_v6 }
 0x22b   : > { %v1257_v38 = vpop.f32.mrb[0].mxu1 }
 0x22c   : > { %v1258_v39 = vadd.f32 %v1257_v38, %v6309_v37  ;;  %v5169_v40 = vpop.f32.mrb[1].mxu1 }
 0x22d   : > { %v1260_v41 = vpop.f32.mrb[2].mxu1 }
 0x22e   : > { %v1261_v42 = vadd.f32 %v1260_v41, %v6309_v37  ;;  %v5170_v43 = vpop.f32.mrb[3].mxu1  ;;  %v1265_v44 = vsel %vm1264_vm3, %v1258_v39, -inf }
 0x22f   : > { %1266 = vmax.xlane.f32.xlu0 %v1265_v44 }
 0x230   : > { %v1268_v45 = vsel %vm1264_vm3, %v1261_v42, -inf }
 0x231   : > { %1269 = vmax.xlane.f32.xlu1 %v1268_v45 }
 0x29d   : > { %v1378_v46 = vpop.f32.mrb[4].mxu1 }
 0x29e   : > { %v1379_v47 = vadd.f32 %v1378_v46, %v6309_v37  ;;  %v5181_v48 = vpop.f32.mrb[5].mxu1 }
 0x29f   : > { %v1381_v49 = vpop.f32.mrb[6].mxu1 }
 0x2a0   : > { %v1382_v50 = vadd.f32 %v1381_v49, %v6309_v37  ;;  %v5182_v51 = vpop.f32.mrb[7].mxu1  ;;  %v1385_v52 = vsel %vm1264_vm3, %v1379_v47, -inf }
 0x2a1   : > { %1386 = vmax.xlane.f32.xlu0 %v1385_v52 }
 0x2a2   : > { %v1388_v53 = vsel %vm1264_vm3, %v1382_v50, -inf }
 0x2a5   : > { %1389 = vmax.xlane.f32.xlu0 %v1388_v53  ;;  %v1497_v54 = vpop.f32.mrb[8].mxu1 }
 0x2a6   : > { %v1498_v55 = vadd.f32 %v1497_v54, %v6309_v37  ;;  %v5193_v56 = vpop.f32.mrb[9].mxu1 }
 0x2a7   : > { %v1500_v57 = vpop.f32.mrb[10].mxu1 }
 0x2a8   : > { %v1501_v58 = vadd.f32 %v1500_v57, %v6309_v37  ;;  %v5194_v59 = vpop.f32.mrb[11].mxu1  ;;  %v1504_v60 = vsel %vm1264_vm3, %v1498_v55, -inf }
 0x2a9   : > { %1505 = vmax.xlane.f32.xlu1 %v1504_v60 }
 0x2aa   : > { %v1507_v61 = vsel %vm1264_vm3, %v1501_v58, -inf }
 0x2ab   : > { %1508 = vmax.xlane.f32.xlu0 %v1507_v61 }
 0x2ad   : > { %v1616_v62 = vpop.f32.mrb[12].mxu1 }
 0x2ae   : > { %v1617_v63 = vadd.f32 %v1616_v62, %v6309_v37  ;;  %v5205_v0 = vpop.f32.mrb[13].mxu1 }
 0x2af   : > { %v1619_v1 = vpop.f32.mrb[14].mxu1 }
 0x2b0   : > { %v1620_v3 = vadd.f32 %v1619_v1, %v6309_v37  ;;  %v5206_v4 = vpop.f32.mrb[15].mxu1  ;;  %v1623_v5 = vsel %vm1264_vm3, %v1617_v63, -inf }
 0x2b1   : > { %1624 = vmax.xlane.f32.xlu1 %v1623_v5 }
 0x2b2   : > { %v1626_v7 = vsel %vm1264_vm3, %v1620_v3, -inf }
 0x2b3   : > { %1627 = vmax.xlane.f32.xlu0 %v1626_v7 }
 0x2bc   : > { %v1267_v10 = vpop.xlane.xlu0 %1266 }
 0x2bd   : > { %v1271_v12 = vsub.f32 %v1258_v39, %v1267_v10 }
 0x2be   : > { %v1270_v13 = vpop.xlane.xlu1 %1269 }
 0x2bf   : > { %v1273_v14 = vmul.f32 1.442695, %v1271_v12  ;;  %v1272_v15 = vsub.f32 %v1261_v42, %v1270_v13 }
 0x2c1   : > { %5742 = vpow2.f32 %v1273_v14  ;;  %v1275_v16 = vmul.f32 1.442695, %v1272_v15 }
 0x2c3   : > { %5744 = vpow2.f32 %v1275_v16 }
 0x2cb   : > { %v5743_v17 = vpop.eup %5742 }
 0x2cc   : > { %v1277_v18 = vsel %vm1264_vm3, %v5743_v17, 0.0 }
 0x2cd   : > { %v5745_v19 = vpop.eup %5744  ;;  %1278 = vadd.xlane.f32.xlu1 %v1277_v18 }
 0x2ce   : > { %v1280_v20 = vsel %vm1264_vm3, %v5745_v19, 0.0 }
 0x2cf   : > { %1281 = vadd.xlane.f32.xlu0 %v1280_v20 }
 0x32e   : > { %v1387_v21 = vpop.xlane.xlu0 %1386 }
 0x32f   : > { %v1391_v22 = vsub.f32 %v1379_v47, %v1387_v21 }
 0x331   : > { %v1393_v23 = vmul.f32 1.442695, %v1391_v22 }
 0x332   : > { %v1390_v24 = vpop.xlane.xlu0 %1389 }
 0x333   : > { %5746 = vpow2.f32 %v1393_v23  ;;  %v1392_v26 = vsub.f32 %v1382_v50, %v1390_v24 }
 0x335   : > { %v1395_v28 = vmul.f32 1.442695, %v1392_v26 }
 0x336   : > { %v1506_v29 = vpop.xlane.xlu1 %1505 }
 0x337   : > { %5748 = vpow2.f32 %v1395_v28  ;;  %v1510_v31 = vsub.f32 %v1498_v55, %v1506_v29  ;;  %v5678_v29 = vld [vmem:[%s6027_s29] sm:$0xff]  }
 0x338   : > { %v1509_v32 = vpop.xlane.xlu0 %1508  ;;  %5214 = vmatpush3.bf16.msra.mxu1 %v5678_v29 }
 0x339   : > { %v1512_v33 = vmul.f32 1.442695, %v1510_v31  ;;  %v1511_v35 = vsub.f32 %v1501_v58, %v1509_v32  ;;  %v5679_v31 = vld [vmem:[%s6027_s29 + $0x8] sm:$0xff]   ;;  %5215 = vmatprep.subr.bf16.mxu1 %v5976_v6  ;;  %v5680_v32 = vld [vmem:[%s6027_s29 + $0x10] sm:$0xff]  }
 0x33b   : > { %5750 = vpow2.f32 %v1512_v33  ;;  %v1514_v38 = vmul.f32 1.442695, %v1511_v35  ;;  %v5681_v33 = vld [vmem:[%s6027_s29 + $0x18] sm:$0xff]   ;;  %v5682_v35 = vld [vmem:[%s6027_s29 + $0x20] sm:$0xff]  }
 0x33c   : > { %5216 = vmatpush3.bf16.msra.mxu1 %v5679_v31 }
 0x33d   : > { %v5747_v39 = vpop.eup %5746  ;;  %5752 = vpow2.f32 %v1514_v38  ;;  %5217 = vmatprep.subr.bf16.mxu1 %v5976_v6 }
 0x33e   : > { %v1625_v40 = vpop.xlane.xlu1 %1624  ;;  %v1397_v41 = vsel %vm1264_vm3, %v5747_v39, 0.0 }
 0x33f   : > { %v1629_v42 = vsub.f32 %v1617_v63, %v1625_v40  ;;  %1398 = vadd.xlane.f32.xlu1 %v1397_v41  ;;  %v5683_v41 = vld [vmem:[%s6027_s29 + $0x28] sm:$0xff]  }
 0x340   : > { %v1628_v43 = vpop.xlane.xlu0 %1627  ;;  %5218 = vmatpush3.bf16.msra.mxu1 %v5680_v32 }
 0x341   : > { %v5749_v44 = vpop.eup %5748  ;;  %v1631_v45 = vmul.f32 1.442695, %v1629_v42  ;;  %v1630_v46 = vsub.f32 %v1620_v3, %v1628_v43  ;;  %5219 = vmatprep.subr.bf16.mxu1 %v5976_v6 }
 0x342   : > { %v1400_v47 = vsel %vm1264_vm3, %v5749_v44, 0.0 }
 0x343   : > { %5754 = vpow2.f32 %v1631_v45  ;;  %v1633_v48 = vmul.f32 1.442695, %v1630_v46  ;;  %1401 = vadd.xlane.f32.xlu0 %v1400_v47 }
 0x344   : > { %5220 = vmatpush3.bf16.msra.mxu1 %v5681_v33 }
 0x345   : > { %v5751_v49 = vpop.eup %5750  ;;  %5756 = vpow2.f32 %v1633_v48  ;;  %5221 = vmatprep.subr.bf16.mxu1 %v5976_v6  ;;  %v5685_v48 = vld [vmem:[%s6027_s29 + $0x38] sm:$0xff]  }
 0x346   : > { %v1516_v50 = vsel %vm1264_vm3, %v5751_v49, 0.0 }
 0x347   : > { %v5753_v51 = vpop.eup %5752  ;;  %1517 = vadd.xlane.f32.xlu1 %v1516_v50 }
 0x348   : > { %v1519_v52 = vsel %vm1264_vm3, %v5753_v51, 0.0  ;;  %5222 = vmatpush3.bf16.msra.mxu1 %v5682_v35 }
 0x349   : > { %1520 = vadd.xlane.f32.xlu0 %v1519_v52  ;;  %5223 = vmatprep.subr.bf16.mxu1 %v5976_v6 }
 0x34c   : > { %5224 = vmatpush3.bf16.msra.mxu1 %v5683_v41 }
 0x34d   : > { %v5755_v53 = vpop.eup %5754  ;;  %5225 = vmatprep.subr.bf16.mxu1 %v5976_v6 }
 0x34e   : > { %v1635_v54 = vsel %vm1264_vm3, %v5755_v53, 0.0 }
 0x34f   : > { %v5757_v55 = vpop.eup %5756  ;;  %1636 = vadd.xlane.f32.xlu1 %v1635_v54 }
 0x350   : > { %v1638_v56 = vsel %vm1264_vm3, %v5757_v55, 0.0 }
 0x351   : > { %1639 = vadd.xlane.f32.xlu0 %v1638_v56 }
 0x35a   : > { %v1279_v57 = vpop.xlane.xlu1 %1278 }
 0x35b   : > { %5758 = vrcp.f32 %v1279_v57 }
 0x35c   : > { %v1282_v58 = vpop.xlane.xlu0 %1281 }
 0x35d   : > { %5760 = vrcp.f32 %v1282_v58 }
 0x365   : > { %v5759_v59 = vpop.eup %5758 }
 0x366   : > { %v1285_v61 = vmul.f32 %v5759_v59, %v5743_v17 }
 0x367   : > { %v5761_v60 = vpop.eup %5760 }
 0x368   : > { %v1286_v62 = vmul.f32 %v5761_v60, %v5745_v19 }
 0x36a   : > { %v1287_v63 = vpack.c.bf16 %v1286_v62, %v1285_v61 }
 0x36c   : > { %5174 = vmatmul.mubr.msk.bf16.vlgmr.msra.gmra.mrb[4].mxu0 %vm1264_vm3, %v1287_v63 }
 0x36d   : > { %5184 = vmatpush3.bf16.msra.mxu0 %v6281_v25  ;;  %5185 = vmatprep.mubr.msk.bf16.mxu0 %vm5977_vm1, %v5976_v6 }
 0x36e   : > { %5195 = vmatprep.subr.bf16.mxu0 %v5976_v6 }
 0x3cc   : > { %v1399_v0 = vpop.xlane.xlu1 %1398 }
 0x3cd   : > { %5762 = vrcp.f32 %v1399_v0 }
 0x3d0   : > { %v1402_v1 = vpop.xlane.xlu0 %1401 }
 0x3d1   : > { %5764 = vrcp.f32 %v1402_v1 }
 0x3d4   : > { %v1518_v3 = vpop.xlane.xlu1 %1517 }
 0x3d5   : > { %5766 = vrcp.f32 %v1518_v3 }
 0x3d6   : > { %v1521_v4 = vpop.xlane.xlu0 %1520 }
 0x3d7   : > { %5768 = vrcp.f32 %v1521_v4  ;;  %v5763_v5 = vpop.eup %5762 }
 0x3d8   : > { %v1405_v10 = vmul.f32 %v5763_v5, %v5747_v39 }
 0x3db   : > { %v5765_v7 = vpop.eup %5764 }
 0x3dc   : > { %v1406_v12 = vmul.f32 %v5765_v7, %v5749_v44  ;;  %v1637_v13 = vpop.xlane.xlu1 %1636  ;;  %v5684_v44 = vld [vmem:[%s6027_s29 + $0x30] sm:$0xff]  }
 0x3dd   : > { %5770 = vrcp.f32 %v1637_v13  ;;  %5226 = vmatpush3.bf16.msra.mxu1 %v5684_v44  ;;  %v5686_v13 = vld [vmem:[%s6937_s8] sm:$0xff]  }
 0x3de   : > { %v1640_v25 = vpop.xlane.xlu0 %1639  ;;  %v1407_v14 = vpack.c.bf16 %v1406_v12, %v1405_v10  ;;  %5227 = vmatprep.subr.bf16.mxu1 %v5976_v6 }
 0x3df   : > { %5772 = vrcp.f32 %v1640_v25  ;;  %v5767_v15 = vpop.eup %5766  ;;  %v5687_v25 = vld [vmem:[%s6937_s8 + $0x8] sm:$0xff]   ;;  %s6952_s8 = sld [smem:[#allocation21_spill]] }
 0x3e0   : > { %5186 = vmatmul.mubr.msk.bf16.vlgmr.msra.gmra.mrb[8].mxu0 %vm1264_vm3, %v1407_v14  ;;  %v1524_v18 = vmul.f32 %v5767_v15, %v5751_v49  ;;  %v5690_v14 = vld [vmem:[%s6047_s19 + $0x4] ss:$8 sps:$4 sm:$0xff]   ;;  %v4913_v15 = vld [vmem:[%s6943_s3] ss:$0 sm:$0xff]  ;;  %s4897_s3 = sshll.u32 %s6245_s18, 2 }
 0x3e1   : > { %v5769_v16 = vpop.eup %5768  ;;  %5196 = vmatpush3.bf16.msra.mxu0 %v6286_v27  ;;  %5197 = vmatprep.mubr.msk.bf16.mxu0 %vm5977_vm1, %v5976_v6 }
 0x3e2   : > { %v1525_v17 = vmul.f32 %v5769_v16, %v5753_v51  ;;  %5207 = vmatprep.subr.bf16.mxu0 %v5976_v6  ;;  %5228 = vmatpush3.bf16.msra.mxu1 %v5685_v48 }
 0x3e3   : > { %5253 = vmatprep.subr.bf16.mxu1 %v5976_v6 }
 0x3e4   : > { %v1526_v19 = vpack.c.bf16 %v1525_v17, %v1524_v18 }
 0x3e7   : > { %v5771_v20 = vpop.eup %5770 }
 0x3e8   : > { %5198 = vmatmul.mubr.msk.bf16.vlgmr.msra.gmra.mrb[12].mxu0 %vm1264_vm3, %v1526_v19  ;;  %v1643_v22 = vmul.f32 %v5771_v20, %v5755_v53 }
 0x3e9   : > { %v5773_v21 = vpop.eup %5772  ;;  %5208 = vmatpush3.bf16.msra.mxu0 %v6294_v30  ;;  %5209 = vmatprep.mubr.msk.bf16.mxu0 %vm5977_vm1, %v5976_v6 }
 0x3ea   : > { %v1644_v27 = vmul.f32 %v5773_v21, %v5757_v55  ;;  %5233 = vmatprep.subr.bf16.mxu0 %v5976_v6 }
 0x3ec   : > { %v1645_v23 = vpack.c.bf16 %v1644_v27, %v1643_v22 }
 0x3f0   : > { %5210 = vmatmul.mubr.msk.bf16.vlgmr.msra.gmra.mrb[16].mxu0 %vm1264_vm3, %v1645_v23  ;;  %v5688_v23 = vld [vmem:[%s6047_s19] ss:$8 sps:$4 sm:$0xff]  }
 0x3f1   : > { %5237 = vmatprep.mubr.msk.bf16.mxu0 %vm5977_vm1, %v5976_v6  ;;  %5234 = vmatpush3.bf16.msra.mxu0 %v5686_v13 }
 0x3f2   : > { %5235 = vmatprep.subr.bf16.mxu0 %v5976_v6 }
 0x3f5   : > { %5236 = vmatpush3.bf16.msra.mxu0 %v5687_v25 }
 0x3f6   : > { %1946 = vmatprep.subr.bf16.mxu0 %v5690_v14 }
 0x43f   : > { %v1325_v24 = vpop.f32.mrb[4].mxu0 }
 0x440   : > { %v5175_v26 = vpop.f32.mrb[5].mxu0 }
 0x441   : > { %v1328_v28 = vpop.f32.mrb[6].mxu0  ;;  %v5693_v26 = vld [vmem:[%s6047_s19 + $0x14] ss:$8 sps:$4 sm:$0xff]  }
 0x442   : > { %v5176_v30 = vpop.f32.mrb[7].mxu0 }
 0x443   : > { %v4922_v30 = vld [vmem:[%s6042_s14] ss:$0 sm:$0xff] }
 0x4b3   : > { %v1446_v38 = vpop.f32.mrb[8].mxu0 }
 0x4b4   : > { %v5187_v39 = vpop.f32.mrb[9].mxu0 }
 0x4b5   : > { %v1449_v40 = vpop.f32.mrb[10].mxu0 }
 0x4b6   : > { %v5639_v42 = vpack.i.bf16 %v1449_v40, %v1446_v38  ;;  %v5188_v43 = vpop.f32.mrb[11].mxu0  ;;  %v1911_v40 = vld [vmem:[%s6052_s24] sm:$0x3] }
 0x4b7   : > { %v1916_v41 = vrot.slane %v1911_v40, %v6261_v9  ;;  %v1920_v43 = vrot.slane %v1911_v40, %v6265_v11 }
 0x4b8   : > { %5640 = vrot.lane.b32.xlu1 %v5639_v42, %s6898_s1 }
 0x4bb   : > { %v1565_v45 = vpop.f32.mrb[12].mxu0 }
 0x4bc   : > { %v5199_v46 = vpop.f32.mrb[13].mxu0 }
 0x4bd   : > { %v1568_v47 = vpop.f32.mrb[14].mxu0 }
 0x4be   : > { %v5644_v49 = vpack.i.bf16 %v1568_v47, %v1565_v45  ;;  %v5200_v50 = vpop.f32.mrb[15].mxu0 }
 0x4c0   : > { %5645 = vrot.lane.b32.xlu0 %v5644_v49, %s6900_s7 }
 0x4c3   : > { %v1684_v51 = vpop.f32.mrb[16].mxu0 }
 0x4c4   : > { %v5211_v52 = vpop.f32.mrb[17].mxu0 }
 0x4c5   : > { %v1687_v53 = vpop.f32.mrb[18].mxu0 }
 0x4c6   : > { %v5649_v54 = vpack.i.bf16 %v1687_v53, %v1684_v51  ;;  %v5212_v55 = vpop.f32.mrb[19].mxu0 }
 0x4c8   : > { %5650 = vrot.lane.b32.xlu1 %v5649_v54, %s6942_s10 }
 0x52a   : > { %v5641_v56 = vpop.permute.xlu1 %5640 }
 0x52b   : > { %v5643_v58 = vunpack.i.h.bf16 %v5641_v56  ;;  %v5642_v59 = vunpack.i.l.bf16 %v5641_v56 }
 0x52d   : > { %v1716_v63 = vsel %vm1168_vm0, %v1328_v28, %v5643_v58  ;;  %v1715_v0 = vsel %vm1168_vm0, %v1325_v24, %v5642_v59  ;;  %v5691_v28 = vld [vmem:[%s6047_s19 + $0x10] ss:$8 sps:$4 sm:$0xff]  }
 0x532   : > { %v5646_v57 = vpop.permute.xlu0 %5645 }
 0x533   : > { %v5648_v60 = vunpack.i.h.bf16 %v5646_v57  ;;  %v5647_v61 = vunpack.i.l.bf16 %v5646_v57 }
 0x535   : > { %v1719_v4 = vsel %vm1717_vm4, %v1716_v63, %v5648_v60  ;;  %v1718_v5 = vsel %vm1717_vm4, %v1715_v0, %v5647_v61 }
 0x53a   : > { %v5651_v62 = vpop.permute.xlu1 %5650 }
 0x53b   : > { %v5653_v1 = vunpack.i.h.bf16 %v5651_v62  ;;  %v5652_v3 = vunpack.i.l.bf16 %v5651_v62 }
 0x53d   : > { %v1721_v7 = vsel %vm1720_vm5, %v1718_v5, %v5652_v3  ;;  %v1722_v10 = vsel %vm1720_vm5, %v1719_v4, %v5653_v1 }
 0x53e   : > { %v1723_v12 = vpack.c.bf16 %v1722_v10, %v1721_v7 }
 0x540   : > { %5230 = vmatmul.mubr.bf16.vlgmr.msra.gmra.mrb[16].mxu1 %v1723_v12 }
 0x541   : > { %5255 = vmatprep.mubr.msk.bf16.mxu1 %vm5977_vm1, %v5976_v6 }
 0x613   : > { %v1829_v16 = vpop.f32.mrb[16].mxu1 }
 0x614   : > { %v1830_v17 = vadd.f32 %v4913_v15, %v1829_v16  ;;  %v5231_v18 = vpop.f32.mrb[17].mxu1 }
 0x615   : > { %v1832_v19 = vpop.f32.mrb[18].mxu1 }
 0x616   : > { %v1833_v20 = vadd.f32 %v4913_v15, %v1832_v19  ;;  %v5232_v21 = vpop.f32.mrb[19].mxu1  ;;  %v1836_v27 = vmax.f32 %v1830_v17, 0.0 }
 0x618   : > { %v1837_v22 = vmax.f32 %v1833_v20, 0.0 }
 0x61a   : > { %v1838_v24 = vpack.c.bf16 %v1837_v22, %v1836_v27 }
 0x61c   : > { %5238 = vmatmul.mubr.msk.bf16.vlgmr.msra.gmra.mrb[20].mxu0 %vm1168_vm0, %v1838_v24 }
 0x61d   : > { %1947 = vmatpush1.bf16.msra.mxu0 %v5688_v23  ;;  %1978 = vmatprep.mubr.bf16.mxu0 %v5975_v2 }
 0x61e   : > { %1948 = vmatprep.subr.bf16.mxu0 %v5693_v26 }
 0x621   : > { %1949 = vmatpush1.bf16.msra.mxu0 %v5691_v28 }
 0x622   : > { %5241 = vmatprep.subr.bf16.mxu0 %v5976_v6 }
 0x6ef   : > { %v1899_v29 = vpop.f32.mrb[20].mxu0 }
 0x6f0   : > { %v5239_v31 = vpop.f32.mrb[21].mxu0  ;;  %v1900_v33 = vadd.f32 %v4922_v30, %v1899_v29 }
 0x6f1   : > { %v1902_v32 = vpop.f32.mrb[22].mxu0 }
 0x6f2   : > { %v1903_v35 = vadd.f32 %v4922_v30, %v1902_v32  ;;  %v5240_v38 = vpop.f32.mrb[23].mxu0 }
 0x6f4   : > { %v1906_v39 = vpack.c.bf16 %v1903_v35, %v1900_v33 }
 0x6f6   : > { %4930 = vmatmul.mubr.msk.bf16.vlgmr.msra.gmra.mrb[24].mxu0 %vm1168_vm0, %v1906_v39 }
 0x6f7   : > { %5243 = vmatprep.mubr.msk.bf16.mxu0 %vm5977_vm1, %v5976_v6 }
 0x7c9   : > { %v1980_v42 = vpop.f32.mrb[24].mxu0 }
 0x7ca   : > { %v1982_v44 = vpop.f32.mrb[25].mxu0  ;;  %v1981_v46 = vadd.f32 %v1980_v42, %v1916_v41 }
 0x7cb   : > { %v1984_v45 = vpop.f32.mrb[26].mxu0  ;;  %v1983_v49 = vadd.f32 %v1982_v44, %v1920_v43 }
 0x7cc   : > { %v1985_v47 = vadd.f32 %v1984_v45, %v1916_v41  ;;  %v1986_v48 = vpop.f32.mrb[27].mxu0 }
 0x7cd   : > { %v1987_v50 = vadd.f32 %v1986_v48, %v1920_v43 }
 0x7ce   : > { %v1989_v51 = vpack.c.bf16 %v1985_v47, %v1981_v46 }
 0x7cf   : > { %v1990_v52 = vpack.c.bf16 %v1987_v50, %v1983_v49 }
 0x7d0   : > { %2109 = vrot.lane.b32.xlu1 %v1989_v51, %s6942_s10  ;;  %v1995_v53 = vsel %vm1168_vm0, %v1989_v51, 0 }
 0x7d1   : > { %2106 = vrot.lane.b32.xlu0 %v1990_v52, %s6942_s10  ;;  %5242 = vmatpush3.bf16.xpose.msra.mxu0 %v1995_v53 }
 0x7d2   : > { %5247 = vmatprep.subr.bf16.mxu0 %v5976_v6 }
 0x7d4   : > { %2228 = vrot.lane.b32.xlu1 %v1989_v51, %s6900_s7 }
 0x7d5   : > { %2226 = vrot.lane.b32.xlu0 %v1990_v52, %s6900_s7 }
 0x7d8   : > { %2347 = vrot.lane.b32.xlu1 %v1989_v51, %s6898_s1  ;;  %5244 = vmatmul.mubr.msk.bf16.vlgmr.msra.gmra.mrb[28].mxu0 %vm1168_vm0, %v1990_v52 }
 0x7d9   : > { %2345 = vrot.lane.b32.xlu0 %v1990_v52, %s6898_s1  ;;  %5248 = vmatpush3.bf16.msra.mxu0 %v1989_v51 }
 0x7da   : > { %5249 = vmatprep.mubr.msk.bf16.mxu0 %vm5977_vm1, %v5976_v6  ;;  %5259 = vmatprep.subr.bf16.mxu0 %v5976_v6 }
 0x842   : > { %v6410_v54 = vpop.permute.xlu1 %2109 }
 0x843   : > { %v2115_v55 = vsel %vm1168_vm0, %v6410_v54, 0  ;;  %v2107_v57 = vpop.permute.xlu0 %2106 }
 0x844   : > { %5254 = vmatpush3.bf16.xpose.msra.mxu1 %v2115_v55 }
 0x845   : > { %5265 = vmatprep.subr.bf16.mxu1 %v5976_v6 }
 0x846   : > { %v6415_v56 = vpop.permute.xlu1 %2228 }
 0x847   : > { %v2234_v58 = vsel %vm1168_vm0, %v6415_v56, 0  ;;  %v2227_v60 = vpop.permute.xlu0 %2226 }
 0x84a   : > { %v6423_v59 = vpop.permute.xlu1 %2347 }
 0x84b   : > { %5256 = vmatmul.mubr.msk.bf16.vlgmr.msra.gmra.mrb[20].mxu1 %vm1168_vm0, %v2107_v57  ;;  %v2353_v61 = vsel %vm1168_vm0, %v6423_v59, 0  ;;  %v2346_v62 = vpop.permute.xlu0 %2345 }
 0x84c   : > { %5266 = vmatpush3.bf16.xpose.msra.mxu1 %v2234_v58  ;;  %5267 = vmatprep.mubr.msk.bf16.mxu1 %vm5977_vm1, %v5976_v6 }
 0x84d   : > { %5277 = vmatprep.subr.bf16.mxu1 %v5976_v6 }
 0x853   : > { %5268 = vmatmul.mubr.msk.bf16.vlgmr.msra.gmra.mrb[24].mxu1 %vm1168_vm0, %v2227_v60 }
 0x854   : > { %5278 = vmatpush3.bf16.xpose.msra.mxu1 %v2353_v61  ;;  %5279 = vmatprep.mubr.msk.bf16.mxu1 %vm5977_vm1, %v5976_v6 }
 0x855   : > { %5289 = vmatprep.subr.bf16.mxu1 %v5976_v6 }
 0x85b   : > { %5280 = vmatmul.mubr.msk.bf16.vlgmr.msra.gmra.mrb[28].mxu1 %vm1168_vm0, %v2346_v62 }
 0x85c   : > { %5305 = vmatprep.mubr.msk.bf16.mxu1 %vm5977_vm1, %v5976_v6 }
 0x8ab   : > { %v2031_v63 = vpop.f32.mrb[28].mxu0 }
 0x8ac   : > { %v2032_v0 = vadd.f32 %v2031_v63, %v6309_v37  ;;  %v5245_v1 = vpop.f32.mrb[29].mxu0 }
 0x8ad   : > { %v2034_v3 = vpop.f32.mrb[30].mxu0 }
 0x8ae   : > { %v2035_v4 = vadd.f32 %v2034_v3, %v6309_v37  ;;  %v5246_v5 = vpop.f32.mrb[31].mxu0  ;;  %v2038_v7 = vsel %vm1264_vm3, %v2032_v0, -inf }
 0x8af   : > { %2039 = vmax.xlane.f32.xlu1 %v2038_v7 }
 0x8b0   : > { %v2041_v10 = vsel %vm1264_vm3, %v2035_v4, -inf }
 0x8b1   : > { %2042 = vmax.xlane.f32.xlu0 %v2041_v10 }
 0x91e   : > { %v2151_v12 = vpop.f32.mrb[20].mxu1 }
 0x91f   : > { %v2152_v13 = vadd.f32 %v2151_v12, %v6309_v37  ;;  %v5257_v25 = vpop.f32.mrb[21].mxu1 }
 0x920   : > { %v2154_v14 = vpop.f32.mrb[22].mxu1 }
 0x921   : > { %v2155_v15 = vadd.f32 %v2154_v14, %v6309_v37  ;;  %v5258_v16 = vpop.f32.mrb[23].mxu1  ;;  %v2158_v17 = vsel %vm1264_vm3, %v2152_v13, -inf }
 0x922   : > { %2159 = vmax.xlane.f32.xlu0 %v2158_v17 }
 0x923   : > { %v2161_v18 = vsel %vm1264_vm3, %v2155_v15, -inf }
 0x924   : > { %2162 = vmax.xlane.f32.xlu1 %v2161_v18 }
 0x926   : > { %v2270_v19 = vpop.f32.mrb[24].mxu1 }
 0x927   : > { %v2271_v20 = vadd.f32 %v2270_v19, %v6309_v37  ;;  %v5269_v21 = vpop.f32.mrb[25].mxu1 }
 0x928   : > { %v2273_v27 = vpop.f32.mrb[26].mxu1 }
 0x929   : > { %v2274_v22 = vadd.f32 %v2273_v27, %v6309_v37  ;;  %v5270_v23 = vpop.f32.mrb[27].mxu1  ;;  %v2277_v24 = vsel %vm1264_vm3, %v2271_v20, -inf }
 0x92a   : > { %2278 = vmax.xlane.f32.xlu0 %v2277_v24 }
 0x92b   : > { %v2280_v26 = vsel %vm1264_vm3, %v2274_v22, -inf }
 0x92c   : > { %2281 = vmax.xlane.f32.xlu1 %v2280_v26 }
 0x92e   : > { %v2389_v28 = vpop.f32.mrb[28].mxu1 }
 0x92f   : > { %v2390_v30 = vadd.f32 %v2389_v28, %v6309_v37  ;;  %v5281_v29 = vpop.f32.mrb[29].mxu1 }
 0x930   : > { %v2392_v31 = vpop.f32.mrb[30].mxu1 }
 0x931   : > { %v2393_v32 = vadd.f32 %v2392_v31, %v6309_v37  ;;  %v5282_v33 = vpop.f32.mrb[31].mxu1  ;;  %v2396_v35 = vsel %vm1264_vm3, %v2390_v30, -inf }
 0x932   : > { %2397 = vmax.xlane.f32.xlu0 %v2396_v35 }
 0x933   : > { %v2399_v38 = vsel %vm1264_vm3, %v2393_v32, -inf }
 0x934   : > { %2400 = vmax.xlane.f32.xlu1 %v2399_v38 }
 0x93c   : > { %v2040_v39 = vpop.xlane.xlu1 %2039 }
 0x93d   : > { %v2044_v40 = vsub.f32 %v2032_v0, %v2040_v39 }
 0x93e   : > { %v2043_v41 = vpop.xlane.xlu0 %2042 }
 0x93f   : > { %v2046_v42 = vmul.f32 1.442695, %v2044_v40  ;;  %v2045_v43 = vsub.f32 %v2035_v4, %v2043_v41 }
 0x941   : > { %5774 = vpow2.f32 %v2046_v42  ;;  %v2048_v44 = vmul.f32 1.442695, %v2045_v43 }
 0x943   : > { %5776 = vpow2.f32 %v2048_v44 }
 0x94b   : > { %v5775_v45 = vpop.eup %5774 }
 0x94c   : > { %v2050_v46 = vsel %vm1264_vm3, %v5775_v45, 0.0 }
 0x94d   : > { %v5777_v47 = vpop.eup %5776  ;;  %2051 = vadd.xlane.f32.xlu0 %v2050_v46 }
 0x94e   : > { %v2053_v48 = vsel %vm1264_vm3, %v5777_v47, 0.0 }
 0x94f   : > { %2054 = vadd.xlane.f32.xlu1 %v2053_v48 }
 0x9af   : > { %v2160_v49 = vpop.xlane.xlu0 %2159 }
 0x9b0   : > { %v2164_v50 = vsub.f32 %v2152_v13, %v2160_v49 }
 0x9b1   : > { %v2163_v51 = vpop.xlane.xlu1 %2162 }
 0x9b2   : > { %v2166_v52 = vmul.f32 1.442695, %v2164_v50  ;;  %v2165_v53 = vsub.f32 %v2155_v15, %v2163_v51 }
 0x9b4   : > { %5778 = vpow2.f32 %v2166_v52  ;;  %v2168_v55 = vmul.f32 1.442695, %v2165_v53 }
 0x9b6   : > { %5780 = vpow2.f32 %v2168_v55 }
 0x9b7   : > { %v2279_v57 = vpop.xlane.xlu0 %2278 }
 0x9b8   : > { %v2283_v58 = vsub.f32 %v2271_v20, %v2279_v57  ;;  %v5694_v57 = vld [vmem:[%s6057_s30] sm:$0xff]  }
 0x9b9   : > { %v2282_v60 = vpop.xlane.xlu1 %2281  ;;  %5290 = vmatpush3.bf16.msra.mxu1 %v5694_v57 }
 0x9ba   : > { %v2285_v61 = vmul.f32 1.442695, %v2283_v58  ;;  %v2284_v62 = vsub.f32 %v2274_v22, %v2282_v60  ;;  %v5695_v58 = vld [vmem:[%s6057_s30 + $0x8] sm:$0xff]   ;;  %5291 = vmatprep.subr.bf16.mxu1 %v5976_v6  ;;  %v5696_v60 = vld [vmem:[%s6057_s30 + $0x10] sm:$0xff]  }
 0x9bc   : > { %5782 = vpow2.f32 %v2285_v61  ;;  %v2287_v63 = vmul.f32 1.442695, %v2284_v62  ;;  %v5697_v61 = vld [vmem:[%s6057_s30 + $0x18] sm:$0xff]   ;;  %v5698_v62 = vld [vmem:[%s6057_s30 + $0x20] sm:$0xff]  }
 0x9bd   : > { %5292 = vmatpush3.bf16.msra.mxu1 %v5695_v58 }
 0x9be   : > { %v5779_v0 = vpop.eup %5778  ;;  %5784 = vpow2.f32 %v2287_v63  ;;  %5293 = vmatprep.subr.bf16.mxu1 %v5976_v6 }
 0x9bf   : > { %v2398_v1 = vpop.xlane.xlu0 %2397  ;;  %v2170_v3 = vsel %vm1264_vm3, %v5779_v0, 0.0 }
 0x9c0   : > { %v5781_v4 = vpop.eup %5780  ;;  %v2402_v5 = vsub.f32 %v2390_v30, %v2398_v1  ;;  %2171 = vadd.xlane.f32.xlu0 %v2170_v3  ;;  %v5699_v3 = vld [vmem:[%s6057_s30 + $0x28] sm:$0xff]  }
 0x9c1   : > { %v2401_v7 = vpop.xlane.xlu1 %2400  ;;  %v2173_v10 = vsel %vm1264_vm3, %v5781_v4, 0.0  ;;  %5294 = vmatpush3.bf16.msra.mxu1 %v5696_v60 }
 0x9c2   : > { %v2404_v12 = vmul.f32 1.442695, %v2402_v5  ;;  %v2403_v13 = vsub.f32 %v2393_v32, %v2401_v7  ;;  %2174 = vadd.xlane.f32.xlu1 %v2173_v10  ;;  %5295 = vmatprep.subr.bf16.mxu1 %v5976_v6  ;;  %v5700_v7 = vld [vmem:[%s6057_s30 + $0x30] sm:$0xff]  }
 0x9c4   : > { %5786 = vpow2.f32 %v2404_v12  ;;  %v2406_v25 = vmul.f32 1.442695, %v2403_v13 }
 0x9c5   : > { %5296 = vmatpush3.bf16.msra.mxu1 %v5697_v61 }
 0x9c6   : > { %v5783_v14 = vpop.eup %5782  ;;  %5788 = vpow2.f32 %v2406_v25  ;;  %5297 = vmatprep.subr.bf16.mxu1 %v5976_v6  ;;  %v5701_v25 = vld [vmem:[%s6057_s30 + $0x38] sm:$0xff]  }
 0x9c7   : > { %v2289_v15 = vsel %vm1264_vm3, %v5783_v14, 0.0 }
 0x9c8   : > { %v5785_v16 = vpop.eup %5784  ;;  %2290 = vadd.xlane.f32.xlu0 %v2289_v15 }
 0x9c9   : > { %v2292_v17 = vsel %vm1264_vm3, %v5785_v16, 0.0  ;;  %5298 = vmatpush3.bf16.msra.mxu1 %v5698_v62  ;;  %v2682_v62 = vld [vmem:[%s6947_s5] sm:$0x3]  ;;  %s6948_s5 = smov 64  }
 0x9ca   : > { %2293 = vadd.xlane.f32.xlu1 %v2292_v17  ;;  %5299 = vmatprep.subr.bf16.mxu1 %v5976_v6 }
 0x9cd   : > { %5300 = vmatpush3.bf16.msra.mxu1 %v5699_v3 }
 0x9ce   : > { %v5787_v18 = vpop.eup %5786  ;;  %5301 = vmatprep.subr.bf16.mxu1 %v5976_v6 }
 0x9cf   : > { %v2408_v19 = vsel %vm1264_vm3, %v5787_v18, 0.0 }
 0x9d0   : > { %v5789_v20 = vpop.eup %5788  ;;  %2409 = vadd.xlane.f32.xlu0 %v2408_v19 }
 0x9d1   : > { %v2411_v21 = vsel %vm1264_vm3, %v5789_v20, 0.0  ;;  %5302 = vmatpush3.bf16.msra.mxu1 %v5700_v7 }
 0x9d2   : > { %2412 = vadd.xlane.f32.xlu1 %v2411_v21  ;;  %5303 = vmatprep.subr.bf16.mxu1 %v5976_v6 }
 0x9d5   : > { %5304 = vmatpush3.bf16.msra.mxu1 %v5701_v25 }
 0x9d6   : > { %5329 = vmatprep.subr.bf16.mxu1 %v5976_v6 }
 0x9da   : > { %v2052_v27 = vpop.xlane.xlu0 %2051 }
 0x9db   : > { %5790 = vrcp.f32 %v2052_v27 }
 0x9dc   : > { %v2055_v22 = vpop.xlane.xlu1 %2054 }
 0x9dd   : > { %5792 = vrcp.f32 %v2055_v22 }
 0x9e5   : > { %v5791_v23 = vpop.eup %5790 }
 0x9e6   : > { %v2058_v26 = vmul.f32 %v5791_v23, %v5775_v45 }
 0x9e7   : > { %v5793_v24 = vpop.eup %5792 }
 0x9e8   : > { %v2059_v28 = vmul.f32 %v5793_v24, %v5777_v47 }
 0x9ea   : > { %v2060_v30 = vpack.c.bf16 %v2059_v28, %v2058_v26 }
 0x9ec   : > { %5250 = vmatmul.mubr.msk.bf16.vlgmr.msra.gmra.mrb[32].mxu0 %vm1264_vm3, %v2060_v30 }
 0x9ed   : > { %5260 = vmatpush3.bf16.msra.mxu0 %v6410_v54  ;;  %5261 = vmatprep.mubr.msk.bf16.mxu0 %vm5977_vm1, %v5976_v6 }
 0x9ee   : > { %5271 = vmatprep.subr.bf16.mxu0 %v5976_v6 }
 0xa4d   : > { %v2172_v29 = vpop.xlane.xlu0 %2171 }
 0xa4e   : > { %5794 = vrcp.f32 %v2172_v29 }
 0xa4f   : > { %v2175_v31 = vpop.xlane.xlu1 %2174 }
 0xa50   : > { %5796 = vrcp.f32 %v2175_v31 }
 0xa55   : > { %v2291_v32 = vpop.xlane.xlu0 %2290 }
 0xa56   : > { %5798 = vrcp.f32 %v2291_v32 }
 0xa57   : > { %v2294_v33 = vpop.xlane.xlu1 %2293 }
 0xa58   : > { %v5795_v35 = vpop.eup %5794  ;;  %5800 = vrcp.f32 %v2294_v33 }
 0xa59   : > { %v2178_v39 = vmul.f32 %v5795_v35, %v5779_v0 }
 0xa5a   : > { %v5797_v38 = vpop.eup %5796 }
 0xa5b   : > { %v2179_v40 = vmul.f32 %v5797_v38, %v5781_v4 }
 0xa5d   : > { %v2410_v41 = vpop.xlane.xlu0 %2409  ;;  %v2180_v42 = vpack.c.bf16 %v2179_v40, %v2178_v39 }
 0xa5e   : > { %5802 = vrcp.f32 %v2410_v41  ;;  %v5702_v41 = vld [vmem:[%s6936_s12] sm:$0xff]  }
 0xa5f   : > { %5262 = vmatmul.mubr.msk.bf16.vlgmr.msra.gmra.mrb[36].mxu0 %vm1264_vm3, %v2180_v42  ;;  %v2413_v54 = vpop.xlane.xlu1 %2412  ;;  %v5703_v42 = vld [vmem:[%s6936_s12 + $0x8] sm:$0xff]   ;;  %s6954_s12 = sld [smem:[#allocation20_spill]] }
 0xa60   : > { %v5799_v43 = vpop.eup %5798  ;;  %5272 = vmatpush3.bf16.msra.mxu0 %v6415_v56  ;;  %5804 = vrcp.f32 %v2413_v54  ;;  %5273 = vmatprep.mubr.msk.bf16.mxu0 %vm5977_vm1, %v5976_v6  ;;  %v5706_v54 = vld [vmem:[%s6077_s27 + $0x4] ss:$8 sps:$4 sm:$0xff]  }
 0xa61   : > { %5283 = vmatprep.subr.bf16.mxu0 %v5976_v6  ;;  %v2297_v45 = vmul.f32 %v5799_v43, %v5783_v14  ;;  %v4939_v43 = vld [vmem:[%s6944_s6] ss:$0 sm:$0xff] }
 0xa62   : > { %v5801_v44 = vpop.eup %5800 }
 0xa63   : > { %v2298_v46 = vmul.f32 %v5801_v44, %v5785_v16 }
 0xa65   : > { %v2299_v47 = vpack.c.bf16 %v2298_v46, %v2297_v45 }
 0xa67   : > { %5274 = vmatmul.mubr.msk.bf16.vlgmr.msra.gmra.mrb[40].mxu0 %vm1264_vm3, %v2299_v47 }
 0xa68   : > { %v5803_v48 = vpop.eup %5802  ;;  %5284 = vmatpush3.bf16.msra.mxu0 %v6423_v59  ;;  %5285 = vmatprep.mubr.msk.bf16.mxu0 %vm5977_vm1, %v5976_v6 }
 0xa69   : > { %5309 = vmatprep.subr.bf16.mxu0 %v5976_v6  ;;  %v2416_v49 = vmul.f32 %v5803_v48, %v5787_v18 }
 0xa6a   : > { %v5805_v56 = vpop.eup %5804 }
 0xa6b   : > { %v2417_v50 = vmul.f32 %v5805_v56, %v5789_v20 }
 0xa6d   : > { %v2418_v51 = vpack.c.bf16 %v2417_v50, %v2416_v49 }
 0xa6f   : > { %5286 = vmatmul.mubr.msk.bf16.vlgmr.msra.gmra.mrb[44].mxu0 %vm1264_vm3, %v2418_v51  ;;  %v5704_v51 = vld [vmem:[%s6077_s27] ss:$8 sps:$4 sm:$0xff]  }
 0xa70   : > { %5313 = vmatprep.mubr.msk.bf16.mxu0 %vm5977_vm1, %v5976_v6  ;;  %5310 = vmatpush3.bf16.msra.mxu0 %v5702_v41 }
 0xa71   : > { %5311 = vmatprep.subr.bf16.mxu0 %v5976_v6 }
 0xa74   : > { %5312 = vmatpush3.bf16.msra.mxu0 %v5703_v42 }
 0xa75   : > { %2717 = vmatprep.subr.bf16.mxu0 %v5706_v54 }
 0xabf   : > { %v2098_v52 = vpop.f32.mrb[32].mxu0 }
 0xac0   : > { %v5251_v53 = vpop.f32.mrb[33].mxu0 }
 0xac1   : > { %v2101_v59 = vpop.f32.mrb[34].mxu0  ;;  %v5709_v53 = vld [vmem:[%s6077_s27 + $0x14] ss:$8 sps:$4 sm:$0xff]  }
 0xac2   : > { %v5252_v55 = vpop.f32.mrb[35].mxu0 }
 0xb32   : > { %v2219_v63 = vpop.f32.mrb[36].mxu0 }
 0xb33   : > { %v5263_v0 = vpop.f32.mrb[37].mxu0 }
 0xb34   : > { %v2222_v1 = vpop.f32.mrb[38].mxu0 }
 0xb35   : > { %v5654_v4 = vpack.i.bf16 %v2222_v1, %v2219_v63  ;;  %v5264_v5 = vpop.f32.mrb[39].mxu0 }
 0xb36   : > { %v2691_v5 = vrot.slane %v2682_v62, %v6265_v11 }
 0xb37   : > { %5655 = vrot.lane.b32.xlu0 %v5654_v4, %s6898_s1  ;;  %s6945_s1 = sld [smem:[#allocation9_spill]]  ;;  %v2687_v4 = vrot.slane %v2682_v62, %v6261_v9 }
 0xb3a   : > { %v2338_v10 = vpop.f32.mrb[40].mxu0 }
 0xb3b   : > { %v5275_v12 = vpop.f32.mrb[41].mxu0 }
 0xb3c   : > { %v2341_v13 = vpop.f32.mrb[42].mxu0 }
 0xb3d   : > { %v5659_v14 = vpack.i.bf16 %v2341_v13, %v2338_v10  ;;  %v5276_v15 = vpop.f32.mrb[43].mxu0  ;;  %s1109_s6 = scalar_lea.vmem %s6945_s1, %s4897_s3  ;;  %s6949_s3 = smov 32  }
 0xb3e   : > { %v1126_v55 = vld [vmem:[%s1109_s6] sm:$0xf]  ;;  %s6566_s6 = sld [smem:[#allocation2 + $0x1]]  ;;  %s6951_s1 = sld [smem:[#allocation19_spill]] }
 0xb3f   : > { %5660 = vrot.lane.b32.xlu1 %v5659_v14, %s6900_s7  ;;  %s6946_s7 = sld [smem:[#allocation15_spill]] }
 0xb42   : > { %v2457_v16 = vpop.f32.mrb[44].mxu0 }
 0xb43   : > { %v5287_v17 = vpop.f32.mrb[45].mxu0 }
 0xb44   : > { %v2460_v18 = vpop.f32.mrb[46].mxu0 }
 0xb45   : > { %v5664_v19 = vpack.i.bf16 %v2460_v18, %v2457_v16  ;;  %v5288_v20 = vpop.f32.mrb[47].mxu0  ;;  %v4948_v57 = vld [vmem:[%s6946_s7] ss:$0 sm:$0xff]  ;;  %s6950_s7 = sld [smem:[#allocation17_spill]] }
 0xb47   : > { %5665 = vrot.lane.b32.xlu1 %v5664_v19, %s6942_s10 }
 0xba9   : > { %v5656_v21 = vpop.permute.xlu0 %5655 }
 0xbaa   : > { %v5658_v22 = vunpack.i.h.bf16 %v5656_v21  ;;  %v5657_v23 = vunpack.i.l.bf16 %v5656_v21 }
 0xbac   : > { %v2489_v30 = vsel %vm1168_vm0, %v2101_v59, %v5658_v22  ;;  %v2488_v29 = vsel %vm1168_vm0, %v2098_v52, %v5657_v23  ;;  %v5707_v59 = vld [vmem:[%s6077_s27 + $0x10] ss:$8 sps:$4 sm:$0xff]  }
 0xbb1   : > { %v5661_v27 = vpop.permute.xlu1 %5660 }
 0xbb2   : > { %v5663_v24 = vunpack.i.h.bf16 %v5661_v27  ;;  %v5662_v26 = vunpack.i.l.bf16 %v5661_v27 }
 0xbb4   : > { %v2491_v33 = vsel %vm1717_vm4, %v2489_v30, %v5663_v24  ;;  %v2490_v35 = vsel %vm1717_vm4, %v2488_v29, %v5662_v26  ;;  %v1121_v30 = vstv %s6566_s6 }
 0xbb5   : > { %vm1122_vm7 = vcmp.lt.s32.totalorder %v6305_v34, %v1121_v30  ;;  %vm4662_vm9 = vcmp.lt.s32.totalorder %v6258_v8, %v1121_v30 }
 0xbb6   : > { %v6573_v29 = vsel %vm1122_vm7, 0.0, %v5981_v36 }
 0xbb9   : > { %v5666_v28 = vpop.permute.xlu1 %5665 }
 0xbba   : > { %v5668_v31 = vunpack.i.h.bf16 %v5666_v28  ;;  %v5667_v32 = vunpack.i.l.bf16 %v5666_v28 }
 0xbbc   : > { %v2492_v38 = vsel %vm1720_vm5, %v2490_v35, %v5667_v32  ;;  %v2493_v39 = vsel %vm1720_vm5, %v2491_v33, %v5668_v31 }
 0xbbd   : > { %v2494_v40 = vpack.c.bf16 %v2493_v39, %v2492_v38 }
 0xbbf   : > { %5306 = vmatmul.mubr.bf16.vlgmr.msra.gmra.mrb[32].mxu1 %v2494_v40 }
 0xbc0   : > { %5331 = vmatprep.mubr.msk.bf16.mxu1 %vm5977_vm1, %v5976_v6 }
 0xc92   : > { %v2600_v44 = vpop.f32.mrb[32].mxu1 }
 0xc93   : > { %v2601_v45 = vadd.f32 %v4939_v43, %v2600_v44  ;;  %v5307_v46 = vpop.f32.mrb[33].mxu1 }
 0xc94   : > { %v2603_v47 = vpop.f32.mrb[34].mxu1 }
 0xc95   : > { %v2604_v48 = vadd.f32 %v4939_v43, %v2603_v47  ;;  %v5308_v56 = vpop.f32.mrb[35].mxu1  ;;  %v2607_v49 = vmax.f32 %v2601_v45, 0.0 }
 0xc97   : > { %v2608_v50 = vmax.f32 %v2604_v48, 0.0 }
 0xc99   : > { %v2609_v52 = vpack.c.bf16 %v2608_v50, %v2607_v49 }
 0xc9b   : > { %5314 = vmatmul.mubr.msk.bf16.vlgmr.msra.gmra.mrb[48].mxu0 %vm1168_vm0, %v2609_v52 }
 0xc9c   : > { %2718 = vmatpush1.bf16.msra.mxu0 %v5704_v51  ;;  %2749 = vmatprep.mubr.bf16.mxu0 %v5975_v2 }
 0xc9d   : > { %2719 = vmatprep.subr.bf16.mxu0 %v5709_v53 }
 0xca0   : > { %2720 = vmatpush1.bf16.msra.mxu0 %v5707_v59 }
 0xca1   : > { %5317 = vmatprep.subr.bf16.mxu0 %v5976_v6 }
 0xca3   : > { %4956 = vmatmul.mubr.msk.bf16.vlgmr.msra.gmra.mrb[52].mxu0 %vm1168_vm0, %v1126_v55 }
 0xca4   : > { %5319 = vmatprep.mubr.msk.bf16.mxu0 %vm5977_vm1, %v5976_v6 }
 0xd6e   : > { %v2670_v58 = vpop.f32.mrb[48].mxu0 }
 0xd6f   : > { %v5315_v60 = vpop.f32.mrb[49].mxu0  ;;  %v6521_v63 = vadd.f32 %v4948_v57, %v2670_v58 }
 0xd70   : > { %v2673_v61 = vpop.f32.mrb[50].mxu0 }
 0xd71   : > { %v6523_v0 = vadd.f32 %v4948_v57, %v2673_v61  ;;  %v5316_v1 = vpop.f32.mrb[51].mxu0 }
 0xd73   : > { %v2677_v3 = vpack.c.bf16 %v6523_v0, %v6521_v63 }
 0xd76   : > { %v2751_v7 = vpop.f32.mrb[52].mxu0 }
 0xd77   : > { %v2752_v10 = vadd.f32 %v2751_v7, %v2687_v4  ;;  %v2753_v12 = vpop.f32.mrb[53].mxu0 }
 0xd78   : > { %v2754_v13 = vadd.f32 %v2753_v12, %v2691_v5  ;;  %v2755_v25 = vpop.f32.mrb[54].mxu0 }
 0xd79   : > { %v2758_v14 = vpack.c.bf16 %v2752_v10, %v2752_v10  ;;  %v2756_v15 = vpop.f32.mrb[55].mxu0 }
 0xd7a   : > { %v2759_v16 = vpack.c.bf16 %v2754_v13, %v2754_v13 }
 0xd7b   : > { %2869 = vrot.lane.b32.xlu0 %v2758_v14, %s6942_s10  ;;  %v2764_v17 = vsel %vm1168_vm0, %v2758_v14, 0  ;;  %v2823_v18 = vsel %vm2822_vm6, %v2758_v14, 0 }
 0xd7c   : > { %2866 = vrot.lane.b32.xlu1 %v2759_v16, %s6942_s10  ;;  %5318 = vmatpush3.bf16.xpose.msra.mxu0 %v2764_v17 }
 0xd7d   : > { %5323 = vmatprep.subr.bf16.mxu0 %v5976_v6 }
 0xd7f   : > { %2976 = vrot.lane.b32.xlu0 %v2758_v14, %s6948_s5 }
 0xd80   : > { %2974 = vrot.lane.b32.xlu1 %v2759_v16, %s6948_s5 }
 0xd83   : > { %3083 = vrot.lane.b32.xlu0 %v2758_v14, %s6949_s3  ;;  %5320 = vmatmul.mubr.msk.bf16.vlgmr.msra.gmra.mrb[56].mxu0 %vm1168_vm0, %v2759_v16 }
 0xd84   : > { %3081 = vrot.lane.b32.xlu1 %v2759_v16, %s6949_s3  ;;  %5324 = vmatpush3.bf16.msra.mxu0 %v2823_v18 }
 0xd85   : > { %5325 = vmatprep.mubr.msk.bf16.mxu0 %vm5977_vm1, %v5976_v6  ;;  %5335 = vmatprep.subr.bf16.mxu0 %v5976_v6 }
 0xded   : > { %v6542_v19 = vpop.permute.xlu0 %2869 }
 0xdee   : > { %v2875_v20 = vsel %vm1168_vm0, %v6542_v19, 0  ;;  %v2867_v27 = vpop.permute.xlu1 %2866 }
 0xdef   : > { %5330 = vmatpush3.bf16.xpose.msra.mxu1 %v2875_v20 }
 0xdf0   : > { %5341 = vmatprep.subr.bf16.mxu1 %v5976_v6 }
 0xdf1   : > { %v6547_v21 = vpop.permute.xlu0 %2976 }
 0xdf2   : > { %v2982_v22 = vsel %vm1168_vm0, %v6547_v21, 0  ;;  %v2975_v24 = vpop.permute.xlu1 %2974 }
 0xdf5   : > { %v6555_v23 = vpop.permute.xlu0 %3083 }
 0xdf6   : > { %5332 = vmatmul.mubr.msk.bf16.vlgmr.msra.gmra.mrb[36].mxu1 %vm1168_vm0, %v2867_v27  ;;  %v3089_v26 = vsel %vm1168_vm0, %v6555_v23, 0  ;;  %v3082_v28 = vpop.permute.xlu1 %3081 }
 0xdf7   : > { %5342 = vmatpush3.bf16.xpose.msra.mxu1 %v2982_v22  ;;  %5343 = vmatprep.mubr.msk.bf16.mxu1 %vm5977_vm1, %v5976_v6 }
 0xdf8   : > { %5353 = vmatprep.subr.bf16.mxu1 %v5976_v6 }
 0xdfe   : > { %5344 = vmatmul.mubr.msk.bf16.vlgmr.msra.gmra.mrb[40].mxu1 %vm1168_vm0, %v2975_v24 }
 0xdff   : > { %5354 = vmatpush3.bf16.xpose.msra.mxu1 %v3089_v26  ;;  %5355 = vmatprep.mubr.msk.bf16.mxu1 %vm5977_vm1, %v5976_v6  ;;  %v2932_v26 = vsel %vm2822_vm6, %v6542_v19, 0 }
 0xe00   : > { %5365 = vmatprep.subr.bf16.mxu1 %v5976_v6 }
 0xe06   : > { %5356 = vmatmul.mubr.msk.bf16.vlgmr.msra.gmra.mrb[44].mxu1 %vm1168_vm0, %v3082_v28 }
 0xe07   : > { %5381 = vmatprep.mubr.msk.bf16.mxu1 %vm5977_vm1, %v5976_v6 }
 0xe56   : > { %v2800_v31 = vpop.f32.mrb[56].mxu0 }
 0xe57   : > { %v2801_v32 = vadd.f32 %v2800_v31, %v6573_v29  ;;  %v5321_v33 = vpop.f32.mrb[57].mxu0 }
 0xe58   : > { %v2803_v35 = vpop.f32.mrb[58].mxu0 }
 0xe59   : > { %v5322_v38 = vpop.f32.mrb[59].mxu0  ;;  %v2807_v39 = vsel %vm2806_vm8, %v2801_v32, -inf }
 0xe5a   : > { %2808 = vmax.xlane.f32.xlu0 %v2807_v39  ;;  %v3039_v38 = vsel %vm2822_vm6, %v6547_v21, 0 }
 0xec9   : > { %v2911_v40 = vpop.f32.mrb[36].mxu1 }
 0xeca   : > { %v2912_v41 = vadd.f32 %v2911_v40, %v6573_v29  ;;  %v5333_v42 = vpop.f32.mrb[37].mxu1 }
 0xecb   : > { %v2914_v54 = vpop.f32.mrb[38].mxu1  ;;  %v3146_v42 = vsel %vm2822_vm6, %v6555_v23, 0 }
 0xecc   : > { %v5334_v43 = vpop.f32.mrb[39].mxu1  ;;  %v2917_v34 = vsel %vm2806_vm8, %v2912_v41, -inf }
 0xecd   : > { %2918 = vmax.xlane.f32.xlu1 %v2917_v34 }
 0xed1   : > { %v3018_v36 = vpop.f32.mrb[40].mxu1 }
 0xed2   : > { %v3019_v44 = vadd.f32 %v3018_v36, %v6573_v29  ;;  %v5345_v45 = vpop.f32.mrb[41].mxu1 }
 0xed3   : > { %v3021_v46 = vpop.f32.mrb[42].mxu1  ;;  %v5710_v45 = vld [vmem:[%s6950_s7] sm:$0xff]  }
 0xed4   : > { %v5346_v47 = vpop.f32.mrb[43].mxu1  ;;  %v3024_v48 = vsel %vm2806_vm8, %v3019_v44, -inf  ;;  %5366 = vmatpush3.bf16.msra.mxu1 %v5710_v45  ;;  %v5711_v46 = vld [vmem:[%s6950_s7 + $0x8] sm:$0xff]  }
 0xed5   : > { %3025 = vmax.xlane.f32.xlu0 %v3024_v48  ;;  %5367 = vmatprep.subr.bf16.mxu1 %v5976_v6  ;;  %v5712_v47 = vld [vmem:[%s6950_s7 + $0x10] sm:$0xff]   ;;  %v5713_v48 = vld [vmem:[%s6950_s7 + $0x18] sm:$0xff]  }
 0xed8   : > { %5368 = vmatpush3.bf16.msra.mxu1 %v5711_v46 }
 0xed9   : > { %v3125_v56 = vpop.f32.mrb[44].mxu1  ;;  %5369 = vmatprep.subr.bf16.mxu1 %v5976_v6 }
 0xeda   : > { %v3126_v49 = vadd.f32 %v3125_v56, %v6573_v29  ;;  %v5357_v50 = vpop.f32.mrb[45].mxu1  ;;  %v5714_v56 = vld [vmem:[%s6950_s7 + $0x20] sm:$0xff]  }
 0xedb   : > { %v3128_v51 = vpop.f32.mrb[46].mxu1  ;;  %v5716_v50 = vld [vmem:[%s6950_s7 + $0x30] sm:$0xff]  }
 0xedc   : > { %v5358_v52 = vpop.f32.mrb[47].mxu1  ;;  %v3131_v53 = vsel %vm2806_vm8, %v3126_v49, -inf  ;;  %5370 = vmatpush3.bf16.msra.mxu1 %v5712_v47 }
 0xedd   : > { %3132 = vmax.xlane.f32.xlu0 %v3131_v53  ;;  %5371 = vmatprep.subr.bf16.mxu1 %v5976_v6 }
 0xee0   : > { %5372 = vmatpush3.bf16.msra.mxu1 %v5713_v48 }
 0xee1   : > { %5373 = vmatprep.subr.bf16.mxu1 %v5976_v6 }
 0xee4   : > { %5374 = vmatpush3.bf16.msra.mxu1 %v5714_v56 }
 0xee5   : > { %5375 = vmatprep.subr.bf16.mxu1 %v5976_v6 }
 0xee7   : > { %v2809_v59 = vpop.xlane.xlu0 %2808 }
 0xee8   : > { %v2810_v55 = vsub.f32 %v2801_v32, %v2809_v59 }
 0xeea   : > { %v2811_v57 = vmul.f32 1.442695, %v2810_v55  ;;  %v5717_v55 = vld [vmem:[%s6950_s7 + $0x38] sm:$0xff]  }
 0xeec   : > { %5806 = vpow2.f32 %v2811_v57 }
 0xef6   : > { %v5807_v58 = vpop.eup %5806 }
 0xef7   : > { %v2813_v60 = vsel %vm2806_vm8, %v5807_v58, 0.0 }
 0xef8   : > { %2814 = vadd.xlane.f32.xlu1 %v2813_v60 }
 0xf5a   : > { %v2919_v61 = vpop.xlane.xlu1 %2918 }
 0xf5b   : > { %v2920_v62 = vsub.f32 %v2912_v41, %v2919_v61 }
 0xf5d   : > { %v2921_v1 = vmul.f32 1.442695, %v2920_v62 }
 0xf5f   : > { %5808 = vpow2.f32 %v2921_v1 }
 0xf62   : > { %v3026_v4 = vpop.xlane.xlu0 %3025 }
 0xf63   : > { %v3027_v5 = vsub.f32 %v3019_v44, %v3026_v4 }
 0xf65   : > { %v3028_v7 = vmul.f32 1.442695, %v3027_v5 }
 0xf67   : > { %5810 = vpow2.f32 %v3028_v7 }
 0xf69   : > { %v5809_v10 = vpop.eup %5808 }
 0xf6a   : > { %v3133_v12 = vpop.xlane.xlu0 %3132  ;;  %v2923_v13 = vsel %vm2806_vm8, %v5809_v10, 0.0 }
 0xf6b   : > { %v3134_v25 = vsub.f32 %v3126_v49, %v3133_v12  ;;  %2924 = vadd.xlane.f32.xlu0 %v2923_v13  ;;  %v5715_v49 = vld [vmem:[%s6950_s7 + $0x28] sm:$0xff]   ;;  %s6953_s7 = sld [smem:[#allocation18_spill]] }
 0xf6c   : > { %5376 = vmatpush3.bf16.msra.mxu1 %v5715_v49 }
 0xf6d   : > { %v3135_v14 = vmul.f32 1.442695, %v3134_v25  ;;  %5377 = vmatprep.subr.bf16.mxu1 %v5976_v6 }
 0xf6f   : > { %5812 = vpow2.f32 %v3135_v14 }
 0xf70   : > { %5378 = vmatpush3.bf16.msra.mxu1 %v5716_v50 }
 0xf71   : > { %v5811_v15 = vpop.eup %5810  ;;  %5379 = vmatprep.subr.bf16.mxu1 %v5976_v6 }
 0xf72   : > { %v3030_v16 = vsel %vm2806_vm8, %v5811_v15, 0.0 }
 0xf73   : > { %3031 = vadd.xlane.f32.xlu1 %v3030_v16  ;;  %v5718_v16 = vld [vmem:[%s6951_s1] sm:$0xff]  }
 0xf74   : > { %5380 = vmatpush3.bf16.msra.mxu1 %v5717_v55 }
 0xf75   : > { %5405 = vmatprep.subr.bf16.mxu1 %v5976_v6 }
 0xf79   : > { %v5813_v17 = vpop.eup %5812 }
 0xf7a   : > { %v3137_v18 = vsel %vm2806_vm8, %v5813_v17, 0.0 }
 0xf7b   : > { %3138 = vadd.xlane.f32.xlu0 %v3137_v18  ;;  %v5722_v18 = vld [vmem:[%s6952_s8 + $0x4] ss:$8 sps:$4 sm:$0xff]  }
 0xf85   : > { %v2815_v20 = vpop.xlane.xlu1 %2814 }
 0xf86   : > { %5814 = vrcp.f32 %v2815_v20  ;;  %v4965_v20 = vld [vmem:[%s6953_s7] ss:$0 sm:$0xff]  ;;  %s6957_s7 = sld [smem:[#allocation25_spill]] }
 0xf90   : > { %v5815_v27 = vpop.eup %5814 }
 0xf91   : > { %v2817_v22 = vmul.f32 %v5815_v27, %v5807_v58 }
 0xf93   : > { %v2818_v24 = vpack.c.bf16 %v2817_v22, %v2817_v22 }
 0xf95   : > { %5326 = vmatmul.mubr.msk.bf16.vlgmr.msra.gmra.mrb[60].mxu0 %vm2806_vm8, %v2818_v24 }
 0xf96   : > { %5336 = vmatpush3.bf16.msra.mxu0 %v2932_v26  ;;  %5337 = vmatprep.mubr.msk.bf16.mxu0 %vm5977_vm1, %v5976_v6 }
 0xf97   : > { %5347 = vmatprep.subr.bf16.mxu0 %v5976_v6 }
 0xff8   : > { %v2925_v28 = vpop.xlane.xlu0 %2924 }
 0xff9   : > { %5816 = vrcp.f32 %v2925_v28 }
0x1000   : > { %v3032_v31 = vpop.xlane.xlu1 %3031 }
0x1001   : > { %5818 = vrcp.f32 %v3032_v31 }
0x1003   : > { %v5817_v32 = vpop.eup %5816 }
0x1004   : > { %v2927_v33 = vmul.f32 %v5817_v32, %v5809_v10  ;;  %v5720_v32 = vld [vmem:[%s6952_s8] ss:$8 sps:$4 sm:$0xff]  }
0x1006   : > { %v2928_v35 = vpack.c.bf16 %v2927_v33, %v2927_v33 }
0x1008   : > { %5338 = vmatmul.mubr.msk.bf16.vlgmr.msra.gmra.mrb[64].mxu0 %vm2806_vm8, %v2928_v35  ;;  %v3139_v19 = vpop.xlane.xlu0 %3138  ;;  %v5725_v35 = vld [vmem:[%s6952_s8 + $0x14] ss:$8 sps:$4 sm:$0xff]  }
0x1009   : > { %5348 = vmatpush3.bf16.msra.mxu0 %v3039_v38  ;;  %5820 = vrcp.f32 %v3139_v19  ;;  %5349 = vmatprep.mubr.msk.bf16.mxu0 %vm5977_vm1, %v5976_v6  ;;  %v5723_v38 = vld [vmem:[%s6952_s8 + $0x10] ss:$8 sps:$4 sm:$0xff]   ;;  %v4974_v19 = vld [vmem:[%s6954_s12] ss:$0 sm:$0xff]  ;;  %s6956_s12 = sld [smem:[#allocation23_spill]]  ;;  %s5987_s8 = smov 24  }
0x100a   : > { %5359 = vmatprep.subr.bf16.mxu0 %v5976_v6 }
0x100b   : > { %v5819_v39 = vpop.eup %5818 }
0x100c   : > { %v3034_v40 = vmul.f32 %v5819_v39, %v5811_v15 }
0x100e   : > { %v3035_v41 = vpack.c.bf16 %v3034_v40, %v3034_v40 }
0x1010   : > { %5350 = vmatmul.mubr.msk.bf16.vlgmr.msra.gmra.mrb[68].mxu0 %vm2806_vm8, %v3035_v41 }
0x1011   : > { %5360 = vmatpush3.bf16.msra.mxu0 %v3146_v42  ;;  %5361 = vmatprep.mubr.msk.bf16.mxu0 %vm5977_vm1, %v5976_v6 }
0x1012   : > { %5385 = vmatprep.subr.bf16.mxu0 %v5976_v6 }
0x1013   : > { %v5821_v21 = vpop.eup %5820 }
0x1014   : > { %v3141_v54 = vmul.f32 %v5821_v21, %v5813_v17  ;;  %v5719_v17 = vld [vmem:[%s6951_s1 + $0x8] sm:$0xff]   ;;  %s6955_s1 = sld [smem:[#allocation22_spill]] }
0x1016   : > { %v3142_v43 = vpack.c.bf16 %v3141_v54, %v3141_v54 }
0x1018   : > { %5362 = vmatmul.mubr.msk.bf16.vlgmr.msra.gmra.mrb[72].mxu0 %vm2806_vm8, %v3142_v43 }
0x1019   : > { %5389 = vmatprep.mubr.msk.bf16.mxu0 %vm5977_vm1, %v5976_v6  ;;  %5386 = vmatpush3.bf16.msra.mxu0 %v5718_v16 }
0x101a   : > { %5387 = vmatprep.subr.bf16.mxu0 %v5976_v6  ;;  %v3388_v43 = vld [vmem:[%s6955_s1] sm:$0x3]  ;;  %s6961_s1 = sld [smem:[#allocation26_spill]] }
0x101d   : > { %5388 = vmatpush3.bf16.msra.mxu0 %v5719_v17 }
0x101e   : > { %3423 = vmatprep.subr.bf16.mxu0 %v5722_v18 }
0x1068   : > { %v2859_v23 = vpop.f32.mrb[60].mxu0 }
0x1069   : > { %v5327_v34 = vpop.f32.mrb[61].mxu0 }
0x106a   : > { %v2862_v36 = vpop.f32.mrb[62].mxu0 }
0x106b   : > { %v5328_v44 = vpop.f32.mrb[63].mxu0 }
0x10db   : > { %v2968_v51 = vpop.f32.mrb[64].mxu0 }
0x10dc   : > { %3189 = vrot.lane.b32.xlu1 %v2968_v51, %s6949_s3  ;;  %v5339_v52 = vpop.f32.mrb[65].mxu0 }
0x10dd   : > { %v2971_v53 = vpop.f32.mrb[66].mxu0 }
0x10de   : > { %v5340_v59 = vpop.f32.mrb[67].mxu0 }
0x10e3   : > { %v3075_v57 = vpop.f32.mrb[68].mxu0 }
0x10e4   : > { %3193 = vrot.lane.b32.xlu0 %v3075_v57, %s6948_s5  ;;  %v5351_v58 = vpop.f32.mrb[69].mxu0 }
0x10e5   : > { %v3078_v60 = vpop.f32.mrb[70].mxu0 }
0x10e6   : > { %v5352_v61 = vpop.f32.mrb[71].mxu0 }
0x10eb   : > { %v3182_v62 = vpop.f32.mrb[72].mxu0 }
0x10ec   : > { %3197 = vrot.lane.b32.xlu1 %v3182_v62, %s6942_s10  ;;  %v5363_v1 = vpop.f32.mrb[73].mxu0 }
0x10ed   : > { %v3185_v4 = vpop.f32.mrb[74].mxu0 }
0x10ee   : > { %v5364_v5 = vpop.f32.mrb[75].mxu0 }
0x114e   : > { %v3190_v7 = vpop.permute.xlu1 %3189 }
0x114f   : > { %v3200_v12 = vsel %vm1168_vm0, %v2859_v23, %v3190_v7  ;;  %v3397_v23 = vrot.slane %v3388_v43, %v6265_v11 }
0x1156   : > { %v3194_v10 = vpop.permute.xlu0 %3193 }
0x1157   : > { %v3201_v13 = vsel %vm1717_vm4, %v3200_v12, %v3194_v10 }
0x115e   : > { %v3198_v25 = vpop.permute.xlu1 %3197 }
0x115f   : > { %v3202_v14 = vsel %vm1720_vm5, %v3201_v13, %v3198_v25 }
0x1160   : > { %v3203_v15 = vpack.c.bf16 %v3202_v14, %v3202_v14 }
0x1162   : > { %5382 = vmatmul.mubr.bf16.vlgmr.msra.gmra.mrb[48].mxu1 %v3203_v15 }
0x1163   : > { %5407 = vmatprep.mubr.msk.bf16.mxu1 %vm5977_vm1, %v5976_v6 }
0x1235   : > { %v3309_v27 = vpop.f32.mrb[48].mxu1 }
0x1236   : > { %v3310_v22 = vadd.f32 %v4965_v20, %v3309_v27  ;;  %v5383_v24 = vpop.f32.mrb[49].mxu1 }
0x1237   : > { %v3312_v26 = vpop.f32.mrb[50].mxu1 }
0x1238   : > { %v3315_v28 = vmax.f32 %v3310_v22, 0.0  ;;  %v5384_v31 = vpop.f32.mrb[51].mxu1 }
0x123a   : > { %v3316_v33 = vpack.c.bf16 %v3315_v28, %v3315_v28 }
0x123c   : > { %5390 = vmatmul.mubr.msk.bf16.vlgmr.msra.gmra.mrb[76].mxu0 %vm1168_vm0, %v3316_v33 }
0x123d   : > { %3424 = vmatpush1.bf16.msra.mxu0 %v5720_v32  ;;  %3455 = vmatprep.mubr.bf16.mxu0 %v5975_v2  ;;  %v3393_v2 = vrot.slane %v3388_v43, %v6261_v9 }
0x123e   : > { %3425 = vmatprep.subr.bf16.mxu0 %v5725_v35 }
0x1241   : > { %3426 = vmatpush1.bf16.msra.mxu0 %v5723_v38 }
0x1242   : > { %5393 = vmatprep.subr.bf16.mxu0 %v5976_v6 }
0x130f   : > { %v3377_v39 = vpop.f32.mrb[76].mxu0 }
0x1310   : > { %v3378_v40 = vadd.f32 %v4974_v19, %v3377_v39  ;;  %v5391_v41 = vpop.f32.mrb[77].mxu0 }
0x1311   : > { %v3380_v42 = vpop.f32.mrb[78].mxu0 }
0x1312   : > { %v3383_v21 = vpack.c.bf16 %v3378_v40, %v3378_v40  ;;  %v5392_v54 = vpop.f32.mrb[79].mxu0 }
0x1314   : > { %4982 = vmatmul.mubr.msk.bf16.vlgmr.msra.gmra.mrb[80].mxu0 %vm1168_vm0, %v3383_v21 }
0x1315   : > { %5395 = vmatprep.mubr.msk.bf16.mxu0 %vm5977_vm1, %v5976_v6 }
0x13e7   : > { %v3457_v34 = vpop.f32.mrb[80].mxu0 }
0x13e8   : > { %v3458_v36 = vadd.f32 %v3457_v34, %v3393_v2  ;;  %v3459_v44 = vpop.f32.mrb[81].mxu0 }
0x13e9   : > { %v3460_v45 = vadd.f32 %v3459_v44, %v3397_v23  ;;  %v3461_v46 = vpop.f32.mrb[82].mxu0 }
0x13ea   : > { %v3464_v47 = vpack.c.bf16 %v3458_v36, %v3458_v36  ;;  %v3462_v48 = vpop.f32.mrb[83].mxu0 }
0x13eb   : > { %v3465_v56 = vpack.c.bf16 %v3460_v45, %v3460_v45 }
0x13ec   : > { %3573 = vrot.lane.b32.xlu1 %v3464_v47, %s6942_s10  ;;  %v3470_v49 = vsel %vm1168_vm0, %v3464_v47, 0  ;;  %v3527_v11 = vsel %vm2822_vm6, %v3464_v47, 0 }
0x13ed   : > { %3570 = vrot.lane.b32.xlu0 %v3465_v56, %s6942_s10  ;;  %5394 = vmatpush3.bf16.xpose.msra.mxu0 %v3470_v49 }
0x13ee   : > { %5399 = vmatprep.subr.bf16.mxu0 %v5976_v6 }
0x13f0   : > { %3680 = vrot.lane.b32.xlu1 %v3464_v47, %s6948_s5 }
0x13f1   : > { %3678 = vrot.lane.b32.xlu0 %v3465_v56, %s6948_s5 }
0x13f4   : > { %3787 = vrot.lane.b32.xlu1 %v3464_v47, %s6949_s3  ;;  %5396 = vmatmul.mubr.msk.bf16.vlgmr.msra.gmra.mrb[84].mxu0 %vm1168_vm0, %v3465_v56 }
0x13f5   : > { %3785 = vrot.lane.b32.xlu0 %v3465_v56, %s6949_s3  ;;  %5400 = vmatpush3.bf16.msra.mxu0 %v3527_v11 }
0x13f6   : > { %5401 = vmatprep.mubr.msk.bf16.mxu0 %vm5977_vm1, %v5976_v6  ;;  %5411 = vmatprep.subr.bf16.mxu0 %v5976_v6 }
0x145e   : > { %v6663_v50 = vpop.permute.xlu1 %3573 }
0x145f   : > { %v3579_v51 = vsel %vm1168_vm0, %v6663_v50, 0  ;;  %v3571_v53 = vpop.permute.xlu0 %3570 }
0x1460   : > { %5406 = vmatpush3.bf16.xpose.msra.mxu1 %v3579_v51 }
0x1461   : > { %5417 = vmatprep.subr.bf16.mxu1 %v5976_v6 }
0x1462   : > { %v6668_v52 = vpop.permute.xlu1 %3680 }
0x1463   : > { %v3686_v59 = vsel %vm1168_vm0, %v6668_v52, 0  ;;  %v3679_v57 = vpop.permute.xlu0 %3678 }
0x1466   : > { %v6676_v55 = vpop.permute.xlu1 %3787 }
0x1467   : > { %5408 = vmatmul.mubr.msk.bf16.vlgmr.msra.gmra.mrb[52].mxu1 %vm1168_vm0, %v3571_v53  ;;  %v3793_v58 = vsel %vm1168_vm0, %v6676_v55, 0  ;;  %v3786_v60 = vpop.permute.xlu0 %3785  ;;  %v3636_v53 = vsel %vm2822_vm6, %v6663_v50, 0 }
0x1468   : > { %5418 = vmatpush3.bf16.xpose.msra.mxu1 %v3686_v59  ;;  %5419 = vmatprep.mubr.msk.bf16.mxu1 %vm5977_vm1, %v5976_v6 }
0x1469   : > { %5429 = vmatprep.subr.bf16.mxu1 %v5976_v6 }
0x146f   : > { %5420 = vmatmul.mubr.msk.bf16.vlgmr.msra.gmra.mrb[56].mxu1 %vm1168_vm0, %v3679_v57 }
0x1470   : > { %5430 = vmatpush3.bf16.xpose.msra.mxu1 %v3793_v58  ;;  %5431 = vmatprep.mubr.msk.bf16.mxu1 %vm5977_vm1, %v5976_v6 }
0x1471   : > { %5441 = vmatprep.subr.bf16.mxu1 %v5976_v6 }
0x1477   : > { %5432 = vmatmul.mubr.msk.bf16.vlgmr.msra.gmra.mrb[60].mxu1 %vm1168_vm0, %v3786_v60 }
0x1478   : > { %5457 = vmatprep.mubr.msk.bf16.mxu1 %vm5977_vm1, %v5976_v6 }
0x14c7   : > { %v3506_v61 = vpop.f32.mrb[84].mxu0 }
0x14c8   : > { %v3507_v62 = vadd.f32 %v3506_v61, %v6573_v29  ;;  %v5397_v1 = vpop.f32.mrb[85].mxu0 }
0x14c9   : > { %v3509_v4 = vpop.f32.mrb[86].mxu0 }
0x14ca   : > { %v5398_v5 = vpop.f32.mrb[87].mxu0  ;;  %v3512_v7 = vsel %vm2806_vm8, %v3507_v62, -inf }
0x14cb   : > { %3513 = vmax.xlane.f32.xlu1 %v3512_v7  ;;  %v3850_v7 = vsel %vm2822_vm6, %v6676_v55, 0 }
0x153a   : > { %v3615_v10 = vpop.f32.mrb[52].mxu1 }
0x153b   : > { %v3616_v12 = vadd.f32 %v3615_v10, %v6573_v29  ;;  %v5409_v13 = vpop.f32.mrb[53].mxu1 }
0x153c   : > { %v3618_v25 = vpop.f32.mrb[54].mxu1 }
0x153d   : > { %v5410_v14 = vpop.f32.mrb[55].mxu1  ;;  %v3621_v15 = vsel %vm2806_vm8, %v3616_v12, -inf }
0x153e   : > { %3622 = vmax.xlane.f32.xlu0 %v3621_v15  ;;  %v5726_v15 = vld [vmem:[%s6956_s12] sm:$0xff]  }
0x153f   : > { %5442 = vmatpush3.bf16.msra.mxu1 %v5726_v15 }
0x1540   : > { %5443 = vmatprep.subr.bf16.mxu1 %v5976_v6 }
0x1542   : > { %v3722_v16 = vpop.f32.mrb[56].mxu1 }
0x1543   : > { %v3723_v17 = vadd.f32 %v3722_v16, %v6573_v29  ;;  %v5421_v18 = vpop.f32.mrb[57].mxu1  ;;  %v5727_v16 = vld [vmem:[%s6956_s12 + $0x8] sm:$0xff]  }
0x1544   : > { %v3725_v20 = vpop.f32.mrb[58].mxu1  ;;  %5444 = vmatpush3.bf16.msra.mxu1 %v5727_v16  ;;  %v5729_v18 = vld [vmem:[%s6956_s12 + $0x18] sm:$0xff]  }
0x1545   : > { %v5422_v27 = vpop.f32.mrb[59].mxu1  ;;  %v3728_v22 = vsel %vm2806_vm8, %v3723_v17, -inf  ;;  %5445 = vmatprep.subr.bf16.mxu1 %v5976_v6  ;;  %v5730_v20 = vld [vmem:[%s6956_s12 + $0x20] sm:$0xff]  }
0x1546   : > { %3729 = vmax.xlane.f32.xlu0 %v3728_v22  ;;  %v5731_v27 = vld [vmem:[%s6956_s12 + $0x28] sm:$0xff]   ;;  %v5732_v22 = vld [vmem:[%s6956_s12 + $0x30] sm:$0xff]  }
0x154a   : > { %v3829_v24 = vpop.f32.mrb[60].mxu1 }
0x154b   : > { %v3830_v26 = vadd.f32 %v3829_v24, %v6573_v29  ;;  %v5433_v28 = vpop.f32.mrb[61].mxu1 }
0x154c   : > { %v3832_v31 = vpop.f32.mrb[62].mxu1 }
0x154d   : > { %v5434_v32 = vpop.f32.mrb[63].mxu1  ;;  %v3835_v33 = vsel %vm2806_vm8, %v3830_v26, -inf }
0x154e   : > { %3836 = vmax.xlane.f32.xlu1 %v3835_v33  ;;  %v5733_v32 = vld [vmem:[%s6956_s12 + $0x38] sm:$0xff]  }
0x1558   : > { %v3514_v35 = vpop.xlane.xlu1 %3513 }
0x1559   : > { %v3515_v38 = vsub.f32 %v3507_v62, %v3514_v35  ;;  %v3743_v62 = vsel %vm2822_vm6, %v6668_v52, 0 }
0x155b   : > { %v3516_v19 = vmul.f32 1.442695, %v3515_v38 }
0x155d   : > { %5822 = vpow2.f32 %v3516_v19 }
0x1567   : > { %v5823_v39 = vpop.eup %5822 }
0x1568   : > { %v3518_v40 = vsel %vm2806_vm8, %v5823_v39, 0.0 }
0x1569   : > { %3519 = vadd.xlane.f32.xlu0 %v3518_v40 }
0x15cb   : > { %v3623_v41 = vpop.xlane.xlu0 %3622 }
0x15cc   : > { %v3624_v42 = vsub.f32 %v3616_v12, %v3623_v41 }
0x15ce   : > { %v3625_v21 = vmul.f32 1.442695, %v3624_v42 }
0x15d0   : > { %5824 = vpow2.f32 %v3625_v21 }
0x15d3   : > { %v3730_v54 = vpop.xlane.xlu0 %3729 }
0x15d4   : > { %v3731_v29 = vsub.f32 %v3723_v17, %v3730_v54  ;;  %v5728_v17 = vld [vmem:[%s6956_s12 + $0x10] sm:$0xff]  }
0x15d5   : > { %5446 = vmatpush3.bf16.msra.mxu1 %v5728_v17 }
0x15d6   : > { %v3732_v43 = vmul.f32 1.442695, %v3731_v29  ;;  %5447 = vmatprep.subr.bf16.mxu1 %v5976_v6 }
0x15d8   : > { %5826 = vpow2.f32 %v3732_v43 }
0x15d9   : > { %5448 = vmatpush3.bf16.msra.mxu1 %v5729_v18 }
0x15da   : > { %v5825_v2 = vpop.eup %5824  ;;  %5449 = vmatprep.subr.bf16.mxu1 %v5976_v6 }
0x15db   : > { %v3837_v23 = vpop.xlane.xlu1 %3836  ;;  %v3627_v34 = vsel %vm2806_vm8, %v5825_v2, 0.0 }
0x15dc   : > { %v3838_v36 = vsub.f32 %v3830_v26, %v3837_v23  ;;  %3628 = vadd.xlane.f32.xlu1 %v3627_v34 }
0x15dd   : > { %5450 = vmatpush3.bf16.msra.mxu1 %v5730_v20 }
0x15de   : > { %v3839_v44 = vmul.f32 1.442695, %v3838_v36  ;;  %5451 = vmatprep.subr.bf16.mxu1 %v5976_v6  ;;  %v5734_v36 = vld [vmem:[%s6957_s7] sm:$0xff]  }
0x15e0   : > { %5828 = vpow2.f32 %v3839_v44  ;;  %v5735_v44 = vld [vmem:[%s6957_s7 + $0x8] sm:$0xff]   ;;  %s5983_s7 = smov 112  }
0x15e1   : > { %5452 = vmatpush3.bf16.msra.mxu1 %v5731_v27 }
0x15e2   : > { %v5827_v45 = vpop.eup %5826  ;;  %5453 = vmatprep.subr.bf16.mxu1 %v5976_v6 }
0x15e3   : > { %v3734_v46 = vsel %vm2806_vm8, %v5827_v45, 0.0 }
0x15e4   : > { %3735 = vadd.xlane.f32.xlu0 %v3734_v46 }
0x15e5   : > { %5454 = vmatpush3.bf16.msra.mxu1 %v5732_v22 }
0x15e6   : > { %5455 = vmatprep.subr.bf16.mxu1 %v5976_v6 }
0x15e9   : > { %5456 = vmatpush3.bf16.msra.mxu1 %v5733_v32 }
0x15ea   : > { %v5829_v47 = vpop.eup %5828  ;;  %5491 = vmatprep.subr.bf16.mxu1 %v5976_v6 }
0x15eb   : > { %v3841_v48 = vsel %vm2806_vm8, %v5829_v47, 0.0 }
0x15ec   : > { %3842 = vadd.xlane.f32.xlu1 %v3841_v48 }
0x15f6   : > { %v3520_v56 = vpop.xlane.xlu0 %3519 }
0x15f7   : > { %5830 = vrcp.f32 %v3520_v56 }
0x1601   : > { %v5831_v49 = vpop.eup %5830 }
0x1602   : > { %v3522_v11 = vmul.f32 %v5831_v49, %v5823_v39 }
0x1604   : > { %v3523_v51 = vpack.c.bf16 %v3522_v11, %v3522_v11 }
0x1606   : > { %5402 = vmatmul.mubr.msk.bf16.vlgmr.msra.gmra.mrb[88].mxu0 %vm2806_vm8, %v3523_v51 }
0x1607   : > { %5412 = vmatpush3.bf16.msra.mxu0 %v3636_v53  ;;  %5413 = vmatprep.mubr.msk.bf16.mxu0 %vm5977_vm1, %v5976_v6 }
0x1608   : > { %5423 = vmatprep.subr.bf16.mxu0 %v5976_v6 }
0x1669   : > { %v3629_v59 = vpop.xlane.xlu1 %3628 }
0x166a   : > { %5832 = vrcp.f32 %v3629_v59 }
0x1671   : > { %v3736_v57 = vpop.xlane.xlu0 %3735 }
0x1672   : > { %5834 = vrcp.f32 %v3736_v57 }
0x1674   : > { %v5833_v58 = vpop.eup %5832 }
0x1675   : > { %v3631_v60 = vmul.f32 %v5833_v58, %v5825_v2 }
0x1677   : > { %v3632_v61 = vpack.c.bf16 %v3631_v60, %v3631_v60  ;;  %v5000_v60 = vld [vmem:[%s6961_s1] ss:$0 sm:$0xff]  ;;  %s5982_s1 = smov 120  }
0x1679   : > { %5414 = vmatmul.mubr.msk.bf16.vlgmr.msra.gmra.mrb[92].mxu0 %vm2806_vm8, %v3632_v61  ;;  %v3843_v50 = vpop.xlane.xlu1 %3842 }
0x167a   : > { %5424 = vmatpush3.bf16.msra.mxu0 %v3743_v62  ;;  %5836 = vrcp.f32 %v3843_v50  ;;  %5425 = vmatprep.mubr.msk.bf16.mxu0 %vm5977_vm1, %v5976_v6 }
0x167b   : > { %5435 = vmatprep.subr.bf16.mxu0 %v5976_v6 }
0x167c   : > { %v5835_v1 = vpop.eup %5834 }
0x167d   : > { %v3738_v4 = vmul.f32 %v5835_v1, %v5827_v45 }
0x167f   : > { %v3739_v5 = vpack.c.bf16 %v3738_v4, %v3738_v4 }
0x1681   : > { %5426 = vmatmul.mubr.msk.bf16.vlgmr.msra.gmra.mrb[96].mxu0 %vm2806_vm8, %v3739_v5 }
0x1682   : > { %5436 = vmatpush3.bf16.msra.mxu0 %v3850_v7  ;;  %5437 = vmatprep.mubr.msk.bf16.mxu0 %vm5977_vm1, %v5976_v6 }
0x1683   : > { %5461 = vmatprep.subr.bf16.mxu0 %v5976_v6 }
0x1684   : > { %v5837_v52 = vpop.eup %5836 }
0x1685   : > { %v3845_v10 = vmul.f32 %v5837_v52, %v5829_v47 }
0x1687   : > { %v3846_v12 = vpack.c.bf16 %v3845_v10, %v3845_v10 }
0x1689   : > { %5438 = vmatmul.mubr.msk.bf16.vlgmr.msra.gmra.mrb[100].mxu0 %vm2806_vm8, %v3846_v12 }
0x168a   : > { %5465 = vmatprep.mubr.msk.bf16.mxu0 %vm5977_vm1, %v5976_v6  ;;  %5462 = vmatpush3.bf16.msra.mxu0 %v5734_v36 }
0x168b   : > { %5463 = vmatprep.subr.bf16.mxu0 %v5976_v6 }
0x168e   : > { %5464 = vmatpush3.bf16.msra.mxu0 %v5735_v44 }
0x168f   : > { %5469 = vmatprep.subr.bf16.mxu0 %v5976_v6 }
0x16d9   : > { %v3563_v55 = vpop.f32.mrb[88].mxu0 }
0x16da   : > { %v5403_v13 = vpop.f32.mrb[89].mxu0 }
0x16db   : > { %v3566_v25 = vpop.f32.mrb[90].mxu0 }
0x16dc   : > { %v5404_v14 = vpop.f32.mrb[91].mxu0 }
0x174c   : > { %v3672_v24 = vpop.f32.mrb[92].mxu0 }
0x174d   : > { %3893 = vrot.lane.b32.xlu0 %v3672_v24, %s6949_s3  ;;  %v5415_v26 = vpop.f32.mrb[93].mxu0  ;;  %s6958_s3 = sld [smem:[#allocation24_spill]] }
0x174e   : > { %v3675_v28 = vpop.f32.mrb[94].mxu0 }
0x174f   : > { %v5416_v31 = vpop.f32.mrb[95].mxu0 }
0x1753   : > { %v4991_v45 = vld [vmem:[%s6958_s3] ss:$0 sm:$0xff]  ;;  %s6962_s3 = sld [smem:[#allocation28_spill]] }
0x1754   : > { %v3779_v33 = vpop.f32.mrb[96].mxu0 }
0x1755   : > { %3897 = vrot.lane.b32.xlu1 %v3779_v33, %s6948_s5  ;;  %v5427_v35 = vpop.f32.mrb[97].mxu0  ;;  %s6959_s5 = sld [smem:[#allocation27_spill]] }
0x1756   : > { %v3782_v38 = vpop.f32.mrb[98].mxu0 }
0x1757   : > { %v5428_v19 = vpop.f32.mrb[99].mxu0 }
0x1759   : > { %v5004_v0 = vld [vmem:[%s6962_s3] ss:$0 sm:$0xff]  ;;  %s5984_s3 = smov 104  }
0x175b   : > { %v5736_v51 = vld [vmem:[%s6959_s5] sm:$0xff]   ;;  %v5737_v59 = vld [vmem:[%s6959_s5 + $0x8] sm:$0xff]   ;;  %s6963_s5 = sld [smem:[#allocation30_spill]] }
0x175c   : > { %v3886_v39 = vpop.f32.mrb[100].mxu0 }
0x175d   : > { %3901 = vrot.lane.b32.xlu1 %v3886_v39, %s6942_s10  ;;  %v5439_v40 = vpop.f32.mrb[101].mxu0  ;;  %s6960_s10 = sld [smem:[#allocation29_spill]] }
0x175e   : > { %v3889_v41 = vpop.f32.mrb[102].mxu0 }
0x175f   : > { %v5440_v42 = vpop.f32.mrb[103].mxu0 }
0x1761   : > { %v5008_v25 = vld [vmem:[%s6963_s5] ss:$0 sm:$0xff]  ;;  %s5985_s5 = smov 8  }
0x1763   : > { %v5738_v57 = vld [vmem:[%s6960_s10] sm:$0xff]   ;;  %v5739_v58 = vld [vmem:[%s6960_s10 + $0x8] sm:$0xff]  }
0x17bf   : > { %v3894_v21 = vpop.permute.xlu0 %3893 }
0x17c0   : > { %v3904_v29 = vsel %vm1168_vm0, %v3563_v55, %v3894_v21 }
0x17c7   : > { %v3898_v54 = vpop.permute.xlu1 %3897 }
0x17c8   : > { %v3905_v43 = vsel %vm1717_vm4, %v3904_v29, %v3898_v54 }
0x17cf   : > { %v3902_v2 = vpop.permute.xlu1 %3901 }
0x17d0   : > { %v3906_v23 = vsel %vm1720_vm5, %v3905_v43, %v3902_v2 }
0x17d1   : > { %v3907_v34 = vpack.c.bf16 %v3906_v23, %v3906_v23 }
0x17d3   : > { %5458 = vmatmul.mubr.bf16.vlgmr.msra.gmra.mrb[64].mxu1 %v3907_v34 }
0x17d4   : > { %5493 = vmatprep.mubr.msk.bf16.mxu1 %vm5977_vm1, %v5976_v6 }
0x18a6   : > { %v4013_v46 = vpop.f32.mrb[64].mxu1 }
0x18a7   : > { %v4014_v47 = vadd.f32 %v4991_v45, %v4013_v46  ;;  %v5459_v48 = vpop.f32.mrb[65].mxu1 }
0x18a8   : > { %v4016_v56 = vpop.f32.mrb[66].mxu1 }
0x18a9   : > { %v4019_v49 = vmax.f32 %v4014_v47, 0.0  ;;  %v5460_v11 = vpop.f32.mrb[67].mxu1 }
0x18ab   : > { %v4020_v53 = vpack.c.bf16 %v4019_v49, %v4019_v49 }
0x18ad   : > { %5466 = vmatmul.mubr.msk.bf16.vlgmr.msra.gmra.mrb[104].mxu0 %vm1168_vm0, %v4020_v53 }
0x18ae   : > { %5470 = vmatpush3.bf16.msra.mxu0 %v5736_v51  ;;  %5473 = vmatprep.mubr.msk.bf16.mxu0 %vm5977_vm1, %v5976_v6 }
0x18af   : > { %5471 = vmatprep.subr.bf16.mxu0 %v5976_v6 }
0x18b2   : > { %5472 = vmatpush3.bf16.msra.mxu0 %v5737_v59 }
0x18b3   : > { %5477 = vmatprep.subr.bf16.mxu0 %v5976_v6 }
0x18b5   : > { %5474 = vmatmul.mubr.msk.bf16.vlgmr.msra.gmra.mrb[108].mxu0 %vm1168_vm0, %v2677_v3 }
0x18b6   : > { %5478 = vmatpush3.bf16.msra.mxu0 %v5738_v57  ;;  %5481 = vmatprep.mubr.msk.bf16.mxu0 %vm5977_vm1, %v5976_v6 }
0x18b7   : > { %5479 = vmatprep.subr.bf16.mxu0 %v5976_v6 }
0x18ba   : > { %5480 = vmatpush3.bf16.msra.mxu0 %v5739_v58 }
0x18bb   : > { %5485 = vmatprep.subr.bf16.mxu0 %v5976_v6 }
0x1980   : > { %v4081_v61 = vpop.f32.mrb[104].mxu0 }
0x1981   : > { %v4082_v62 = vadd.f32 %v5000_v60, %v4081_v61  ;;  %v5467_v50 = vpop.f32.mrb[105].mxu0 }
0x1982   : > { %v4084_v1 = vpop.f32.mrb[106].mxu0 }
0x1983   : > { %v4087_v4 = vpack.c.bf16 %v4082_v62, %v4082_v62  ;;  %v5468_v63 = vpop.f32.mrb[107].mxu0 }
0x1985   : > { %5482 = vmatmul.mubr.msk.bf16.vlgmr.msra.gmra.mrb[112].mxu0 %vm1168_vm0, %v4087_v4 }
0x1986   : > { %5487 = vmatprep.mubr.msk.bf16.mxu0 %vm5977_vm1, %v5976_v6 }
0x1988   : > { %v4148_v3 = vpop.f32.mrb[108].mxu0 }
0x1989   : > { %v5475_v5 = vpop.f32.mrb[109].mxu0  ;;  %v4149_v52 = vadd.f32 %v5004_v0, %v4148_v3 }
0x198a   : > { %v4151_v7 = vpop.f32.mrb[110].mxu0 }
0x198b   : > { %v4152_v10 = vadd.f32 %v5004_v0, %v4151_v7  ;;  %v5476_v12 = vpop.f32.mrb[111].mxu0 }
0x198d   : > { %v4155_v55 = vpack.c.bf16 %v4152_v10, %v4149_v52 }
0x198f   : > { %4328 = vrot.lane.b32.xlu0 %v4155_v55, %s5982_s1  ;;  %5492 = vmatpush3.bf16.msra.mxu1 %v4155_v55  ;;  %v4227_v13 = vsel %vm2806_vm8, %v4155_v55, 0 }
0x1990   : > { %5486 = vmatpush3.bf16.xpose.msra.mxu0 %v4227_v13  ;;  %5503 = vmatprep.subr.bf16.mxu1 %v5976_v6 }
0x1991   : > { %5497 = vmatprep.subr.bf16.mxu0 %v5976_v6 }
0x1993   : > { %4434 = vrot.lane.b32.xlu0 %v4155_v55, %s5983_s7 }
0x1997   : > { %4540 = vrot.lane.b32.xlu0 %v4155_v55, %s5984_s3 }
0x1a01   : > { %v6775_v17 = vpop.permute.xlu0 %4328 }
0x1a02   : > { %v4334_v22 = vsel %vm2806_vm8, %v6775_v17, 0 }
0x1a05   : > { %v6783_v24 = vpop.permute.xlu0 %4434 }
0x1a06   : > { %v4440_v28 = vsel %vm2806_vm8, %v6783_v24, 0 }
0x1a09   : > { %v6791_v31 = vpop.permute.xlu0 %4540 }
0x1a0a   : > { %v4546_v33 = vsel %vm2806_vm8, %v6791_v31, 0 }
0x1a58   : > { %v4216_v14 = vpop.f32.mrb[112].mxu0 }
0x1a59   : > { %v4217_v15 = vadd.f32 %v5008_v25, %v4216_v14  ;;  %v5483_v16 = vpop.f32.mrb[113].mxu0 }
0x1a5a   : > { %v4219_v18 = vpop.f32.mrb[114].mxu0 }
0x1a5b   : > { %v4222_v20 = vpack.c.bf16 %v4217_v15, %v4217_v15  ;;  %v5484_v27 = vpop.f32.mrb[115].mxu0 }
0x1a5d   : > { %4325 = vrot.lane.b32.xlu1 %v4222_v20, %s5982_s1  ;;  %5488 = vmatmul.mubr.msk.bf16.vlgmr.msra.gmra.mrb[116].mxu0 %vm2806_vm8, %v4222_v20 }
0x1a5e   : > { %5498 = vmatpush3.bf16.xpose.msra.mxu0 %v4334_v22  ;;  %5499 = vmatprep.mubr.msk.bf16.mxu0 %vm5977_vm1, %v5976_v6 }
0x1a5f   : > { %5509 = vmatprep.subr.bf16.mxu0 %v5976_v6 }
0x1a61   : > { %4432 = vrot.lane.b32.xlu1 %v4222_v20, %s5983_s7  ;;  %s6964_s7 = sld [smem:[#allocation10_spill]] }
0x1a65   : > { %4538 = vrot.lane.b32.xlu1 %v4222_v20, %s5984_s3  ;;  %s5986_s3 = smov 16  }
0x1a67   : > { %s1112_s1 = scalar_lea.vmem %s6964_s7, %s6245_s18  ;;  %s1099_s18 = sand.u32 1, %s5929_s23  }
0x1a68   : > { %s5024_s7 = sshll.u32 %s6195_s0, 4  ;;  %s5988_s0 = smov [#allocation5]  }
0x1acf   : > { %v4326_v26 = vpop.permute.xlu1 %4325 }
0x1ad0   : > { %5500 = vmatmul.mubr.msk.bf16.vlgmr.msra.gmra.mrb[120].mxu0 %vm2806_vm8, %v4326_v26 }
0x1ad1   : > { %5510 = vmatpush3.bf16.xpose.msra.mxu0 %v4440_v28  ;;  %5511 = vmatprep.mubr.msk.bf16.mxu0 %vm5977_vm1, %v5976_v6 }
0x1ad2   : > { %5521 = vmatprep.subr.bf16.mxu0 %v5976_v6 }
0x1ad3   : > { %v4433_v32 = vpop.permute.xlu1 %4432 }
0x1ad7   : > { %v4539_v35 = vpop.permute.xlu1 %4538 }
0x1ad8   : > { %5512 = vmatmul.mubr.msk.bf16.vlgmr.msra.gmra.mrb[124].mxu0 %vm2806_vm8, %v4433_v32 }
0x1ad9   : > { %5522 = vmatpush3.bf16.xpose.msra.mxu0 %v4546_v33  ;;  %5523 = vmatprep.mubr.msk.bf16.mxu0 %vm5977_vm1, %v5976_v6 }
0x1ada   : > { %5533 = vmatprep.subr.bf16.mxu0 %v5976_v6 }
0x1ae0   : > { %5524 = vmatmul.mubr.msk.bf16.vlgmr.msra.gmra.mrb[128].mxu0 %vm2806_vm8, %v4539_v35 }
0x1ae1   : > { %5537 = vmatprep.mubr.msk.bf16.mxu0 %vm5977_vm1, %v5976_v6 }
0x1b30   : > { %v4263_v38 = vpop.f32.mrb[116].mxu0 }
0x1b31   : > { %v4264_v19 = vadd.f32 %v4263_v38, %v6309_v37  ;;  %v5489_v39 = vpop.f32.mrb[117].mxu0 }
0x1b32   : > { %v4266_v40 = vpop.f32.mrb[118].mxu0 }
0x1b33   : > { %v5490_v41 = vpop.f32.mrb[119].mxu0  ;;  %v4269_v42 = vsel %vm1264_vm3, %v4264_v19, -inf }
0x1b34   : > { %4270 = vmax.xlane.f32.xlu0 %v4269_v42 }
0x1ba3   : > { %v4370_v21 = vpop.f32.mrb[120].mxu0 }
0x1ba4   : > { %v4371_v54 = vadd.f32 %v4370_v21, %v6309_v37  ;;  %v5501_v29 = vpop.f32.mrb[121].mxu0 }
0x1ba5   : > { %v4373_v43 = vpop.f32.mrb[122].mxu0  ;;  %v4673_v29 = vld [vmem:[%s1112_s1] sm:$0x1] }
0x1ba6   : > { %v5502_v2 = vpop.f32.mrb[123].mxu0  ;;  %v4376_v23 = vsel %vm1264_vm3, %v4371_v54, -inf }
0x1ba7   : > { %4377 = vmax.xlane.f32.xlu1 %v4376_v23 }
0x1bab   : > { %v4476_v34 = vpop.f32.mrb[124].mxu0 }
0x1bac   : > { %v4477_v36 = vadd.f32 %v4476_v34, %v6309_v37  ;;  %v5513_v44 = vpop.f32.mrb[125].mxu0 }
0x1bad   : > { %v4479_v45 = vpop.f32.mrb[126].mxu0 }
0x1bae   : > { %v5514_v46 = vpop.f32.mrb[127].mxu0  ;;  %v4482_v47 = vsel %vm1264_vm3, %v4477_v36, -inf }
0x1baf   : > { %4483 = vmax.xlane.f32.xlu0 %v4482_v47 }
0x1bb3   : > { %v4582_v48 = vpop.f32.mrb[128].mxu0 }
0x1bb4   : > { %v4583_v56 = vadd.f32 %v4582_v48, %v6309_v37  ;;  %v5525_v49 = vpop.f32.mrb[129].mxu0 }
0x1bb5   : > { %v4585_v11 = vpop.f32.mrb[130].mxu0 }
0x1bb6   : > { %v5526_v51 = vpop.f32.mrb[131].mxu0  ;;  %v4588_v53 = vsel %vm1264_vm3, %v4583_v56, -inf }
0x1bb7   : > { %4589 = vmax.xlane.f32.xlu0 %v4588_v53  ;;  %v5020_v53 = vsel %vm4662_vm9, 1.0, %v5976_v6 }
0x1bc1   : > { %v4271_v59 = vpop.xlane.xlu0 %4270 }
0x1bc2   : > { %v4272_v57 = vsub.f32 %v4264_v19, %v4271_v59 }
0x1bc4   : > { %v4273_v58 = vmul.f32 1.442695, %v4272_v57 }
0x1bc6   : > { %5838 = vpow2.f32 %v4273_v58 }
0x1bd0   : > { %v5839_v60 = vpop.eup %5838 }
0x1bd1   : > { %v4275_v61 = vsel %vm1264_vm3, %v5839_v60, 0.0 }
0x1bd2   : > { %4276 = vadd.xlane.f32.xlu1 %v4275_v61 }
0x1c34   : > { %v4378_v62 = vpop.xlane.xlu1 %4377 }
0x1c35   : > { %v4379_v50 = vsub.f32 %v4371_v54, %v4378_v62 }
0x1c37   : > { %v4380_v1 = vmul.f32 1.442695, %v4379_v50 }
0x1c39   : > { %5840 = vpow2.f32 %v4380_v1 }
0x1c3c   : > { %v4484_v4 = vpop.xlane.xlu0 %4483 }
0x1c3d   : > { %v4485_v37 = vsub.f32 %v4477_v36, %v4484_v4  ;;  %v5740_v36 = vld [vmem:[%s6935_s9] sm:$0xff]  }
0x1c3e   : > { %5534 = vmatpush3.bf16.msra.mxu0 %v5740_v36 }
0x1c3f   : > { %v4486_v63 = vmul.f32 1.442695, %v4485_v37  ;;  %5535 = vmatprep.subr.bf16.mxu0 %v5976_v6 }
0x1c41   : > { %5842 = vpow2.f32 %v4486_v63 }
0x1c43   : > { %v5841_v0 = vpop.eup %5840 }
0x1c44   : > { %v4590_v3 = vpop.xlane.xlu0 %4589  ;;  %v4382_v5 = vsel %vm1264_vm3, %v5841_v0, 0.0 }
0x1c45   : > { %v4591_v7 = vsub.f32 %v4583_v56, %v4590_v3  ;;  %4383 = vadd.xlane.f32.xlu0 %v4382_v5  ;;  %v5741_v56 = vld [vmem:[%s6935_s9 + $0x8] sm:$0xff]  }
0x1c46   : > { %5536 = vmatpush3.bf16.msra.mxu0 %v5741_v56 }
0x1c47   : > { %v4592_v52 = vmul.f32 1.442695, %v4591_v7 }
0x1c49   : > { %5844 = vpow2.f32 %v4592_v52 }
0x1c4b   : > { %v5843_v10 = vpop.eup %5842 }
0x1c4c   : > { %v4488_v12 = vsel %vm1264_vm3, %v5843_v10, 0.0 }
0x1c4d   : > { %4489 = vadd.xlane.f32.xlu1 %v4488_v12  ;;  %v4750_v12 = vld [vmem:[%s6167_s13] sm:$0x1] }
0x1c53   : > { %v5845_v55 = vpop.eup %5844 }
0x1c54   : > { %v4594_v13 = vsel %vm1264_vm3, %v5845_v55, 0.0 }
0x1c55   : > { %4595 = vadd.xlane.f32.xlu0 %v4594_v13 }
0x1c5f   : > { %v4277_v25 = vpop.xlane.xlu1 %4276 }
0x1c60   : > { %5846 = vrcp.f32 %v4277_v25 }
0x1c6a   : > { %v5847_v14 = vpop.eup %5846 }
0x1c6b   : > { %v4279_v15 = vmul.f32 %v5847_v14, %v5839_v60 }
0x1c6d   : > { %v4280_v16 = vpack.c.bf16 %v4279_v15, %v4279_v15 }
0x1c6f   : > { %5494 = vmatmul.mubr.msk.bf16.vlgmr.msra.gmra.mrb[68].mxu1 %vm1264_vm3, %v4280_v16 }
0x1c70   : > { %5504 = vmatpush3.bf16.msra.mxu1 %v6775_v17  ;;  %5505 = vmatprep.mubr.msk.bf16.mxu1 %vm5977_vm1, %v5976_v6 }
0x1c71   : > { %5515 = vmatprep.subr.bf16.mxu1 %v5976_v6 }
0x1cd2   : > { %v4384_v18 = vpop.xlane.xlu0 %4383 }
0x1cd3   : > { %5848 = vrcp.f32 %v4384_v18 }
0x1cda   : > { %v4490_v20 = vpop.xlane.xlu1 %4489 }
0x1cdb   : > { %5850 = vrcp.f32 %v4490_v20 }
0x1cdd   : > { %v5849_v27 = vpop.eup %5848 }
0x1cde   : > { %v4386_v22 = vmul.f32 %v5849_v27, %v5841_v0 }
0x1ce0   : > { %v4387_v26 = vpack.c.bf16 %v4386_v22, %v4386_v22 }
0x1ce2   : > { %5506 = vmatmul.mubr.msk.bf16.vlgmr.msra.gmra.mrb[72].mxu1 %vm1264_vm3, %v4387_v26  ;;  %v4596_v28 = vpop.xlane.xlu0 %4595 }
0x1ce3   : > { %5516 = vmatpush3.bf16.msra.mxu1 %v6783_v24  ;;  %5852 = vrcp.f32 %v4596_v28  ;;  %5517 = vmatprep.mubr.msk.bf16.mxu1 %vm5977_vm1, %v5976_v6 }
0x1ce4   : > { %5527 = vmatprep.subr.bf16.mxu1 %v5976_v6  ;;  %5854 = vrcp.f32 %v4673_v29 }
0x1ce5   : > { %v5851_v17 = vpop.eup %5850 }
0x1ce6   : > { %v4492_v32 = vmul.f32 %v5851_v17, %v5843_v10 }
0x1ce8   : > { %v4493_v33 = vpack.c.bf16 %v4492_v32, %v4492_v32 }
0x1cea   : > { %5518 = vmatmul.mubr.msk.bf16.vlgmr.msra.gmra.mrb[76].mxu1 %vm1264_vm3, %v4493_v33 }
0x1ceb   : > { %5528 = vmatpush3.bf16.msra.mxu1 %v6791_v31  ;;  %5529 = vmatprep.mubr.msk.bf16.mxu1 %vm5977_vm1, %v5976_v6  ;;  %v4682_v6 = vld [vmem:[%s6965_s4] sm:$0x1]  ;;  %s5875_s4 = sshll.u32 %s5988_s0, 4  ;;  %s5876_s4 = int_to_ptr.vmem [resolvable:$false] %s5875_s4 }
0x1cec   : > { %s5877_s9 = scalar_lea.vmem %s5876_s4, 32 }
0x1ced   : > { %v5853_v35 = vpop.eup %5852 }
0x1cee   : > { %v4598_v24 = vmul.f32 %v5853_v35, %v5845_v55  ;;  %v5855_v46 = vpop.eup %5854 }
0x1cf0   : > { %v4599_v38 = vpack.c.bf16 %v4598_v24, %v4598_v24 }
0x1cf2   : > { %5530 = vmatmul.mubr.msk.bf16.vlgmr.msra.gmra.mrb[80].mxu1 %vm1264_vm3, %v4599_v38 }
0x1d42   : > { %v4318_v19 = vpop.f32.mrb[68].mxu1 }
0x1d43   : > { %v5495_v39 = vpop.f32.mrb[69].mxu1 }
0x1d44   : > { %v4321_v40 = vpop.f32.mrb[70].mxu1 }
0x1d45   : > { %v5496_v41 = vpop.f32.mrb[71].mxu1 }
0x1db5   : > { %v4426_v42 = vpop.f32.mrb[72].mxu1 }
0x1db6   : > { %4645 = vrot.lane.b32.xlu1 %v4426_v42, %s5985_s5  ;;  %v5507_v21 = vpop.f32.mrb[73].mxu1  ;;  %s1100_s5 = scalar_lea.vmem [#allocation5], %s1099_s18 }
0x1db7   : > { %v4429_v54 = vpop.f32.mrb[74].mxu1  ;;  %s4766_s1 = sshll.u32 %s1100_s5, 4  ;;  %s6851_s1 = int_to_ptr.vmem [resolvable:$true] %s4766_s1 }
0x1db8   : > { %v5508_v31 = vpop.f32.mrb[75].mxu1  ;;  %p5878_p10 = scmp.lt.s32.totalorder %s6851_s1, %s5876_s4 }
0x1dbd   : > { %v4532_v43 = vpop.f32.mrb[76].mxu1 }
0x1dbe   : > { %4649 = vrot.lane.b32.xlu0 %v4532_v43, %s5986_s3  ;;  %v5519_v2 = vpop.f32.mrb[77].mxu1  ;;  %s4754_s3 = scalar_lea.sflag [#allocation3], %s1099_s18 }
0x1dbf   : > { %v4535_v23 = vpop.f32.mrb[78].mxu1 }
0x1dc0   : > { %v5520_v34 = vpop.f32.mrb[79].mxu1 }
0x1dc5   : > { %v4638_v44 = vpop.f32.mrb[80].mxu1 }
0x1dc6   : > { %4653 = vrot.lane.b32.xlu1 %v4638_v44, %s5987_s8  ;;  %v5531_v45 = vpop.f32.mrb[81].mxu1  ;;  %s4681_s8 = scvt.s32.f32 %s6566_s6  ;;  %s6849_s6 = scalar_lea.hbm %s6172_s20, %s5024_s7 }
0x1dc7   : > { %v4641_v47 = vpop.f32.mrb[82].mxu1 }
0x1dc8   : > { %v5532_v48 = vpop.f32.mrb[83].mxu1  ;;  %v4683_v63 = vstv %s4681_s8  ;;  %s5871_s8 = scalar_lea.vmem %s6851_s1, 16 }
0x1dc9   : > { %v4684_v3 = vmul.f32 %v4683_v63, %v4682_v6  ;;  %p5872_p6 = scmp.ne.s32.totalorder %s6851_s1, %s5871_s8  ;;  %p5879_p11 = scmp.lt.s32.totalorder %s5877_s9, %s5871_s8 }
0x1dca   : > { %4742 = vperm.xlu1 %5669, %v5855_v46  }
0x1dcb   : > { %p5873_p8 = pnand %p5872_p6, %p6966_p7  ;;  %p5880_p12 = por %p5879_p11, %p5878_p10 }
0x1dcd   : > { %p5874_p9 = pneg %p5873_p8 }
0x1dcf   : > { %p5881_p13 = pnand %p5880_p12, %p5874_p9 }
0x1e28   : > { %v4646_v49 = vpop.permute.xlu1 %4645 }
0x1e29   : > { %v4656_v51 = vsel %vm2806_vm8, %v4318_v19, %v4646_v49 }
0x1e30   : > { %v4650_v11 = vpop.permute.xlu0 %4649 }
0x1e31   : > { %v4657_v59 = vsel %vm1264_vm3, %v4656_v51, %v4650_v11 }
0x1e38   : > { %v4654_v57 = vpop.permute.xlu1 %4653 }
0x1e39   : > { %v4659_v58 = vsel %vm4658_vm10, %v4657_v59, %v4654_v57 }
0x1e3a   : > { %v4665_v60 = vmul.f32 %v5020_v53, %v4659_v58 }
0x1e3c   : > { %v4666_v61 = vsel %vm1168_vm0, %v4665_v60, 0.0 }
0x1e3d   : > { %v4667_v62 = vrot.slane %v4666_v61, 4 }
0x1e3f   : > { %v4668_v50 = vadd.f32 %v4667_v62, %v4666_v61 }
0x1e41   : > { %v4669_v1 = vrot.slane %v4668_v50, 2 }
0x1e43   : > { %v4670_v8 = vadd.f32 %v4669_v1, %v4668_v50 }
0x1e45   : > { %v4671_v30 = vrot.slane %v4670_v8, 1 }
0x1e47   : > { %v4672_v4 = vadd.f32 %v4671_v30, %v4670_v8 }
0x1e49   : > { %v4676_v37 = vpack.c.bf16 %v4672_v4, %v4672_v4  ;;  %v4743_v0 = vpop.permute.xlu1 %4742 }
0x1e4a   : > { %v4748_v5 = vrot.slane %v4743_v0, %v6261_v9 }
0x1e4b   : > { %5538 = vmatmul.mubr.msk.bf16.vlgmr.msra.gmra.mrb[132].mxu0 %vm1168_vm0, %v4676_v37 }
0x1f1e   : > { %v4734_v7 = vpop.f32.mrb[132].mxu0 }
0x1f1f   : > { %v4735_v52 = vadd.f32 %v4734_v7, %v4684_v3  ;;  %v5539_v10 = vpop.f32.mrb[133].mxu0 }
0x1f20   : > { %v4737_v55 = vpop.f32.mrb[134].mxu0 }
0x1f21   : > { %v4749_v13 = vmul.f32 %v4748_v5, %v4735_v52  ;;  %v5540_v25 = vpop.f32.mrb[135].mxu0 }
0x1f23   : > { %v4751_v14 = vadd.f32 %v4750_v12, %v4749_v13 }
0x1f25   : > { %4752 = vst [vmem:[%s1100_s5] sm:$0x1] %v4751_v14 }
0x1f26   : > { %5884 = shalt.err (!%p5881_p13)
}
0x1f27   : > { %s5885_s18 = scalar_lea.hbm %s6849_s6, 16  ;;  %s5889_s7 = scalar_lea.hbm %s6172_s20, 32 }
0x1f28   : > { %p5886_p0 = scmp.ne.s32.totalorder %s6849_s6, %s5885_s18  ;;  %p5890_p3 = scmp.lt.u32.totalorder %s6849_s6, %s6172_s20 }
0x1f29   : > { %p5891_p4 = scmp.lt.u32.totalorder %s5889_s7, %s5885_s18  ;;  %p5893_p6 = scmp.lt.u32.totalorder %s5885_s18, %s6849_s6 }
0x1f2a   : > { %p5887_p1 = pnand %p5886_p0, %p6966_p7 }
0x1f2b   : > { %p5892_p5 = por %p5891_p4, %p5890_p3 }
0x1f2c   : > { %p5888_p2 = pneg %p5887_p1 }
0x1f2d   : > { %p5894_p8 = por %p5893_p6, %p5892_p5 }
0x1f2f   : > { %p5895_p9 = pnand %p5894_p8, %p5888_p2 }
0x1f31   : > { %5898 = shalt.err (!%p5895_p9)
}
0x1f32   : > { %5545 = dma.vmem_to_hbm [thread:$0]  (%p6966_p7), %s6851_s1, 16, %s6849_s6, %s4754_s3  }
0x1f33 PF: > { %p5557_p10 = scmp.ge.s32.totalorder %s5937_s28, 2  ;;  %s4778_s9 = sand.u32 1, %s5925_s22  }
0x1f34   : > { %p6967_p11 = scmp.ne.s32.totalorder %s6939_s16, 0  ;;  %s4779_s4 = scalar_lea.sflag [#allocation3], %s4778_s9 }
0x1f36   : > { %p5552_p12 = pnand %p5557_p10, %p6967_p11 }
0x1f38   : > { %5920 = dma.done.wait (!%p5552_p12), %s4779_s4, 16  }
0x1f39   : > { %5922 = vsyncadd (!%p5552_p12), %s4779_s4, 4294967280  ;;  %p82_p13 = scmp.ge.s32.totalorder %s6199_s2, 4   ;;  %s6968_s22 = smov %s5929_s23 }
0x1f3a   : > { %s6969_s23 = smov %s5933_s26  ;;  %s6970_s26 = smov %s6210_s11 }
0x1f3b   : > { %s6971_s28 = smov %s6199_s2  ;;  %84 = sbr.rel (!%p82_p13) target bundleno = 70 (0x46), region = 241 }
0x1f42   :  { %4783 = vsyncpa [#allocation3], 1 }
0x1f43   :  { %4785 = vsyncpa [#allocation3 + $0x1], 1 }
0x1f44   :  { %4786 = vsyncpa [#allocation4], 1 }
0x1f45   :  { %4788 = vsyncpa [#allocation4 + $0x1], 1 }

</bundles_post_ra>
